<compile_context>
chip_gen: v7x
topology: tpu7x:2x2x1
jax: 0.10.0
libtpu: 0.0.40
codegen_flags: <defaults>
</compile_context>

<pallas_src>
import functools

import numpy as np
import jax
import jax.numpy as jnp
from jax.experimental import pallas as pl
from jax.experimental.pallas import tpu as pltpu

N_MODULES = 2            # `nModules = 2` in the PyTorch file
BN_EPS = 1e-5
_STORE_DTYPE = jnp.float32   # bf16 halves HBM traffic in production
_VPU_1X1_MAX_C = 16          # below this, 1x1 convs run as VPU FMAs (MXU is padding)


def _vmem_limit_bytes(est_bytes):
    # Explicit scoped-VMEM budget (v7x has only 64 MiB physical VMEM).
    return int(min(64 * 2 ** 20, max(8 * 2 ** 20, 2 * est_bytes)))


# ---------------------------------------------------------------------------
# Kernels
# ---------------------------------------------------------------------------
def _conv1x1(w, b, t, use_vpu):
    # w: (Cout, Cin), b: (Cout, 1), t: (Cin, HW) f32  ->  (Cout, HW) f32
    if use_vpu:
        cout, cin = w.shape
        acc = w[:, 0:1] * t[0:1, :]
        for i in range(1, cin):
            acc = acc + w[:, i:i + 1] * t[i:i + 1, :]
        return acc + b
    return jnp.dot(w, t, preferred_element_type=jnp.float32) + b


def _fused_res_blocks_kernel(x_ref, s1_ref, t1_ref, w1_ref, b1_ref,
                             w9_ref, b2_ref, w3_ref, b3_ref, mask_ref,
                             o_ref, tap_ref, *, width, hw, cmid, n_blocks,
                             use_vpu_1x1):
    # One whole image per grid step: x block (1, Cin, HW), lane-dense pixels.
    x = x_ref[0].astype(jnp.float32)                     # (Cin, HW)
    w1 = w1_ref[...].astype(jnp.float32)
    b1 = b1_ref[...].astype(jnp.float32)
    w3 = w3_ref[...].astype(jnp.float32)
    b3 = b3_ref[...].astype(jnp.float32)
    for _ in range(n_blocks):                            # shared-weight blocks
        # BN1 (folded per-channel FMA) + ReLU, then conv1 (1x1, BN2 folded) + ReLU.
        t = jnp.maximum(x * s1_ref[...] + t1_ref[...], 0.0)
        h1 = jnp.maximum(_conv1x1(w1, b1, t, use_vpu_1x1), 0.0)
        # 3x3 conv (pad=1, BN3 folded): 9 masked lane rolls staged into a
        # (9*Cmid, HW) VMEM scratch, contracted with ONE wide MXU dot.
        k = 0
        for dy in (-1, 0, 1):
            for dx in (-1, 0, 1):
                s = dy * width + dx
                sh = h1 if s == 0 else pltpu.roll(h1, shift=(-s) % hw, axis=1)
                tap_ref[k * cmid:(k + 1) * cmid, :] = sh * mask_ref[k]
                k += 1
        h2 = jnp.maximum(
            jnp.dot(w9_ref[...], tap_ref[...],
                    preferred_element_type=jnp.float32) + b2_ref[...], 0.0)
        # conv3 (1x1) + residual add (numIn == numOut so conv4 branch unused).
        x = _conv1x1(w3, b3, h2, use_vpu_1x1) + x
    o_ref[0] = x.astype(o_ref.dtype)


def _maxpool2x2_kernel(x_ref, selT_ref, o_ref, *, width, hw):
    # 2x2/stride-2 max pool in flat (C, HW) layout: 3 lane rolls + max, then one
    # lane-selection matmul (HW -> HW/4).  No masks needed: the selected source
    # positions (even row/col) never wrap for shifts {1, W, W+1}.
    x = x_ref[0]
    m = jnp.maximum(
        jnp.maximum(x, pltpu.roll(x, shift=hw - 1, axis=1)),
        jnp.maximum(pltpu.roll(x, shift=hw - width, axis=1),
                    pltpu.roll(x, shift=hw - width - 1, axis=1)))
    o_ref[0] = jnp.dot(m, selT_ref[...],
                       preferred_element_type=jnp.float32).astype(o_ref.dtype)


def _upsample2x_add_kernel(low_ref, up1_ref, kT_ref, o_ref):
    # bilinear x2 (align_corners=True) as one lane-dense matmul with
    # kron(Ry, Rx)^T, fused with the `up1 + up2` add.
    up2 = jnp.dot(low_ref[0], kT_ref[...], preferred_element_type=jnp.float32)
    o_ref[0] = (up2 + up1_ref[0]).astype(o_ref.dtype)


# ---------------------------------------------------------------------------
# Constant tables (host-side, cached)
# ---------------------------------------------------------------------------
@functools.lru_cache(maxsize=None)
def _conv3x3_masks_np(height, width):
    # mask[k, 0, p] == 1 iff pixel p has a valid neighbor for tap k.
    hw = height * width
    p = np.arange(hw)
    col = p % width
    masks = np.zeros((9, 1, hw), np.float32)
    k = 0
    for dy in (-1, 0, 1):
        for dx in (-1, 0, 1):
            s = dy * width + dx
            valid = ((p + s >= 0) & (p + s < hw)
                     & (col + dx >= 0) & (col + dx < width))
            masks[k, 0, :] = valid.astype(np.float32)
            k += 1
    return masks


@functools.lru_cache(maxsize=None)
def _pool_select_T_np(height, width):
    hw = height * width
    oh, ow = height // 2, width // 2
    selT = np.zeros((hw, oh * ow), np.float32)
    for oy in range(oh):
        for ox in range(ow):
            selT[2 * oy * width + 2 * ox, oy * ow + ox] = 1.0
    return selT


@functools.lru_cache(maxsize=None)
def _interp_matrix_np(n_in, n_out):
    # 1-D linear-resize matrix, align_corners=True (bilinear is separable).
    m = np.zeros((n_out, n_in), np.float32)
    if n_in == 1:
        m[:, 0] = 1.0
        return m
    scale = (n_in - 1) / (n_out - 1)
    for i in range(n_out):
        src = i * scale
        lo = min(int(np.floor(src)), n_in - 2)
        frac = src - lo
        m[i, lo] += 1.0 - frac
        m[i, lo + 1] += frac
    return m


# ---------------------------------------------------------------------------
# Wrappers (pallas_call plumbing)
# ---------------------------------------------------------------------------
def fused_residual_blocks(x, p, height, width, n_blocks=N_MODULES):
    # Applies `n_blocks` shared-weight ResidualBlock(f, f) to x: (N, C, H*W).
    # TODO(synk): for production sizes (e.g. C=256, 64x64), tile over row bands
    # with a 1-row halo instead of holding the full H*W per grid step.
    n, cin, hw = x.shape
    cmid = p["w1"].shape[0]
    use_vpu = max(cin, cmid) <= _VPU_1X1_MAX_C
    masks = jnp.asarray(_conv3x3_masks_np(height, width))
    kernel = functools.partial(
        _fused_res_blocks_kernel, width=width, hw=hw, cmid=cmid,
        n_blocks=n_blocks, use_vpu_1x1=use_vpu)
    flops_blk = 2 * hw * (cin + cmid * cin + cmid * 9 * cmid + cin * cmid) \
        + 12 * hw * cmid
    cost = pl.CostEstimate(
        flops=n * n_blocks * flops_blk, transcendentals=0,
        bytes_accessed=4 * (2 * n * cin * hw + 9 * hw + 2 * cmid * cin
                            + 9 * cmid * cmid + 4 * cin + 2 * cmid))
    vmem_est = 4 * (2 * 2 * cin * hw      # x + out, double buffered
                    + 9 * hw              # masks
                    + 9 * cmid * hw       # tap scratch
                    + 8 * cmid * hw)      # live intermediates headroom
    return pl.pallas_call(
        kernel,
        out_shape=jax.ShapeDtypeStruct((n, cin, hw), x.dtype),
        grid=(n,),   # N >= 2 in the test -> both v7x TensorCores get work
        in_specs=[
            pl.BlockSpec((1, cin, hw), lambda i: (i, 0, 0)),
            pl.BlockSpec((cin, 1), lambda i: (0, 0)),
            pl.BlockSpec((cin, 1), lambda i: (0, 0)),
            pl.BlockSpec((cmid, cin), lambda i: (0, 0)),
            pl.BlockSpec((cmid, 1), lambda i: (0, 0)),
            pl.BlockSpec((cmid, 9 * cmid), lambda i: (0, 0)),
            pl.BlockSpec((cmid, 1), lambda i: (0, 0)),
            pl.BlockSpec((cin, cmid), lambda i: (0, 0)),
            pl.BlockSpec((cin, 1), lambda i: (0, 0)),
            pl.BlockSpec((9, 1, hw), lambda i: (0, 0, 0)),
        ],
        out_specs=pl.BlockSpec((1, cin, hw), lambda i: (i, 0, 0)),
        scratch_shapes=[pltpu.VMEM((9 * cmid, hw), jnp.float32)],
        compiler_params=pltpu.CompilerParams(
            dimension_semantics=("parallel",),
            vmem_limit_bytes=_vmem_limit_bytes(vmem_est)),
        cost_estimate=cost,
    )(x, p["bn1_scale"], p["bn1_shift"], p["w1"], p["b1"],
      p["w9"], p["b2"], p["w3"], p["b3"], masks)


def maxpool2x2(x, height, width):
    # x: (N, C, H*W) -> (N, C, (H/2)*(W/2)); lane-dense, grid over images only.
    n, c, hw = x.shape
    assert height % 2 == 0 and width % 2 == 0, "maxpool2x2 requires even H, W"
    ohw = hw // 4
    selT = jnp.asarray(_pool_select_T_np(height, width))
    kernel = functools.partial(_maxpool2x2_kernel, width=width, hw=hw)
    cost = pl.CostEstimate(
        flops=n * c * (3 * hw + 2 * hw * ohw), transcendentals=0,
        bytes_accessed=4 * (n * c * (hw + ohw) + hw * ohw))
    return pl.pallas_call(
        kernel,
        out_shape=jax.ShapeDtypeStruct((n, c, ohw), x.dtype),
        grid=(n,),
        in_specs=[
            pl.BlockSpec((1, c, hw), lambda i: (i, 0, 0)),
            pl.BlockSpec((hw, ohw), lambda i: (0, 0)),
        ],
        out_specs=pl.BlockSpec((1, c, ohw), lambda i: (i, 0, 0)),
        compiler_params=pltpu.CompilerParams(
            dimension_semantics=("parallel",),
            vmem_limit_bytes=_vmem_limit_bytes(4 * (2 * c * hw + hw * ohw))),
        cost_estimate=cost,
    )(x, selT)


def upsample2x_add(low, up1, height, width):
    # out = up1 + bilinear_x2(low), align_corners=True, all in flat (C, H*W).
    # TODO(synk): for large H*W use the separable Ry @ X @ Rx^T form instead of
    # the (hw, 4*hw) Kronecker matrix.
    n, c, hw = low.shape
    ohw = 4 * hw
    kT = jnp.asarray(np.kron(_interp_matrix_np(height, 2 * height),
                             _interp_matrix_np(width, 2 * width)).T)  # (hw, 4hw)
    cost = pl.CostEstimate(
        flops=n * c * (2 * hw * ohw + ohw), transcendentals=0,
        bytes_accessed=4 * (n * c * (hw + 2 * ohw) + hw * ohw))
    return pl.pallas_call(
        _upsample2x_add_kernel,
        out_shape=jax.ShapeDtypeStruct((n, c, ohw), low.dtype),
        grid=(n,),
        in_specs=[
            pl.BlockSpec((1, c, hw), lambda i: (i, 0, 0)),
            pl.BlockSpec((1, c, ohw), lambda i: (i, 0, 0)),
            pl.BlockSpec((hw, ohw), lambda i: (0, 0)),
        ],
        out_specs=pl.BlockSpec((1, c, ohw), lambda i: (i, 0, 0)),
        compiler_params=pltpu.CompilerParams(
            dimension_semantics=("parallel",),
            vmem_limit_bytes=_vmem_limit_bytes(
                4 * (3 * c * ohw + c * hw + hw * ohw))),
        cost_estimate=cost,
    )(low, up1, kT)


# ---------------------------------------------------------------------------
# Module forward (hourglass over flat (N, C, H*W) activations)
# ---------------------------------------------------------------------------
def _hourglass_flat(x, levels, height, width):
    p = levels[0]   # shared across the nModules applications at this level
    up1 = fused_residual_blocks(x, p, height, width, N_MODULES)
    low = maxpool2x2(x, height, width)
    h2, w2 = height // 2, width // 2
    low = fused_residual_blocks(low, p, h2, w2, N_MODULES)
    if len(levels) > 1:
        low = _hourglass_flat(low, levels[1:], h2, w2)
    else:
        low = fused_residual_blocks(low, p, h2, w2, N_MODULES)
    low = fused_residual_blocks(low, p, h2, w2, N_MODULES)
    return upsample2x_add(low, up1, h2, w2)


def hourglass_forward(x, levels):
    n, c, h, w = x.shape
    y = _hourglass_flat(x.reshape(n, c, h * w).astype(_STORE_DTYPE), levels, h, w)
    return y.reshape(n, c, h, w).astype(x.dtype)


# ---------------------------------------------------------------------------
# Parameter init (PyTorch-like shapes) + BN folding
# ---------------------------------------------------------------------------
def init_residual_block_params(key, f):
    half = f // 2
    ks = jax.random.split(key, 9)

    def conv_init(k, cout, cin, ksz):
        kw, kb = jax.random.split(k)
        bound = 1.0 / np.sqrt(cin * ksz * ksz)
        w = jax.random.uniform(kw, (cout, cin, ksz, ksz), jnp.float32, -bound, bound)
        b = jax.random.uniform(kb, (cout,), jnp.float32, -bound, bound)
        return w, b

    def bn_init(k, c):
        kg, kb, km, kv = jax.random.split(k, 4)
        return dict(
            gamma=1.0 + 0.1 * jax.random.normal(kg, (c,), jnp.float32),
            beta=0.1 * jax.random.normal(kb, (c,), jnp.float32),
            mean=0.1 * jax.random.normal(km, (c,), jnp.float32),
            var=jnp.abs(1.0 + 0.1 * jax.random.normal(kv, (c,), jnp.float32)),
        )

    w1, b1 = conv_init(ks[0], half, f, 1)
    w2, b2 = conv_init(ks[1], half, half, 3)
    w3, b3 = conv_init(ks[2], f, half, 1)
    return dict(bn1=bn_init(ks[3], f), bn2=bn_init(ks[4], half),
                bn3=bn_init(ks[5], half),
                w1=w1, b1=b1, w2=w2, b2=b2, w3=w3, b3=b3)


def fold_residual_block_params(p, eps=BN_EPS):
    # TODO(synk): PyTorch default is training-mode BN (batch statistics); this
    # implements eval-mode BN using running stats, folded into the convs.
    def bn_scale_shift(bn):
        s = bn["gamma"] / jnp.sqrt(bn["var"] + eps)
        return s, bn["beta"] - bn["mean"] * s

    s1, t1 = bn_scale_shift(p["bn1"])
    s2, t2 = bn_scale_shift(p["bn2"])
    s3, t3 = bn_scale_shift(p["bn3"])
    cin = p["w1"].shape[1]       # f
    cmid = p["w1"].shape[0]      # f // 2

    w1 = p["w1"][:, :, 0, 0] * s2[:, None]                 # fold BN2 into conv1
    b1 = s2 * p["b1"] + t2
    w2 = p["w2"] * s3[:, None, None, None]                 # fold BN3 into conv2
    b2 = s3 * p["b2"] + t3
    w2_taps = jnp.transpose(w2, (2, 3, 0, 1)).reshape(9, cmid, cmid)
    w9 = jnp.transpose(w2_taps, (1, 0, 2)).reshape(cmid, 9 * cmid)
    return dict(
        bn1_scale=s1.reshape(cin, 1), bn1_shift=t1.reshape(cin, 1),
        w1=w1, b1=b1.reshape(cmid, 1),
        w9=w9, b2=b2.reshape(cmid, 1),
        w3=p["w3"][:, :, 0, 0], b3=p["b3"].reshape(cin, 1),
    )


# ---------------------------------------------------------------------------
# Pure-JAX reference (same eval-mode BN semantics, raw parameters)
# ---------------------------------------------------------------------------
def _bn_relu_ref(x, bn, eps=BN_EPS):
    s = bn["gamma"] / jnp.sqrt(bn["var"] + eps)
    t = bn["beta"] - bn["mean"] * s
    return jax.nn.relu(x * s[None, :, None, None] + t[None, :, None, None])


def _conv2d_ref(x, w, b, padding):
    y = jax.lax.conv_general_dilated(
        x, w, window_strides=(1, 1), padding=[(padding, padding)] * 2,
        dimension_numbers=("NCHW", "OIHW", "NCHW"),
        precision=jax.lax.Precision.HIGHEST)
    return y + b[None, :, None, None]


def residual_block_ref(x, p):
    h = _conv2d_ref(_bn_relu_ref(x, p["bn1"]), p["w1"], p["b1"], 0)
    h = _conv2d_ref(_bn_relu_ref(h, p["bn2"]), p["w2"], p["b2"], 1)
    out = _conv2d_ref(_bn_relu_ref(h, p["bn3"]), p["w3"], p["b3"], 0)
    return out + x


def maxpool2x2_ref(x):
    n, c, h, w = x.shape
    return jnp.max(x.reshape(n, c, h // 2, 2, w // 2, 2), axis=(3, 5))


def upsample2x_ref(x):
    n, c, h, w = x.shape
    ry = jnp.asarray(_interp_matrix_np(h, 2 * h))
    rx = jnp.asarray(_interp_matrix_np(w, 2 * w))
    return jnp.einsum("ph,nchw,qw->ncpq", ry, x, rx,
                      precision=jax.lax.Precision.HIGHEST)


def hourglass_ref(x, levels):
    p = levels[0]
    up1 = x
    for _ in range(N_MODULES):
        up1 = residual_block_ref(up1, p)
    low1 = maxpool2x2_ref(x)
    for _ in range(N_MODULES):
        low1 = residual_block_ref(low1, p)
    if len(levels) > 1:
        low2 = hourglass_ref(low1, levels[1:])
    else:
        low2 = low1
        for _ in range(N_MODULES):
            low2 = residual_block_ref(low2, p)
    low3 = low2
    for _ in range(N_MODULES):
        low3 = residual_block_ref(low3, p)
    return up1 + upsample2x_ref(low3)


# ---------------------------------------------------------------------------
if __name__ == "__main__":
    n_levels = 2   # hourglass(n=2, f=4)
    f = 4
    N, H, W = 2, 16, 16

    key = jax.random.PRNGKey(0)
    keys = jax.random.split(key, 1 + n_levels)
    x = jax.random.normal(keys[0], (N, f, H, W), dtype=jnp.float32)

    raw_levels = [init_residual_block_params(k, f) for k in keys[1:]]
    folded_levels = [fold_residual_block_params(p) for p in raw_levels]

    out = jax.block_until_ready(jax.jit(hourglass_forward)(x, folded_levels))
    assert out.shape == (N, f, H, W)

    ref = jax.block_until_ready(jax.jit(hourglass_ref)(x, raw_levels))
    err = float(jnp.max(jnp.abs(out - ref)))
    # f32 end-to-end; tolerance leaves headroom for MXU matmul pass precision.
    assert err < 5e-2, f"max abs error vs reference: {err}"

    print("KERNEL_OK")
</pallas_src>

<mosaic_0001>
module attributes {stable_mosaic.version = 11 : i64} {
  func.func @_maxpool2x2_kernel(%arg0: i32, %arg1: memref<1x4x256xf32, #tpu.memory_space<vmem>>, %arg2: memref<256x64xf32, #tpu.memory_space<vmem>>, %arg3: memref<1x4x64xf32, #tpu.memory_space<vmem>>) attributes {dimension_semantics = [#tpu.dimension_semantics<parallel>], iteration_bounds = array<i64: 2>, scalar_prefetch = 0 : i64, scratch_operands = 0 : i64, tpu.core_type = #tpu.core_type<tc>, window_params = [{transform_indices = @transform_0, window_bounds = array<i64: 1, 4, 256>}, {pipeline_mode = #tpu.pipeline_mode<synchronous>, transform_indices = @transform_1, window_bounds = array<i64: 256, 64>}, {transform_indices = @transform_2, window_bounds = array<i64: 1, 4, 64>}]} {
    %c0 = arith.constant 0 : index
    %c0_0 = arith.constant 0 : index
    %c0_1 = arith.constant 0 : index
    %0 = vector.load %arg1[%c0, %c0_0, %c0_1] : memref<1x4x256xf32, #tpu.memory_space<vmem>>, vector<1x4x256xf32>
    %1 = vector.shape_cast %0 : vector<1x4x256xf32> to vector<4x256xf32>
    %c255_i32 = arith.constant 255 : i32
    %2 = tpu.dynamic_rotate %1 by %c255_i32 dim 1 : vector<4x256xf32>, i32 -> vector<4x256xf32>
    %3 = arith.maximumf %1, %2 : vector<4x256xf32>
    %c240_i32 = arith.constant 240 : i32
    %4 = tpu.dynamic_rotate %1 by %c240_i32 dim 1 : vector<4x256xf32>, i32 -> vector<4x256xf32>
    %c239_i32 = arith.constant 239 : i32
    %5 = tpu.dynamic_rotate %1 by %c239_i32 dim 1 : vector<4x256xf32>, i32 -> vector<4x256xf32>
    %6 = arith.maximumf %4, %5 : vector<4x256xf32>
    %7 = arith.maximumf %3, %6 : vector<4x256xf32>
    %c0_2 = arith.constant 0 : index
    %c0_3 = arith.constant 0 : index
    %8 = vector.load %arg2[%c0_2, %c0_3] : memref<256x64xf32, #tpu.memory_space<vmem>>, vector<256x64xf32>
    %cst = arith.constant dense<0.000000e+00> : vector<4x64xf32>
    %9 = tpu.matmul %7, %8, %cst {dimension_numbers = #tpu.dot_dimension_numbers<[1], [0], [0], [1], [0, 0, 1, 1], [], []>} : vector<4x256xf32>, vector<256x64xf32>, vector<4x64xf32> -> vector<4x64xf32>
    %c0_4 = arith.constant 0 : index
    %c0_5 = arith.constant 0 : index
    %c0_6 = arith.constant 0 : index
    %10 = vector.load %arg3[%c0_4, %c0_5, %c0_6] : memref<1x4x64xf32, #tpu.memory_space<vmem>>, vector<1x4x64xf32>
    %11 = vector.shape_cast %10 : vector<1x4x64xf32> to vector<4x64xf32>
    %12 = vector.shape_cast %9 : vector<4x64xf32> to vector<1x4x64xf32>
    tpu.vector_store %arg3[%c0_4, %c0_5, %c0_6], %12 {strides = array<i32>} : memref<1x4x64xf32, #tpu.memory_space<vmem>>, vector<1x4x64xf32>,
    return
  }
  func.func @transform_0(%arg0: i32) -> (i32, i32, i32) {
    %c0_i32 = arith.constant 0 : i32
    %c0_i32_0 = arith.constant 0 : i32
    %c0_i32_1 = arith.constant 0 : i32
    return %arg0, %c0_i32, %c0_i32_0 : i32, i32, i32
  }
  func.func @transform_1(%arg0: i32) -> (i32, i32) {
    %c0_i32 = arith.constant 0 : i32
    %c0_i32_0 = arith.constant 0 : i32
    %c0_i32_1 = arith.constant 0 : i32
    return %c0_i32, %c0_i32_0 : i32, i32
  }
  func.func @transform_2(%arg0: i32) -> (i32, i32, i32) {
    %c0_i32 = arith.constant 0 : i32
    %c0_i32_0 = arith.constant 0 : i32
    %c0_i32_1 = arith.constant 0 : i32
    return %arg0, %c0_i32, %c0_i32_0 : i32, i32, i32
  }
}

module attributes {stable_mosaic.version = 11 : i64} {
  func.func @_fused_res_blocks_kernel(%arg0: i32, %arg1: memref<1x4x256xf32, #tpu.memory_space<vmem>>, %arg2: memref<4x1xf32, #tpu.memory_space<vmem>>, %arg3: memref<4x1xf32, #tpu.memory_space<vmem>>, %arg4: memref<2x4xf32, #tpu.memory_space<vmem>>, %arg5: memref<2x1xf32, #tpu.memory_space<vmem>>, %arg6: memref<2x18xf32, #tpu.memory_space<vmem>>, %arg7: memref<2x1xf32, #tpu.memory_space<vmem>>, %arg8: memref<4x2xf32, #tpu.memory_space<vmem>>, %arg9: memref<4x1xf32, #tpu.memory_space<vmem>>, %arg10: memref<9x1x256xf32, #tpu.memory_space<vmem>>, %arg11: memref<1x4x256xf32, #tpu.memory_space<vmem>>, %arg12: memref<18x256xf32, #tpu.memory_space<vmem>>) attributes {dimension_semantics = [#tpu.dimension_semantics<parallel>], iteration_bounds = array<i64: 2>, scalar_prefetch = 0 : i64, scratch_operands = 1 : i64, tpu.core_type = #tpu.core_type<tc>, window_params = [{transform_indices = @transform_0, window_bounds = array<i64: 1, 4, 256>}, {pipeline_mode = #tpu.pipeline_mode<synchronous>, transform_indices = @transform_1, window_bounds = array<i64: 4, 1>}, {pipeline_mode = #tpu.pipeline_mode<synchronous>, transform_indices = @transform_2, window_bounds = array<i64: 4, 1>}, {pipeline_mode = #tpu.pipeline_mode<synchronous>, transform_indices = @transform_3, window_bounds = array<i64: 2, 4>}, {pipeline_mode = #tpu.pipeline_mode<synchronous>, transform_indices = @transform_4, window_bounds = array<i64: 2, 1>}, {pipeline_mode = #tpu.pipeline_mode<synchronous>, transform_indices = @transform_5, window_bounds = array<i64: 2, 18>}, {pipeline_mode = #tpu.pipeline_mode<synchronous>, transform_indices = @transform_6, window_bounds = array<i64: 2, 1>}, {pipeline_mode = #tpu.pipeline_mode<synchronous>, transform_indices = @transform_7, window_bounds = array<i64: 4, 2>}, {pipeline_mode = #tpu.pipeline_mode<synchronous>, transform_indices = @transform_8, window_bounds = array<i64: 4, 1>}, {pipeline_mode = #tpu.pipeline_mode<synchronous>, transform_indices = @transform_9, window_bounds = array<i64: 9, 1, 256>}, {transform_indices = @transform_10, window_bounds = array<i64: 1, 4, 256>}]} {
    %c0 = arith.constant 0 : index
    %c0_0 = arith.constant 0 : index
    %c0_1 = arith.constant 0 : index
    %0 = vector.load %arg1[%c0, %c0_0, %c0_1] : memref<1x4x256xf32, #tpu.memory_space<vmem>>, vector<1x4x256xf32>
    %1 = vector.shape_cast %0 : vector<1x4x256xf32> to vector<4x256xf32>
    %c0_2 = arith.constant 0 : index
    %c0_3 = arith.constant 0 : index
    %2 = vector.load %arg4[%c0_2, %c0_3] : memref<2x4xf32, #tpu.memory_space<vmem>>, vector<2x4xf32>
    %c0_4 = arith.constant 0 : index
    %c0_5 = arith.constant 0 : index
    %3 = vector.load %arg5[%c0_4, %c0_5] : memref<2x1xf32, #tpu.memory_space<vmem>>, vector<2x1xf32>
    %c0_6 = arith.constant 0 : index
    %c0_7 = arith.constant 0 : index
    %4 = vector.load %arg8[%c0_6, %c0_7] : memref<4x2xf32, #tpu.memory_space<vmem>>, vector<4x2xf32>
    %c0_8 = arith.constant 0 : index
    %c0_9 = arith.constant 0 : index
    %5 = vector.load %arg9[%c0_8, %c0_9] : memref<4x1xf32, #tpu.memory_space<vmem>>, vector<4x1xf32>
    %c0_10 = arith.constant 0 : index
    %c0_11 = arith.constant 0 : index
    %6 = vector.load %arg2[%c0_10, %c0_11] : memref<4x1xf32, #tpu.memory_space<vmem>>, vector<4x1xf32>
    %7 = vector.broadcast %6 : vector<4x1xf32> to vector<4x256xf32>
    %8 = arith.mulf %1, %7 : vector<4x256xf32>
    %c0_12 = arith.constant 0 : index
    %c0_13 = arith.constant 0 : index
    %9 = vector.load %arg3[%c0_12, %c0_13] : memref<4x1xf32, #tpu.memory_space<vmem>>, vector<4x1xf32>
    %10 = vector.broadcast %9 : vector<4x1xf32> to vector<4x256xf32>
    %11 = arith.addf %8, %10 : vector<4x256xf32>
    %cst = arith.constant 0.000000e+00 : f32
    %12 = vector.broadcast %cst : f32 to vector<4x256xf32>
    %13 = arith.maximumf %11, %12 : vector<4x256xf32>
    %14 = vector.extract_strided_slice %2 {offsets = [0, 0], sizes = [2, 1], strides = [1, 1]} : vector<2x4xf32> to vector<2x1xf32>
    %15 = vector.extract_strided_slice %13 {offsets = [0, 0], sizes = [1, 256], strides = [1, 1]} : vector<4x256xf32> to vector<1x256xf32>
    %16 = vector.broadcast %14 : vector<2x1xf32> to vector<2x256xf32>
    %17 = vector.broadcast %15 : vector<1x256xf32> to vector<2x256xf32>
    %18 = arith.mulf %16, %17 : vector<2x256xf32>
    %19 = vector.extract_strided_slice %2 {offsets = [0, 1], sizes = [2, 1], strides = [1, 1]} : vector<2x4xf32> to vector<2x1xf32>
    %20 = vector.extract_strided_slice %13 {offsets = [1, 0], sizes = [1, 256], strides = [1, 1]} : vector<4x256xf32> to vector<1x256xf32>
    %21 = vector.broadcast %19 : vector<2x1xf32> to vector<2x256xf32>
    %22 = vector.broadcast %20 : vector<1x256xf32> to vector<2x256xf32>
    %23 = arith.mulf %21, %22 : vector<2x256xf32>
    %24 = arith.addf %18, %23 : vector<2x256xf32>
    %25 = vector.extract_strided_slice %2 {offsets = [0, 2], sizes = [2, 1], strides = [1, 1]} : vector<2x4xf32> to vector<2x1xf32>
    %26 = vector.extract_strided_slice %13 {offsets = [2, 0], sizes = [1, 256], strides = [1, 1]} : vector<4x256xf32> to vector<1x256xf32>
    %27 = vector.broadcast %25 : vector<2x1xf32> to vector<2x256xf32>
    %28 = vector.broadcast %26 : vector<1x256xf32> to vector<2x256xf32>
    %29 = arith.mulf %27, %28 : vector<2x256xf32>
    %30 = arith.addf %24, %29 : vector<2x256xf32>
    %31 = vector.extract_strided_slice %2 {offsets = [0, 3], sizes = [2, 1], strides = [1, 1]} : vector<2x4xf32> to vector<2x1xf32>
    %32 = vector.extract_strided_slice %13 {offsets = [3, 0], sizes = [1, 256], strides = [1, 1]} : vector<4x256xf32> to vector<1x256xf32>
    %33 = vector.broadcast %31 : vector<2x1xf32> to vector<2x256xf32>
    %34 = vector.broadcast %32 : vector<1x256xf32> to vector<2x256xf32>
    %35 = arith.mulf %33, %34 : vector<2x256xf32>
    %36 = arith.addf %30, %35 : vector<2x256xf32>
    %37 = vector.broadcast %3 : vector<2x1xf32> to vector<2x256xf32>
    %38 = arith.addf %36, %37 : vector<2x256xf32>
    %cst_14 = arith.constant 0.000000e+00 : f32
    %39 = vector.broadcast %cst_14 : f32 to vector<2x256xf32>
    %40 = arith.maximumf %38, %39 : vector<2x256xf32>
    %c17_i32 = arith.constant 17 : i32
    %41 = tpu.dynamic_rotate %40 by %c17_i32 dim 1 : vector<2x256xf32>, i32 -> vector<2x256xf32>
    %c0_15 = arith.constant 0 : index
    %c0_16 = arith.constant 0 : index
    %c0_17 = arith.constant 0 : index
    %42 = vector.load %arg10[%c0_15, %c0_16, %c0_17] : memref<9x1x256xf32, #tpu.memory_space<vmem>>, vector<1x1x256xf32>
    %43 = vector.shape_cast %42 : vector<1x1x256xf32> to vector<1x256xf32>
    %44 = vector.broadcast %43 : vector<1x256xf32> to vector<2x256xf32>
    %45 = arith.mulf %41, %44 : vector<2x256xf32>
    %c0_18 = arith.constant 0 : index
    %c0_19 = arith.constant 0 : index
    %46 = vector.load %arg12[%c0_18, %c0_19] : memref<18x256xf32, #tpu.memory_space<vmem>>, vector<2x256xf32>
    tpu.vector_store %arg12[%c0_18, %c0_19], %45 {strides = array<i32>} : memref<18x256xf32, #tpu.memory_space<vmem>>, vector<2x256xf32>,
    %c16_i32 = arith.constant 16 : i32
    %47 = tpu.dynamic_rotate %40 by %c16_i32 dim 1 : vector<2x256xf32>, i32 -> vector<2x256xf32>
    %c1 = arith.constant 1 : index
    %c0_20 = arith.constant 0 : index
    %c0_21 = arith.constant 0 : index
    %48 = vector.load %arg10[%c1, %c0_20, %c0_21] : memref<9x1x256xf32, #tpu.memory_space<vmem>>, vector<1x1x256xf32>
    %49 = vector.shape_cast %48 : vector<1x1x256xf32> to vector<1x256xf32>
    %50 = vector.broadcast %49 : vector<1x256xf32> to vector<2x256xf32>
    %51 = arith.mulf %47, %50 : vector<2x256xf32>
    %c2 = arith.constant 2 : index
    %c0_22 = arith.constant 0 : index
    %52 = vector.load %arg12[%c2, %c0_22] : memref<18x256xf32, #tpu.memory_space<vmem>>, vector<2x256xf32>
    tpu.vector_store %arg12[%c2, %c0_22], %51 {strides = array<i32>} : memref<18x256xf32, #tpu.memory_space<vmem>>, vector<2x256xf32>,
    %c15_i32 = arith.constant 15 : i32
    %53 = tpu.dynamic_rotate %40 by %c15_i32 dim 1 : vector<2x256xf32>, i32 -> vector<2x256xf32>
    %c2_23 = arith.constant 2 : index
    %c0_24 = arith.constant 0 : index
    %c0_25 = arith.constant 0 : index
    %54 = vector.load %arg10[%c2_23, %c0_24, %c0_25] : memref<9x1x256xf32, #tpu.memory_space<vmem>>, vector<1x1x256xf32>
    %55 = vector.shape_cast %54 : vector<1x1x256xf32> to vector<1x256xf32>
    %56 = vector.broadcast %55 : vector<1x256xf32> to vector<2x256xf32>
    %57 = arith.mulf %53, %56 : vector<2x256xf32>
    %c4 = arith.constant 4 : index
    %c0_26 = arith.constant 0 : index
    %58 = vector.load %arg12[%c4, %c0_26] : memref<18x256xf32, #tpu.memory_space<vmem>>, vector<2x256xf32>
    tpu.vector_store %arg12[%c4, %c0_26], %57 {strides = array<i32>} : memref<18x256xf32, #tpu.memory_space<vmem>>, vector<2x256xf32>,
    %c1_i32 = arith.constant 1 : i32
    %59 = tpu.dynamic_rotate %40 by %c1_i32 dim 1 : vector<2x256xf32>, i32 -> vector<2x256xf32>
    %c3 = arith.constant 3 : index
    %c0_27 = arith.constant 0 : index
    %c0_28 = arith.constant 0 : index
    %60 = vector.load %arg10[%c3, %c0_27, %c0_28] : memref<9x1x256xf32, #tpu.memory_space<vmem>>, vector<1x1x256xf32>
    %61 = vector.shape_cast %60 : vector<1x1x256xf32> to vector<1x256xf32>
    %62 = vector.broadcast %61 : vector<1x256xf32> to vector<2x256xf32>
    %63 = arith.mulf %59, %62 : vector<2x256xf32>
    %c6 = arith.constant 6 : index
    %c0_29 = arith.constant 0 : index
    %64 = vector.load %arg12[%c6, %c0_29] : memref<18x256xf32, #tpu.memory_space<vmem>>, vector<2x256xf32>
    tpu.vector_store %arg12[%c6, %c0_29], %63 {strides = array<i32>} : memref<18x256xf32, #tpu.memory_space<vmem>>, vector<2x256xf32>,
    %c4_30 = arith.constant 4 : index
    %c0_31 = arith.constant 0 : index
    %c0_32 = arith.constant 0 : index
    %65 = vector.load %arg10[%c4_30, %c0_31, %c0_32] : memref<9x1x256xf32, #tpu.memory_space<vmem>>, vector<1x1x256xf32>
    %66 = vector.shape_cast %65 : vector<1x1x256xf32> to vector<1x256xf32>
    %67 = vector.broadcast %66 : vector<1x256xf32> to vector<2x256xf32>
    %68 = arith.mulf %40, %67 : vector<2x256xf32>
    %c8 = arith.constant 8 : index
    %c0_33 = arith.constant 0 : index
    %69 = vector.load %arg12[%c8, %c0_33] : memref<18x256xf32, #tpu.memory_space<vmem>>, vector<2x256xf32>
    tpu.vector_store %arg12[%c8, %c0_33], %68 {strides = array<i32>} : memref<18x256xf32, #tpu.memory_space<vmem>>, vector<2x256xf32>,
    %c255_i32 = arith.constant 255 : i32
    %70 = tpu.dynamic_rotate %40 by %c255_i32 dim 1 : vector<2x256xf32>, i32 -> vector<2x256xf32>
    %c5 = arith.constant 5 : index
    %c0_34 = arith.constant 0 : index
    %c0_35 = arith.constant 0 : index
    %71 = vector.load %arg10[%c5, %c0_34, %c0_35] : memref<9x1x256xf32, #tpu.memory_space<vmem>>, vector<1x1x256xf32>
    %72 = vector.shape_cast %71 : vector<1x1x256xf32> to vector<1x256xf32>
    %73 = vector.broadcast %72 : vector<1x256xf32> to vector<2x256xf32>
    %74 = arith.mulf %70, %73 : vector<2x256xf32>
    %c10 = arith.constant 10 : index
    %c0_36 = arith.constant 0 : index
    %75 = vector.load %arg12[%c10, %c0_36] : memref<18x256xf32, #tpu.memory_space<vmem>>, vector<2x256xf32>
    tpu.vector_store %arg12[%c10, %c0_36], %74 {strides = array<i32>} : memref<18x256xf32, #tpu.memory_space<vmem>>, vector<2x256xf32>,
    %c241_i32 = arith.constant 241 : i32
    %76 = tpu.dynamic_rotate %40 by %c241_i32 dim 1 : vector<2x256xf32>, i32 -> vector<2x256xf32>
    %c6_37 = arith.constant 6 : index
    %c0_38 = arith.constant 0 : index
    %c0_39 = arith.constant 0 : index
    %77 = vector.load %arg10[%c6_37, %c0_38, %c0_39] : memref<9x1x256xf32, #tpu.memory_space<vmem>>, vector<1x1x256xf32>
    %78 = vector.shape_cast %77 : vector<1x1x256xf32> to vector<1x256xf32>
    %79 = vector.broadcast %78 : vector<1x256xf32> to vector<2x256xf32>
    %80 = arith.mulf %76, %79 : vector<2x256xf32>
    %c12 = arith.constant 12 : index
    %c0_40 = arith.constant 0 : index
    %81 = vector.load %arg12[%c12, %c0_40] : memref<18x256xf32, #tpu.memory_space<vmem>>, vector<2x256xf32>
    tpu.vector_store %arg12[%c12, %c0_40], %80 {strides = array<i32>} : memref<18x256xf32, #tpu.memory_space<vmem>>, vector<2x256xf32>,
    %c240_i32 = arith.constant 240 : i32
    %82 = tpu.dynamic_rotate %40 by %c240_i32 dim 1 : vector<2x256xf32>, i32 -> vector<2x256xf32>
    %c7 = arith.constant 7 : index
    %c0_41 = arith.constant 0 : index
    %c0_42 = arith.constant 0 : index
    %83 = vector.load %arg10[%c7, %c0_41, %c0_42] : memref<9x1x256xf32, #tpu.memory_space<vmem>>, vector<1x1x256xf32>
    %84 = vector.shape_cast %83 : vector<1x1x256xf32> to vector<1x256xf32>
    %85 = vector.broadcast %84 : vector<1x256xf32> to vector<2x256xf32>
    %86 = arith.mulf %82, %85 : vector<2x256xf32>
    %c14 = arith.constant 14 : index
    %c0_43 = arith.constant 0 : index
    %87 = vector.load %arg12[%c14, %c0_43] : memref<18x256xf32, #tpu.memory_space<vmem>>, vector<2x256xf32>
    tpu.vector_store %arg12[%c14, %c0_43], %86 {strides = array<i32>} : memref<18x256xf32, #tpu.memory_space<vmem>>, vector<2x256xf32>,
    %c239_i32 = arith.constant 239 : i32
    %88 = tpu.dynamic_rotate %40 by %c239_i32 dim 1 : vector<2x256xf32>, i32 -> vector<2x256xf32>
    %c8_44 = arith.constant 8 : index
    %c0_45 = arith.constant 0 : index
    %c0_46 = arith.constant 0 : index
    %89 = vector.load %arg10[%c8_44, %c0_45, %c0_46] : memref<9x1x256xf32, #tpu.memory_space<vmem>>, vector<1x1x256xf32>
    %90 = vector.shape_cast %89 : vector<1x1x256xf32> to vector<1x256xf32>
    %91 = vector.broadcast %90 : vector<1x256xf32> to vector<2x256xf32>
    %92 = arith.mulf %88, %91 : vector<2x256xf32>
    %c16 = arith.constant 16 : index
    %c0_47 = arith.constant 0 : index
    %93 = vector.load %arg12[%c16, %c0_47] : memref<18x256xf32, #tpu.memory_space<vmem>>, vector<2x256xf32>
    tpu.vector_store %arg12[%c16, %c0_47], %92 {strides = array<i32>} : memref<18x256xf32, #tpu.memory_space<vmem>>, vector<2x256xf32>,
    %c0_48 = arith.constant 0 : index
    %c0_49 = arith.constant 0 : index
    %94 = vector.load %arg6[%c0_48, %c0_49] : memref<2x18xf32, #tpu.memory_space<vmem>>, vector<2x18xf32>
    %c0_50 = arith.constant 0 : index
    %c0_51 = arith.constant 0 : index
    %95 = vector.load %arg12[%c0_50, %c0_51] : memref<18x256xf32, #tpu.memory_space<vmem>>, vector<18x256xf32>
    %cst_52 = arith.constant dense<0.000000e+00> : vector<2x256xf32>
    %96 = tpu.matmul %94, %95, %cst_52 {dimension_numbers = #tpu.dot_dimension_numbers<[1], [0], [0], [1], [0, 0, 1, 1], [], []>} : vector<2x18xf32>, vector<18x256xf32>, vector<2x256xf32> -> vector<2x256xf32>
    %c0_53 = arith.constant 0 : index
    %c0_54 = arith.constant 0 : index
    %97 = vector.load %arg7[%c0_53, %c0_54] : memref<2x1xf32, #tpu.memory_space<vmem>>, vector<2x1xf32>
    %98 = vector.broadcast %97 : vector<2x1xf32> to vector<2x256xf32>
    %99 = arith.addf %96, %98 : vector<2x256xf32>
    %cst_55 = arith.constant 0.000000e+00 : f32
    %100 = vector.broadcast %cst_55 : f32 to vector<2x256xf32>
    %101 = arith.maximumf %99, %100 : vector<2x256xf32>
    %102 = vector.extract_strided_slice %4 {offsets = [0, 0], sizes = [4, 1], strides = [1, 1]} : vector<4x2xf32> to vector<4x1xf32>
    %103 = vector.extract_strided_slice %101 {offsets = [0, 0], sizes = [1, 256], strides = [1, 1]} : vector<2x256xf32> to vector<1x256xf32>
    %104 = vector.broadcast %102 : vector<4x1xf32> to vector<4x256xf32>
    %105 = vector.broadcast %103 : vector<1x256xf32> to vector<4x256xf32>
    %106 = arith.mulf %104, %105 : vector<4x256xf32>
    %107 = vector.extract_strided_slice %4 {offsets = [0, 1], sizes = [4, 1], strides = [1, 1]} : vector<4x2xf32> to vector<4x1xf32>
    %108 = vector.extract_strided_slice %101 {offsets = [1, 0], sizes = [1, 256], strides = [1, 1]} : vector<2x256xf32> to vector<1x256xf32>
    %109 = vector.broadcast %107 : vector<4x1xf32> to vector<4x256xf32>
    %110 = vector.broadcast %108 : vector<1x256xf32> to vector<4x256xf32>
    %111 = arith.mulf %109, %110 : vector<4x256xf32>
    %112 = arith.addf %106, %111 : vector<4x256xf32>
    %113 = vector.broadcast %5 : vector<4x1xf32> to vector<4x256xf32>
    %114 = arith.addf %112, %113 : vector<4x256xf32>
    %115 = arith.addf %114, %1 : vector<4x256xf32>
    %c0_56 = arith.constant 0 : index
    %c0_57 = arith.constant 0 : index
    %116 = vector.load %arg2[%c0_56, %c0_57] : memref<4x1xf32, #tpu.memory_space<vmem>>, vector<4x1xf32>
    %117 = vector.broadcast %116 : vector<4x1xf32> to vector<4x256xf32>
    %118 = arith.mulf %115, %117 : vector<4x256xf32>
    %c0_58 = arith.constant 0 : index
    %c0_59 = arith.constant 0 : index
    %119 = vector.load %arg3[%c0_58, %c0_59] : memref<4x1xf32, #tpu.memory_space<vmem>>, vector<4x1xf32>
    %120 = vector.broadcast %119 : vector<4x1xf32> to vector<4x256xf32>
    %121 = arith.addf %118, %120 : vector<4x256xf32>
    %cst_60 = arith.constant 0.000000e+00 : f32
    %122 = vector.broadcast %cst_60 : f32 to vector<4x256xf32>
    %123 = arith.maximumf %121, %122 : vector<4x256xf32>
    %124 = vector.extract_strided_slice %2 {offsets = [0, 0], sizes = [2, 1], strides = [1, 1]} : vector<2x4xf32> to vector<2x1xf32>
    %125 = vector.extract_strided_slice %123 {offsets = [0, 0], sizes = [1, 256], strides = [1, 1]} : vector<4x256xf32> to vector<1x256xf32>
    %126 = vector.broadcast %124 : vector<2x1xf32> to vector<2x256xf32>
    %127 = vector.broadcast %125 : vector<1x256xf32> to vector<2x256xf32>
    %128 = arith.mulf %126, %127 : vector<2x256xf32>
    %129 = vector.extract_strided_slice %2 {offsets = [0, 1], sizes = [2, 1], strides = [1, 1]} : vector<2x4xf32> to vector<2x1xf32>
    %130 = vector.extract_strided_slice %123 {offsets = [1, 0], sizes = [1, 256], strides = [1, 1]} : vector<4x256xf32> to vector<1x256xf32>
    %131 = vector.broadcast %129 : vector<2x1xf32> to vector<2x256xf32>
    %132 = vector.broadcast %130 : vector<1x256xf32> to vector<2x256xf32>
    %133 = arith.mulf %131, %132 : vector<2x256xf32>
    %134 = arith.addf %128, %133 : vector<2x256xf32>
    %135 = vector.extract_strided_slice %2 {offsets = [0, 2], sizes = [2, 1], strides = [1, 1]} : vector<2x4xf32> to vector<2x1xf32>
    %136 = vector.extract_strided_slice %123 {offsets = [2, 0], sizes = [1, 256], strides = [1, 1]} : vector<4x256xf32> to vector<1x256xf32>
    %137 = vector.broadcast %135 : vector<2x1xf32> to vector<2x256xf32>
    %138 = vector.broadcast %136 : vector<1x256xf32> to vector<2x256xf32>
    %139 = arith.mulf %137, %138 : vector<2x256xf32>
    %140 = arith.addf %134, %139 : vector<2x256xf32>
    %141 = vector.extract_strided_slice %2 {offsets = [0, 3], sizes = [2, 1], strides = [1, 1]} : vector<2x4xf32> to vector<2x1xf32>
    %142 = vector.extract_strided_slice %123 {offsets = [3, 0], sizes = [1, 256], strides = [1, 1]} : vector<4x256xf32> to vector<1x256xf32>
    %143 = vector.broadcast %141 : vector<2x1xf32> to vector<2x256xf32>
    %144 = vector.broadcast %142 : vector<1x256xf32> to vector<2x256xf32>
    %145 = arith.mulf %143, %144 : vector<2x256xf32>
    %146 = arith.addf %140, %145 : vector<2x256xf32>
    %147 = vector.broadcast %3 : vector<2x1xf32> to vector<2x256xf32>
    %148 = arith.addf %146, %147 : vector<2x256xf32>
    %cst_61 = arith.constant 0.000000e+00 : f32
    %149 = vector.broadcast %cst_61 : f32 to vector<2x256xf32>
    %150 = arith.maximumf %148, %149 : vector<2x256xf32>
    %c17_i32_62 = arith.constant 17 : i32
    %151 = tpu.dynamic_rotate %150 by %c17_i32_62 dim 1 : vector<2x256xf32>, i32 -> vector<2x256xf32>
    %c0_63 = arith.constant 0 : index
    %c0_64 = arith.constant 0 : index
    %c0_65 = arith.constant 0 : index
    %152 = vector.load %arg10[%c0_63, %c0_64, %c0_65] : memref<9x1x256xf32, #tpu.memory_space<vmem>>, vector<1x1x256xf32>
    %153 = vector.shape_cast %152 : vector<1x1x256xf32> to vector<1x256xf32>
    %154 = vector.broadcast %153 : vector<1x256xf32> to vector<2x256xf32>
    %155 = arith.mulf %151, %154 : vector<2x256xf32>
    %c0_66 = arith.constant 0 : index
    %c0_67 = arith.constant 0 : index
    %156 = vector.load %arg12[%c0_66, %c0_67] : memref<18x256xf32, #tpu.memory_space<vmem>>, vector<2x256xf32>
    tpu.vector_store %arg12[%c0_66, %c0_67], %155 {strides = array<i32>} : memref<18x256xf32, #tpu.memory_space<vmem>>, vector<2x256xf32>,
    %c16_i32_68 = arith.constant 16 : i32
    %157 = tpu.dynamic_rotate %150 by %c16_i32_68 dim 1 : vector<2x256xf32>, i32 -> vector<2x256xf32>
    %c1_69 = arith.constant 1 : index
    %c0_70 = arith.constant 0 : index
    %c0_71 = arith.constant 0 : index
    %158 = vector.load %arg10[%c1_69, %c0_70, %c0_71] : memref<9x1x256xf32, #tpu.memory_space<vmem>>, vector<1x1x256xf32>
    %159 = vector.shape_cast %158 : vector<1x1x256xf32> to vector<1x256xf32>
    %160 = vector.broadcast %159 : vector<1x256xf32> to vector<2x256xf32>
    %161 = arith.mulf %157, %160 : vector<2x256xf32>
    %c2_72 = arith.constant 2 : index
    %c0_73 = arith.constant 0 : index
    %162 = vector.load %arg12[%c2_72, %c0_73] : memref<18x256xf32, #tpu.memory_space<vmem>>, vector<2x256xf32>
    tpu.vector_store %arg12[%c2_72, %c0_73], %161 {strides = array<i32>} : memref<18x256xf32, #tpu.memory_space<vmem>>, vector<2x256xf32>,
    %c15_i32_74 = arith.constant 15 : i32
    %163 = tpu.dynamic_rotate %150 by %c15_i32_74 dim 1 : vector<2x256xf32>, i32 -> vector<2x256xf32>
    %c2_75 = arith.constant 2 : index
    %c0_76 = arith.constant 0 : index
    %c0_77 = arith.constant 0 : index
    %164 = vector.load %arg10[%c2_75, %c0_76, %c0_77] : memref<9x1x256xf32, #tpu.memory_space<vmem>>, vector<1x1x256xf32>
    %165 = vector.shape_cast %164 : vector<1x1x256xf32> to vector<1x256xf32>
    %166 = vector.broadcast %165 : vector<1x256xf32> to vector<2x256xf32>
    %167 = arith.mulf %163, %166 : vector<2x256xf32>
    %c4_78 = arith.constant 4 : index
    %c0_79 = arith.constant 0 : index
    %168 = vector.load %arg12[%c4_78, %c0_79] : memref<18x256xf32, #tpu.memory_space<vmem>>, vector<2x256xf32>
    tpu.vector_store %arg12[%c4_78, %c0_79], %167 {strides = array<i32>} : memref<18x256xf32, #tpu.memory_space<vmem>>, vector<2x256xf32>,
    %c1_i32_80 = arith.constant 1 : i32
    %169 = tpu.dynamic_rotate %150 by %c1_i32_80 dim 1 : vector<2x256xf32>, i32 -> vector<2x256xf32>
    %c3_81 = arith.constant 3 : index
    %c0_82 = arith.constant 0 : index
    %c0_83 = arith.constant 0 : index
    %170 = vector.load %arg10[%c3_81, %c0_82, %c0_83] : memref<9x1x256xf32, #tpu.memory_space<vmem>>, vector<1x1x256xf32>
    %171 = vector.shape_cast %170 : vector<1x1x256xf32> to vector<1x256xf32>
    %172 = vector.broadcast %171 : vector<1x256xf32> to vector<2x256xf32>
    %173 = arith.mulf %169, %172 : vector<2x256xf32>
    %c6_84 = arith.constant 6 : index
    %c0_85 = arith.constant 0 : index
    %174 = vector.load %arg12[%c6_84, %c0_85] : memref<18x256xf32, #tpu.memory_space<vmem>>, vector<2x256xf32>
    tpu.vector_store %arg12[%c6_84, %c0_85], %173 {strides = array<i32>} : memref<18x256xf32, #tpu.memory_space<vmem>>, vector<2x256xf32>,
    %c4_86 = arith.constant 4 : index
    %c0_87 = arith.constant 0 : index
    %c0_88 = arith.constant 0 : index
    %175 = vector.load %arg10[%c4_86, %c0_87, %c0_88] : memref<9x1x256xf32, #tpu.memory_space<vmem>>, vector<1x1x256xf32>
    %176 = vector.shape_cast %175 : vector<1x1x256xf32> to vector<1x256xf32>
    %177 = vector.broadcast %176 : vector<1x256xf32> to vector<2x256xf32>
    %178 = arith.mulf %150, %177 : vector<2x256xf32>
    %c8_89 = arith.constant 8 : index
    %c0_90 = arith.constant 0 : index
    %179 = vector.load %arg12[%c8_89, %c0_90] : memref<18x256xf32, #tpu.memory_space<vmem>>, vector<2x256xf32>
    tpu.vector_store %arg12[%c8_89, %c0_90], %178 {strides = array<i32>} : memref<18x256xf32, #tpu.memory_space<vmem>>, vector<2x256xf32>,
    %c255_i32_91 = arith.constant 255 : i32
    %180 = tpu.dynamic_rotate %150 by %c255_i32_91 dim 1 : vector<2x256xf32>, i32 -> vector<2x256xf32>
    %c5_92 = arith.constant 5 : index
    %c0_93 = arith.constant 0 : index
    %c0_94 = arith.constant 0 : index
    %181 = vector.load %arg10[%c5_92, %c0_93, %c0_94] : memref<9x1x256xf32, #tpu.memory_space<vmem>>, vector<1x1x256xf32>
    %182 = vector.shape_cast %181 : vector<1x1x256xf32> to vector<1x256xf32>
    %183 = vector.broadcast %182 : vector<1x256xf32> to vector<2x256xf32>
    %184 = arith.mulf %180, %183 : vector<2x256xf32>
    %c10_95 = arith.constant 10 : index
    %c0_96 = arith.constant 0 : index
    %185 = vector.load %arg12[%c10_95, %c0_96] : memref<18x256xf32, #tpu.memory_space<vmem>>, vector<2x256xf32>
    tpu.vector_store %arg12[%c10_95, %c0_96], %184 {strides = array<i32>} : memref<18x256xf32, #tpu.memory_space<vmem>>, vector<2x256xf32>,
    %c241_i32_97 = arith.constant 241 : i32
    %186 = tpu.dynamic_rotate %150 by %c241_i32_97 dim 1 : vector<2x256xf32>, i32 -> vector<2x256xf32>
    %c6_98 = arith.constant 6 : index
    %c0_99 = arith.constant 0 : index
    %c0_100 = arith.constant 0 : index
    %187 = vector.load %arg10[%c6_98, %c0_99, %c0_100] : memref<9x1x256xf32, #tpu.memory_space<vmem>>, vector<1x1x256xf32>
    %188 = vector.shape_cast %187 : vector<1x1x256xf32> to vector<1x256xf32>
    %189 = vector.broadcast %188 : vector<1x256xf32> to vector<2x256xf32>
    %190 = arith.mulf %186, %189 : vector<2x256xf32>
    %c12_101 = arith.constant 12 : index
    %c0_102 = arith.constant 0 : index
    %191 = vector.load %arg12[%c12_101, %c0_102] : memref<18x256xf32, #tpu.memory_space<vmem>>, vector<2x256xf32>
    tpu.vector_store %arg12[%c12_101, %c0_102], %190 {strides = array<i32>} : memref<18x256xf32, #tpu.memory_space<vmem>>, vector<2x256xf32>,
    %c240_i32_103 = arith.constant 240 : i32
    %192 = tpu.dynamic_rotate %150 by %c240_i32_103 dim 1 : vector<2x256xf32>, i32 -> vector<2x256xf32>
    %c7_104 = arith.constant 7 : index
    %c0_105 = arith.constant 0 : index
    %c0_106 = arith.constant 0 : index
    %193 = vector.load %arg10[%c7_104, %c0_105, %c0_106] : memref<9x1x256xf32, #tpu.memory_space<vmem>>, vector<1x1x256xf32>
    %194 = vector.shape_cast %193 : vector<1x1x256xf32> to vector<1x256xf32>
    %195 = vector.broadcast %194 : vector<1x256xf32> to vector<2x256xf32>
    %196 = arith.mulf %192, %195 : vector<2x256xf32>
    %c14_107 = arith.constant 14 : index
    %c0_108 = arith.constant 0 : index
    %197 = vector.load %arg12[%c14_107, %c0_108] : memref<18x256xf32, #tpu.memory_space<vmem>>, vector<2x256xf32>
    tpu.vector_store %arg12[%c14_107, %c0_108], %196 {strides = array<i32>} : memref<18x256xf32, #tpu.memory_space<vmem>>, vector<2x256xf32>,
    %c239_i32_109 = arith.constant 239 : i32
    %198 = tpu.dynamic_rotate %150 by %c239_i32_109 dim 1 : vector<2x256xf32>, i32 -> vector<2x256xf32>
    %c8_110 = arith.constant 8 : index
    %c0_111 = arith.constant 0 : index
    %c0_112 = arith.constant 0 : index
    %199 = vector.load %arg10[%c8_110, %c0_111, %c0_112] : memref<9x1x256xf32, #tpu.memory_space<vmem>>, vector<1x1x256xf32>
    %200 = vector.shape_cast %199 : vector<1x1x256xf32> to vector<1x256xf32>
    %201 = vector.broadcast %200 : vector<1x256xf32> to vector<2x256xf32>
    %202 = arith.mulf %198, %201 : vector<2x256xf32>
    %c16_113 = arith.constant 16 : index
    %c0_114 = arith.constant 0 : index
    %203 = vector.load %arg12[%c16_113, %c0_114] : memref<18x256xf32, #tpu.memory_space<vmem>>, vector<2x256xf32>
    tpu.vector_store %arg12[%c16_113, %c0_114], %202 {strides = array<i32>} : memref<18x256xf32, #tpu.memory_space<vmem>>, vector<2x256xf32>,
    %c0_115 = arith.constant 0 : index
    %c0_116 = arith.constant 0 : index
    %204 = vector.load %arg6[%c0_115, %c0_116] : memref<2x18xf32, #tpu.memory_space<vmem>>, vector<2x18xf32>
    %c0_117 = arith.constant 0 : index
    %c0_118 = arith.constant 0 : index
    %205 = vector.load %arg12[%c0_117, %c0_118] : memref<18x256xf32, #tpu.memory_space<vmem>>, vector<18x256xf32>
    %cst_119 = arith.constant dense<0.000000e+00> : vector<2x256xf32>
    %206 = tpu.matmul %204, %205, %cst_119 {dimension_numbers = #tpu.dot_dimension_numbers<[1], [0], [0], [1], [0, 0, 1, 1], [], []>} : vector<2x18xf32>, vector<18x256xf32>, vector<2x256xf32> -> vector<2x256xf32>
    %c0_120 = arith.constant 0 : index
    %c0_121 = arith.constant 0 : index
    %207 = vector.load %arg7[%c0_120, %c0_121] : memref<2x1xf32, #tpu.memory_space<vmem>>, vector<2x1xf32>
    %208 = vector.broadcast %207 : vector<2x1xf32> to vector<2x256xf32>
    %209 = arith.addf %206, %208 : vector<2x256xf32>
    %cst_122 = arith.constant 0.000000e+00 : f32
    %210 = vector.broadcast %cst_122 : f32 to vector<2x256xf32>
    %211 = arith.maximumf %209, %210 : vector<2x256xf32>
    %212 = vector.extract_strided_slice %4 {offsets = [0, 0], sizes = [4, 1], strides = [1, 1]} : vector<4x2xf32> to vector<4x1xf32>
    %213 = vector.extract_strided_slice %211 {offsets = [0, 0], sizes = [1, 256], strides = [1, 1]} : vector<2x256xf32> to vector<1x256xf32>
    %214 = vector.broadcast %212 : vector<4x1xf32> to vector<4x256xf32>
    %215 = vector.broadcast %213 : vector<1x256xf32> to vector<4x256xf32>
    %216 = arith.mulf %214, %215 : vector<4x256xf32>
    %217 = vector.extract_strided_slice %4 {offsets = [0, 1], sizes = [4, 1], strides = [1, 1]} : vector<4x2xf32> to vector<4x1xf32>
    %218 = vector.extract_strided_slice %211 {offsets = [1, 0], sizes = [1, 256], strides = [1, 1]} : vector<2x256xf32> to vector<1x256xf32>
    %219 = vector.broadcast %217 : vector<4x1xf32> to vector<4x256xf32>
    %220 = vector.broadcast %218 : vector<1x256xf32> to vector<4x256xf32>
    %221 = arith.mulf %219, %220 : vector<4x256xf32>
    %222 = arith.addf %216, %221 : vector<4x256xf32>
    %223 = vector.broadcast %5 : vector<4x1xf32> to vector<4x256xf32>
    %224 = arith.addf %222, %223 : vector<4x256xf32>
    %225 = arith.addf %224, %115 : vector<4x256xf32>
    %c0_123 = arith.constant 0 : index
    %c0_124 = arith.constant 0 : index
    %c0_125 = arith.constant 0 : index
    %226 = vector.load %arg11[%c0_123, %c0_124, %c0_125] : memref<1x4x256xf32, #tpu.memory_space<vmem>>, vector<1x4x256xf32>
    %227 = vector.shape_cast %226 : vector<1x4x256xf32> to vector<4x256xf32>
    %228 = vector.shape_cast %225 : vector<4x256xf32> to vector<1x4x256xf32>
    tpu.vector_store %arg11[%c0_123, %c0_124, %c0_125], %228 {strides = array<i32>} : memref<1x4x256xf32, #tpu.memory_space<vmem>>, vector<1x4x256xf32>,
    return
  }
  func.func @transform_0(%arg0: i32) -> (i32, i32, i32) {
    %c0_i32 = arith.constant 0 : i32
    %c0_i32_0 = arith.constant 0 : i32
    %c0_i32_1 = arith.constant 0 : i32
    return %arg0, %c0_i32, %c0_i32_0 : i32, i32, i32
  }
  func.func @transform_1(%arg0: i32) -> (i32, i32) {
    %c0_i32 = arith.constant 0 : i32
    %c0_i32_0 = arith.constant 0 : i32
    %c0_i32_1 = arith.constant 0 : i32
    return %c0_i32, %c0_i32_0 : i32, i32
  }
  func.func @transform_2(%arg0: i32) -> (i32, i32) {
    %c0_i32 = arith.constant 0 : i32
    %c0_i32_0 = arith.constant 0 : i32
    %c0_i32_1 = arith.constant 0 : i32
    return %c0_i32, %c0_i32_0 : i32, i32
  }
  func.func @transform_3(%arg0: i32) -> (i32, i32) {
    %c0_i32 = arith.constant 0 : i32
    %c0_i32_0 = arith.constant 0 : i32
    %c0_i32_1 = arith.constant 0 : i32
    return %c0_i32, %c0_i32_0 : i32, i32
  }
  func.func @transform_4(%arg0: i32) -> (i32, i32) {
    %c0_i32 = arith.constant 0 : i32
    %c0_i32_0 = arith.constant 0 : i32
    %c0_i32_1 = arith.constant 0 : i32
    return %c0_i32, %c0_i32_0 : i32, i32
  }
  func.func @transform_5(%arg0: i32) -> (i32, i32) {
    %c0_i32 = arith.constant 0 : i32
    %c0_i32_0 = arith.constant 0 : i32
    %c0_i32_1 = arith.constant 0 : i32
    return %c0_i32, %c0_i32_0 : i32, i32
  }
  func.func @transform_6(%arg0: i32) -> (i32, i32) {
    %c0_i32 = arith.constant 0 : i32
    %c0_i32_0 = arith.constant 0 : i32
    %c0_i32_1 = arith.constant 0 : i32
    return %c0_i32, %c0_i32_0 : i32, i32
  }
  func.func @transform_7(%arg0: i32) -> (i32, i32) {
    %c0_i32 = arith.constant 0 : i32
    %c0_i32_0 = arith.constant 0 : i32
    %c0_i32_1 = arith.constant 0 : i32
    return %c0_i32, %c0_i32_0 : i32, i32
  }
  func.func @transform_8(%arg0: i32) -> (i32, i32) {
    %c0_i32 = arith.constant 0 : i32
    %c0_i32_0 = arith.constant 0 : i32
    %c0_i32_1 = arith.constant 0 : i32
    return %c0_i32, %c0_i32_0 : i32, i32
  }
  func.func @transform_9(%arg0: i32) -> (i32, i32, i32) {
    %c0_i32 = arith.constant 0 : i32
    %c0_i32_0 = arith.constant 0 : i32
    %c0_i32_1 = arith.constant 0 : i32
    %c0_i32_2 = arith.constant 0 : i32
    return %c0_i32, %c0_i32_0, %c0_i32_1 : i32, i32, i32
  }
  func.func @transform_10(%arg0: i32) -> (i32, i32, i32) {
    %c0_i32 = arith.constant 0 : i32
    %c0_i32_0 = arith.constant 0 : i32
    %c0_i32_1 = arith.constant 0 : i32
    return %arg0, %c0_i32, %c0_i32_0 : i32, i32, i32
  }
}

module attributes {stable_mosaic.version = 11 : i64} {
  func.func @_fused_res_blocks_kernel(%arg0: i32, %arg1: memref<1x4x64xf32, #tpu.memory_space<vmem>>, %arg2: memref<4x1xf32, #tpu.memory_space<vmem>>, %arg3: memref<4x1xf32, #tpu.memory_space<vmem>>, %arg4: memref<2x4xf32, #tpu.memory_space<vmem>>, %arg5: memref<2x1xf32, #tpu.memory_space<vmem>>, %arg6: memref<2x18xf32, #tpu.memory_space<vmem>>, %arg7: memref<2x1xf32, #tpu.memory_space<vmem>>, %arg8: memref<4x2xf32, #tpu.memory_space<vmem>>, %arg9: memref<4x1xf32, #tpu.memory_space<vmem>>, %arg10: memref<9x1x64xf32, #tpu.memory_space<vmem>>, %arg11: memref<1x4x64xf32, #tpu.memory_space<vmem>>, %arg12: memref<18x64xf32, #tpu.memory_space<vmem>>) attributes {dimension_semantics = [#tpu.dimension_semantics<parallel>], iteration_bounds = array<i64: 2>, scalar_prefetch = 0 : i64, scratch_operands = 1 : i64, tpu.core_type = #tpu.core_type<tc>, window_params = [{transform_indices = @transform_0, window_bounds = array<i64: 1, 4, 64>}, {pipeline_mode = #tpu.pipeline_mode<synchronous>, transform_indices = @transform_1, window_bounds = array<i64: 4, 1>}, {pipeline_mode = #tpu.pipeline_mode<synchronous>, transform_indices = @transform_2, window_bounds = array<i64: 4, 1>}, {pipeline_mode = #tpu.pipeline_mode<synchronous>, transform_indices = @transform_3, window_bounds = array<i64: 2, 4>}, {pipeline_mode = #tpu.pipeline_mode<synchronous>, transform_indices = @transform_4, window_bounds = array<i64: 2, 1>}, {pipeline_mode = #tpu.pipeline_mode<synchronous>, transform_indices = @transform_5, window_bounds = array<i64: 2, 18>}, {pipeline_mode = #tpu.pipeline_mode<synchronous>, transform_indices = @transform_6, window_bounds = array<i64: 2, 1>}, {pipeline_mode = #tpu.pipeline_mode<synchronous>, transform_indices = @transform_7, window_bounds = array<i64: 4, 2>}, {pipeline_mode = #tpu.pipeline_mode<synchronous>, transform_indices = @transform_8, window_bounds = array<i64: 4, 1>}, {pipeline_mode = #tpu.pipeline_mode<synchronous>, transform_indices = @transform_9, window_bounds = array<i64: 9, 1, 64>}, {transform_indices = @transform_10, window_bounds = array<i64: 1, 4, 64>}]} {
    %c0 = arith.constant 0 : index
    %c0_0 = arith.constant 0 : index
    %c0_1 = arith.constant 0 : index
    %0 = vector.load %arg1[%c0, %c0_0, %c0_1] : memref<1x4x64xf32, #tpu.memory_space<vmem>>, vector<1x4x64xf32>
    %1 = vector.shape_cast %0 : vector<1x4x64xf32> to vector<4x64xf32>
    %c0_2 = arith.constant 0 : index
    %c0_3 = arith.constant 0 : index
    %2 = vector.load %arg4[%c0_2, %c0_3] : memref<2x4xf32, #tpu.memory_space<vmem>>, vector<2x4xf32>
    %c0_4 = arith.constant 0 : index
    %c0_5 = arith.constant 0 : index
    %3 = vector.load %arg5[%c0_4, %c0_5] : memref<2x1xf32, #tpu.memory_space<vmem>>, vector<2x1xf32>
    %c0_6 = arith.constant 0 : index
    %c0_7 = arith.constant 0 : index
    %4 = vector.load %arg8[%c0_6, %c0_7] : memref<4x2xf32, #tpu.memory_space<vmem>>, vector<4x2xf32>
    %c0_8 = arith.constant 0 : index
    %c0_9 = arith.constant 0 : index
    %5 = vector.load %arg9[%c0_8, %c0_9] : memref<4x1xf32, #tpu.memory_space<vmem>>, vector<4x1xf32>
    %c0_10 = arith.constant 0 : index
    %c0_11 = arith.constant 0 : index
    %6 = vector.load %arg2[%c0_10, %c0_11] : memref<4x1xf32, #tpu.memory_space<vmem>>, vector<4x1xf32>
    %7 = vector.broadcast %6 : vector<4x1xf32> to vector<4x64xf32>
    %8 = arith.mulf %1, %7 : vector<4x64xf32>
    %c0_12 = arith.constant 0 : index
    %c0_13 = arith.constant 0 : index
    %9 = vector.load %arg3[%c0_12, %c0_13] : memref<4x1xf32, #tpu.memory_space<vmem>>, vector<4x1xf32>
    %10 = vector.broadcast %9 : vector<4x1xf32> to vector<4x64xf32>
    %11 = arith.addf %8, %10 : vector<4x64xf32>
    %cst = arith.constant 0.000000e+00 : f32
    %12 = vector.broadcast %cst : f32 to vector<4x64xf32>
    %13 = arith.maximumf %11, %12 : vector<4x64xf32>
    %14 = vector.extract_strided_slice %2 {offsets = [0, 0], sizes = [2, 1], strides = [1, 1]} : vector<2x4xf32> to vector<2x1xf32>
    %15 = vector.extract_strided_slice %13 {offsets = [0, 0], sizes = [1, 64], strides = [1, 1]} : vector<4x64xf32> to vector<1x64xf32>
    %16 = vector.broadcast %14 : vector<2x1xf32> to vector<2x64xf32>
    %17 = vector.broadcast %15 : vector<1x64xf32> to vector<2x64xf32>
    %18 = arith.mulf %16, %17 : vector<2x64xf32>
    %19 = vector.extract_strided_slice %2 {offsets = [0, 1], sizes = [2, 1], strides = [1, 1]} : vector<2x4xf32> to vector<2x1xf32>
    %20 = vector.extract_strided_slice %13 {offsets = [1, 0], sizes = [1, 64], strides = [1, 1]} : vector<4x64xf32> to vector<1x64xf32>
    %21 = vector.broadcast %19 : vector<2x1xf32> to vector<2x64xf32>
    %22 = vector.broadcast %20 : vector<1x64xf32> to vector<2x64xf32>
    %23 = arith.mulf %21, %22 : vector<2x64xf32>
    %24 = arith.addf %18, %23 : vector<2x64xf32>
    %25 = vector.extract_strided_slice %2 {offsets = [0, 2], sizes = [2, 1], strides = [1, 1]} : vector<2x4xf32> to vector<2x1xf32>
    %26 = vector.extract_strided_slice %13 {offsets = [2, 0], sizes = [1, 64], strides = [1, 1]} : vector<4x64xf32> to vector<1x64xf32>
    %27 = vector.broadcast %25 : vector<2x1xf32> to vector<2x64xf32>
    %28 = vector.broadcast %26 : vector<1x64xf32> to vector<2x64xf32>
    %29 = arith.mulf %27, %28 : vector<2x64xf32>
    %30 = arith.addf %24, %29 : vector<2x64xf32>
    %31 = vector.extract_strided_slice %2 {offsets = [0, 3], sizes = [2, 1], strides = [1, 1]} : vector<2x4xf32> to vector<2x1xf32>
    %32 = vector.extract_strided_slice %13 {offsets = [3, 0], sizes = [1, 64], strides = [1, 1]} : vector<4x64xf32> to vector<1x64xf32>
    %33 = vector.broadcast %31 : vector<2x1xf32> to vector<2x64xf32>
    %34 = vector.broadcast %32 : vector<1x64xf32> to vector<2x64xf32>
    %35 = arith.mulf %33, %34 : vector<2x64xf32>
    %36 = arith.addf %30, %35 : vector<2x64xf32>
    %37 = vector.broadcast %3 : vector<2x1xf32> to vector<2x64xf32>
    %38 = arith.addf %36, %37 : vector<2x64xf32>
    %cst_14 = arith.constant 0.000000e+00 : f32
    %39 = vector.broadcast %cst_14 : f32 to vector<2x64xf32>
    %40 = arith.maximumf %38, %39 : vector<2x64xf32>
    %c9_i32 = arith.constant 9 : i32
    %41 = tpu.dynamic_rotate %40 by %c9_i32 dim 1 : vector<2x64xf32>, i32 -> vector<2x64xf32>
    %c0_15 = arith.constant 0 : index
    %c0_16 = arith.constant 0 : index
    %c0_17 = arith.constant 0 : index
    %42 = vector.load %arg10[%c0_15, %c0_16, %c0_17] : memref<9x1x64xf32, #tpu.memory_space<vmem>>, vector<1x1x64xf32>
    %43 = vector.shape_cast %42 : vector<1x1x64xf32> to vector<1x64xf32>
    %44 = vector.broadcast %43 : vector<1x64xf32> to vector<2x64xf32>
    %45 = arith.mulf %41, %44 : vector<2x64xf32>
    %c0_18 = arith.constant 0 : index
    %c0_19 = arith.constant 0 : index
    %46 = vector.load %arg12[%c0_18, %c0_19] : memref<18x64xf32, #tpu.memory_space<vmem>>, vector<2x64xf32>
    tpu.vector_store %arg12[%c0_18, %c0_19], %45 {strides = array<i32>} : memref<18x64xf32, #tpu.memory_space<vmem>>, vector<2x64xf32>,
    %c8_i32 = arith.constant 8 : i32
    %47 = tpu.dynamic_rotate %40 by %c8_i32 dim 1 : vector<2x64xf32>, i32 -> vector<2x64xf32>
    %c1 = arith.constant 1 : index
    %c0_20 = arith.constant 0 : index
    %c0_21 = arith.constant 0 : index
    %48 = vector.load %arg10[%c1, %c0_20, %c0_21] : memref<9x1x64xf32, #tpu.memory_space<vmem>>, vector<1x1x64xf32>
    %49 = vector.shape_cast %48 : vector<1x1x64xf32> to vector<1x64xf32>
    %50 = vector.broadcast %49 : vector<1x64xf32> to vector<2x64xf32>
    %51 = arith.mulf %47, %50 : vector<2x64xf32>
    %c2 = arith.constant 2 : index
    %c0_22 = arith.constant 0 : index
    %52 = vector.load %arg12[%c2, %c0_22] : memref<18x64xf32, #tpu.memory_space<vmem>>, vector<2x64xf32>
    tpu.vector_store %arg12[%c2, %c0_22], %51 {strides = array<i32>} : memref<18x64xf32, #tpu.memory_space<vmem>>, vector<2x64xf32>,
    %c7_i32 = arith.constant 7 : i32
    %53 = tpu.dynamic_rotate %40 by %c7_i32 dim 1 : vector<2x64xf32>, i32 -> vector<2x64xf32>
    %c2_23 = arith.constant 2 : index
    %c0_24 = arith.constant 0 : index
    %c0_25 = arith.constant 0 : index
    %54 = vector.load %arg10[%c2_23, %c0_24, %c0_25] : memref<9x1x64xf32, #tpu.memory_space<vmem>>, vector<1x1x64xf32>
    %55 = vector.shape_cast %54 : vector<1x1x64xf32> to vector<1x64xf32>
    %56 = vector.broadcast %55 : vector<1x64xf32> to vector<2x64xf32>
    %57 = arith.mulf %53, %56 : vector<2x64xf32>
    %c4 = arith.constant 4 : index
    %c0_26 = arith.constant 0 : index
    %58 = vector.load %arg12[%c4, %c0_26] : memref<18x64xf32, #tpu.memory_space<vmem>>, vector<2x64xf32>
    tpu.vector_store %arg12[%c4, %c0_26], %57 {strides = array<i32>} : memref<18x64xf32, #tpu.memory_space<vmem>>, vector<2x64xf32>,
    %c1_i32 = arith.constant 1 : i32
    %59 = tpu.dynamic_rotate %40 by %c1_i32 dim 1 : vector<2x64xf32>, i32 -> vector<2x64xf32>
    %c3 = arith.constant 3 : index
    %c0_27 = arith.constant 0 : index
    %c0_28 = arith.constant 0 : index
    %60 = vector.load %arg10[%c3, %c0_27, %c0_28] : memref<9x1x64xf32, #tpu.memory_space<vmem>>, vector<1x1x64xf32>
    %61 = vector.shape_cast %60 : vector<1x1x64xf32> to vector<1x64xf32>
    %62 = vector.broadcast %61 : vector<1x64xf32> to vector<2x64xf32>
    %63 = arith.mulf %59, %62 : vector<2x64xf32>
    %c6 = arith.constant 6 : index
    %c0_29 = arith.constant 0 : index
    %64 = vector.load %arg12[%c6, %c0_29] : memref<18x64xf32, #tpu.memory_space<vmem>>, vector<2x64xf32>
    tpu.vector_store %arg12[%c6, %c0_29], %63 {strides = array<i32>} : memref<18x64xf32, #tpu.memory_space<vmem>>, vector<2x64xf32>,
    %c4_30 = arith.constant 4 : index
    %c0_31 = arith.constant 0 : index
    %c0_32 = arith.constant 0 : index
    %65 = vector.load %arg10[%c4_30, %c0_31, %c0_32] : memref<9x1x64xf32, #tpu.memory_space<vmem>>, vector<1x1x64xf32>
    %66 = vector.shape_cast %65 : vector<1x1x64xf32> to vector<1x64xf32>
    %67 = vector.broadcast %66 : vector<1x64xf32> to vector<2x64xf32>
    %68 = arith.mulf %40, %67 : vector<2x64xf32>
    %c8 = arith.constant 8 : index
    %c0_33 = arith.constant 0 : index
    %69 = vector.load %arg12[%c8, %c0_33] : memref<18x64xf32, #tpu.memory_space<vmem>>, vector<2x64xf32>
    tpu.vector_store %arg12[%c8, %c0_33], %68 {strides = array<i32>} : memref<18x64xf32, #tpu.memory_space<vmem>>, vector<2x64xf32>,
    %c63_i32 = arith.constant 63 : i32
    %70 = tpu.dynamic_rotate %40 by %c63_i32 dim 1 : vector<2x64xf32>, i32 -> vector<2x64xf32>
    %c5 = arith.constant 5 : index
    %c0_34 = arith.constant 0 : index
    %c0_35 = arith.constant 0 : index
    %71 = vector.load %arg10[%c5, %c0_34, %c0_35] : memref<9x1x64xf32, #tpu.memory_space<vmem>>, vector<1x1x64xf32>
    %72 = vector.shape_cast %71 : vector<1x1x64xf32> to vector<1x64xf32>
    %73 = vector.broadcast %72 : vector<1x64xf32> to vector<2x64xf32>
    %74 = arith.mulf %70, %73 : vector<2x64xf32>
    %c10 = arith.constant 10 : index
    %c0_36 = arith.constant 0 : index
    %75 = vector.load %arg12[%c10, %c0_36] : memref<18x64xf32, #tpu.memory_space<vmem>>, vector<2x64xf32>
    tpu.vector_store %arg12[%c10, %c0_36], %74 {strides = array<i32>} : memref<18x64xf32, #tpu.memory_space<vmem>>, vector<2x64xf32>,
    %c57_i32 = arith.constant 57 : i32
    %76 = tpu.dynamic_rotate %40 by %c57_i32 dim 1 : vector<2x64xf32>, i32 -> vector<2x64xf32>
    %c6_37 = arith.constant 6 : index
    %c0_38 = arith.constant 0 : index
    %c0_39 = arith.constant 0 : index
    %77 = vector.load %arg10[%c6_37, %c0_38, %c0_39] : memref<9x1x64xf32, #tpu.memory_space<vmem>>, vector<1x1x64xf32>
    %78 = vector.shape_cast %77 : vector<1x1x64xf32> to vector<1x64xf32>
    %79 = vector.broadcast %78 : vector<1x64xf32> to vector<2x64xf32>
    %80 = arith.mulf %76, %79 : vector<2x64xf32>
    %c12 = arith.constant 12 : index
    %c0_40 = arith.constant 0 : index
    %81 = vector.load %arg12[%c12, %c0_40] : memref<18x64xf32, #tpu.memory_space<vmem>>, vector<2x64xf32>
    tpu.vector_store %arg12[%c12, %c0_40], %80 {strides = array<i32>} : memref<18x64xf32, #tpu.memory_space<vmem>>, vector<2x64xf32>,
    %c56_i32 = arith.constant 56 : i32
    %82 = tpu.dynamic_rotate %40 by %c56_i32 dim 1 : vector<2x64xf32>, i32 -> vector<2x64xf32>
    %c7 = arith.constant 7 : index
    %c0_41 = arith.constant 0 : index
    %c0_42 = arith.constant 0 : index
    %83 = vector.load %arg10[%c7, %c0_41, %c0_42] : memref<9x1x64xf32, #tpu.memory_space<vmem>>, vector<1x1x64xf32>
    %84 = vector.shape_cast %83 : vector<1x1x64xf32> to vector<1x64xf32>
    %85 = vector.broadcast %84 : vector<1x64xf32> to vector<2x64xf32>
    %86 = arith.mulf %82, %85 : vector<2x64xf32>
    %c14 = arith.constant 14 : index
    %c0_43 = arith.constant 0 : index
    %87 = vector.load %arg12[%c14, %c0_43] : memref<18x64xf32, #tpu.memory_space<vmem>>, vector<2x64xf32>
    tpu.vector_store %arg12[%c14, %c0_43], %86 {strides = array<i32>} : memref<18x64xf32, #tpu.memory_space<vmem>>, vector<2x64xf32>,
    %c55_i32 = arith.constant 55 : i32
    %88 = tpu.dynamic_rotate %40 by %c55_i32 dim 1 : vector<2x64xf32>, i32 -> vector<2x64xf32>
    %c8_44 = arith.constant 8 : index
    %c0_45 = arith.constant 0 : index
    %c0_46 = arith.constant 0 : index
    %89 = vector.load %arg10[%c8_44, %c0_45, %c0_46] : memref<9x1x64xf32, #tpu.memory_space<vmem>>, vector<1x1x64xf32>
    %90 = vector.shape_cast %89 : vector<1x1x64xf32> to vector<1x64xf32>
    %91 = vector.broadcast %90 : vector<1x64xf32> to vector<2x64xf32>
    %92 = arith.mulf %88, %91 : vector<2x64xf32>
    %c16 = arith.constant 16 : index
    %c0_47 = arith.constant 0 : index
    %93 = vector.load %arg12[%c16, %c0_47] : memref<18x64xf32, #tpu.memory_space<vmem>>, vector<2x64xf32>
    tpu.vector_store %arg12[%c16, %c0_47], %92 {strides = array<i32>} : memref<18x64xf32, #tpu.memory_space<vmem>>, vector<2x64xf32>,
    %c0_48 = arith.constant 0 : index
    %c0_49 = arith.constant 0 : index
    %94 = vector.load %arg6[%c0_48, %c0_49] : memref<2x18xf32, #tpu.memory_space<vmem>>, vector<2x18xf32>
    %c0_50 = arith.constant 0 : index
    %c0_51 = arith.constant 0 : index
    %95 = vector.load %arg12[%c0_50, %c0_51] : memref<18x64xf32, #tpu.memory_space<vmem>>, vector<18x64xf32>
    %cst_52 = arith.constant dense<0.000000e+00> : vector<2x64xf32>
    %96 = tpu.matmul %94, %95, %cst_52 {dimension_numbers = #tpu.dot_dimension_numbers<[1], [0], [0], [1], [0, 0, 1, 1], [], []>} : vector<2x18xf32>, vector<18x64xf32>, vector<2x64xf32> -> vector<2x64xf32>
    %c0_53 = arith.constant 0 : index
    %c0_54 = arith.constant 0 : index
    %97 = vector.load %arg7[%c0_53, %c0_54] : memref<2x1xf32, #tpu.memory_space<vmem>>, vector<2x1xf32>
    %98 = vector.broadcast %97 : vector<2x1xf32> to vector<2x64xf32>
    %99 = arith.addf %96, %98 : vector<2x64xf32>
    %cst_55 = arith.constant 0.000000e+00 : f32
    %100 = vector.broadcast %cst_55 : f32 to vector<2x64xf32>
    %101 = arith.maximumf %99, %100 : vector<2x64xf32>
    %102 = vector.extract_strided_slice %4 {offsets = [0, 0], sizes = [4, 1], strides = [1, 1]} : vector<4x2xf32> to vector<4x1xf32>
    %103 = vector.extract_strided_slice %101 {offsets = [0, 0], sizes = [1, 64], strides = [1, 1]} : vector<2x64xf32> to vector<1x64xf32>
    %104 = vector.broadcast %102 : vector<4x1xf32> to vector<4x64xf32>
    %105 = vector.broadcast %103 : vector<1x64xf32> to vector<4x64xf32>
    %106 = arith.mulf %104, %105 : vector<4x64xf32>
    %107 = vector.extract_strided_slice %4 {offsets = [0, 1], sizes = [4, 1], strides = [1, 1]} : vector<4x2xf32> to vector<4x1xf32>
    %108 = vector.extract_strided_slice %101 {offsets = [1, 0], sizes = [1, 64], strides = [1, 1]} : vector<2x64xf32> to vector<1x64xf32>
    %109 = vector.broadcast %107 : vector<4x1xf32> to vector<4x64xf32>
    %110 = vector.broadcast %108 : vector<1x64xf32> to vector<4x64xf32>
    %111 = arith.mulf %109, %110 : vector<4x64xf32>
    %112 = arith.addf %106, %111 : vector<4x64xf32>
    %113 = vector.broadcast %5 : vector<4x1xf32> to vector<4x64xf32>
    %114 = arith.addf %112, %113 : vector<4x64xf32>
    %115 = arith.addf %114, %1 : vector<4x64xf32>
    %c0_56 = arith.constant 0 : index
    %c0_57 = arith.constant 0 : index
    %116 = vector.load %arg2[%c0_56, %c0_57] : memref<4x1xf32, #tpu.memory_space<vmem>>, vector<4x1xf32>
    %117 = vector.broadcast %116 : vector<4x1xf32> to vector<4x64xf32>
    %118 = arith.mulf %115, %117 : vector<4x64xf32>
    %c0_58 = arith.constant 0 : index
    %c0_59 = arith.constant 0 : index
    %119 = vector.load %arg3[%c0_58, %c0_59] : memref<4x1xf32, #tpu.memory_space<vmem>>, vector<4x1xf32>
    %120 = vector.broadcast %119 : vector<4x1xf32> to vector<4x64xf32>
    %121 = arith.addf %118, %120 : vector<4x64xf32>
    %cst_60 = arith.constant 0.000000e+00 : f32
    %122 = vector.broadcast %cst_60 : f32 to vector<4x64xf32>
    %123 = arith.maximumf %121, %122 : vector<4x64xf32>
    %124 = vector.extract_strided_slice %2 {offsets = [0, 0], sizes = [2, 1], strides = [1, 1]} : vector<2x4xf32> to vector<2x1xf32>
    %125 = vector.extract_strided_slice %123 {offsets = [0, 0], sizes = [1, 64], strides = [1, 1]} : vector<4x64xf32> to vector<1x64xf32>
    %126 = vector.broadcast %124 : vector<2x1xf32> to vector<2x64xf32>
    %127 = vector.broadcast %125 : vector<1x64xf32> to vector<2x64xf32>
    %128 = arith.mulf %126, %127 : vector<2x64xf32>
    %129 = vector.extract_strided_slice %2 {offsets = [0, 1], sizes = [2, 1], strides = [1, 1]} : vector<2x4xf32> to vector<2x1xf32>
    %130 = vector.extract_strided_slice %123 {offsets = [1, 0], sizes = [1, 64], strides = [1, 1]} : vector<4x64xf32> to vector<1x64xf32>
    %131 = vector.broadcast %129 : vector<2x1xf32> to vector<2x64xf32>
    %132 = vector.broadcast %130 : vector<1x64xf32> to vector<2x64xf32>
    %133 = arith.mulf %131, %132 : vector<2x64xf32>
    %134 = arith.addf %128, %133 : vector<2x64xf32>
    %135 = vector.extract_strided_slice %2 {offsets = [0, 2], sizes = [2, 1], strides = [1, 1]} : vector<2x4xf32> to vector<2x1xf32>
    %136 = vector.extract_strided_slice %123 {offsets = [2, 0], sizes = [1, 64], strides = [1, 1]} : vector<4x64xf32> to vector<1x64xf32>
    %137 = vector.broadcast %135 : vector<2x1xf32> to vector<2x64xf32>
    %138 = vector.broadcast %136 : vector<1x64xf32> to vector<2x64xf32>
    %139 = arith.mulf %137, %138 : vector<2x64xf32>
    %140 = arith.addf %134, %139 : vector<2x64xf32>
    %141 = vector.extract_strided_slice %2 {offsets = [0, 3], sizes = [2, 1], strides = [1, 1]} : vector<2x4xf32> to vector<2x1xf32>
    %142 = vector.extract_strided_slice %123 {offsets = [3, 0], sizes = [1, 64], strides = [1, 1]} : vector<4x64xf32> to vector<1x64xf32>
    %143 = vector.broadcast %141 : vector<2x1xf32> to vector<2x64xf32>
    %144 = vector.broadcast %142 : vector<1x64xf32> to vector<2x64xf32>
    %145 = arith.mulf %143, %144 : vector<2x64xf32>
    %146 = arith.addf %140, %145 : vector<2x64xf32>
    %147 = vector.broadcast %3 : vector<2x1xf32> to vector<2x64xf32>
    %148 = arith.addf %146, %147 : vector<2x64xf32>
    %cst_61 = arith.constant 0.000000e+00 : f32
    %149 = vector.broadcast %cst_61 : f32 to vector<2x64xf32>
    %150 = arith.maximumf %148, %149 : vector<2x64xf32>
    %c9_i32_62 = arith.constant 9 : i32
    %151 = tpu.dynamic_rotate %150 by %c9_i32_62 dim 1 : vector<2x64xf32>, i32 -> vector<2x64xf32>
    %c0_63 = arith.constant 0 : index
    %c0_64 = arith.constant 0 : index
    %c0_65 = arith.constant 0 : index
    %152 = vector.load %arg10[%c0_63, %c0_64, %c0_65] : memref<9x1x64xf32, #tpu.memory_space<vmem>>, vector<1x1x64xf32>
    %153 = vector.shape_cast %152 : vector<1x1x64xf32> to vector<1x64xf32>
    %154 = vector.broadcast %153 : vector<1x64xf32> to vector<2x64xf32>
    %155 = arith.mulf %151, %154 : vector<2x64xf32>
    %c0_66 = arith.constant 0 : index
    %c0_67 = arith.constant 0 : index
    %156 = vector.load %arg12[%c0_66, %c0_67] : memref<18x64xf32, #tpu.memory_space<vmem>>, vector<2x64xf32>
    tpu.vector_store %arg12[%c0_66, %c0_67], %155 {strides = array<i32>} : memref<18x64xf32, #tpu.memory_space<vmem>>, vector<2x64xf32>,
    %c8_i32_68 = arith.constant 8 : i32
    %157 = tpu.dynamic_rotate %150 by %c8_i32_68 dim 1 : vector<2x64xf32>, i32 -> vector<2x64xf32>
    %c1_69 = arith.constant 1 : index
    %c0_70 = arith.constant 0 : index
    %c0_71 = arith.constant 0 : index
    %158 = vector.load %arg10[%c1_69, %c0_70, %c0_71] : memref<9x1x64xf32, #tpu.memory_space<vmem>>, vector<1x1x64xf32>
    %159 = vector.shape_cast %158 : vector<1x1x64xf32> to vector<1x64xf32>
    %160 = vector.broadcast %159 : vector<1x64xf32> to vector<2x64xf32>
    %161 = arith.mulf %157, %160 : vector<2x64xf32>
    %c2_72 = arith.constant 2 : index
    %c0_73 = arith.constant 0 : index
    %162 = vector.load %arg12[%c2_72, %c0_73] : memref<18x64xf32, #tpu.memory_space<vmem>>, vector<2x64xf32>
    tpu.vector_store %arg12[%c2_72, %c0_73], %161 {strides = array<i32>} : memref<18x64xf32, #tpu.memory_space<vmem>>, vector<2x64xf32>,
    %c7_i32_74 = arith.constant 7 : i32
    %163 = tpu.dynamic_rotate %150 by %c7_i32_74 dim 1 : vector<2x64xf32>, i32 -> vector<2x64xf32>
    %c2_75 = arith.constant 2 : index
    %c0_76 = arith.constant 0 : index
    %c0_77 = arith.constant 0 : index
    %164 = vector.load %arg10[%c2_75, %c0_76, %c0_77] : memref<9x1x64xf32, #tpu.memory_space<vmem>>, vector<1x1x64xf32>
    %165 = vector.shape_cast %164 : vector<1x1x64xf32> to vector<1x64xf32>
    %166 = vector.broadcast %165 : vector<1x64xf32> to vector<2x64xf32>
    %167 = arith.mulf %163, %166 : vector<2x64xf32>
    %c4_78 = arith.constant 4 : index
    %c0_79 = arith.constant 0 : index
    %168 = vector.load %arg12[%c4_78, %c0_79] : memref<18x64xf32, #tpu.memory_space<vmem>>, vector<2x64xf32>
    tpu.vector_store %arg12[%c4_78, %c0_79], %167 {strides = array<i32>} : memref<18x64xf32, #tpu.memory_space<vmem>>, vector<2x64xf32>,
    %c1_i32_80 = arith.constant 1 : i32
    %169 = tpu.dynamic_rotate %150 by %c1_i32_80 dim 1 : vector<2x64xf32>, i32 -> vector<2x64xf32>
    %c3_81 = arith.constant 3 : index
    %c0_82 = arith.constant 0 : index
    %c0_83 = arith.constant 0 : index
    %170 = vector.load %arg10[%c3_81, %c0_82, %c0_83] : memref<9x1x64xf32, #tpu.memory_space<vmem>>, vector<1x1x64xf32>
    %171 = vector.shape_cast %170 : vector<1x1x64xf32> to vector<1x64xf32>
    %172 = vector.broadcast %171 : vector<1x64xf32> to vector<2x64xf32>
    %173 = arith.mulf %169, %172 : vector<2x64xf32>
    %c6_84 = arith.constant 6 : index
    %c0_85 = arith.constant 0 : index
    %174 = vector.load %arg12[%c6_84, %c0_85] : memref<18x64xf32, #tpu.memory_space<vmem>>, vector<2x64xf32>
    tpu.vector_store %arg12[%c6_84, %c0_85], %173 {strides = array<i32>} : memref<18x64xf32, #tpu.memory_space<vmem>>, vector<2x64xf32>,
    %c4_86 = arith.constant 4 : index
    %c0_87 = arith.constant 0 : index
    %c0_88 = arith.constant 0 : index
    %175 = vector.load %arg10[%c4_86, %c0_87, %c0_88] : memref<9x1x64xf32, #tpu.memory_space<vmem>>, vector<1x1x64xf32>
    %176 = vector.shape_cast %175 : vector<1x1x64xf32> to vector<1x64xf32>
    %177 = vector.broadcast %176 : vector<1x64xf32> to vector<2x64xf32>
    %178 = arith.mulf %150, %177 : vector<2x64xf32>
    %c8_89 = arith.constant 8 : index
    %c0_90 = arith.constant 0 : index
    %179 = vector.load %arg12[%c8_89, %c0_90] : memref<18x64xf32, #tpu.memory_space<vmem>>, vector<2x64xf32>
    tpu.vector_store %arg12[%c8_89, %c0_90], %178 {strides = array<i32>} : memref<18x64xf32, #tpu.memory_space<vmem>>, vector<2x64xf32>,
    %c63_i32_91 = arith.constant 63 : i32
    %180 = tpu.dynamic_rotate %150 by %c63_i32_91 dim 1 : vector<2x64xf32>, i32 -> vector<2x64xf32>
    %c5_92 = arith.constant 5 : index
    %c0_93 = arith.constant 0 : index
    %c0_94 = arith.constant 0 : index
    %181 = vector.load %arg10[%c5_92, %c0_93, %c0_94] : memref<9x1x64xf32, #tpu.memory_space<vmem>>, vector<1x1x64xf32>
    %182 = vector.shape_cast %181 : vector<1x1x64xf32> to vector<1x64xf32>
    %183 = vector.broadcast %182 : vector<1x64xf32> to vector<2x64xf32>
    %184 = arith.mulf %180, %183 : vector<2x64xf32>
    %c10_95 = arith.constant 10 : index
    %c0_96 = arith.constant 0 : index
    %185 = vector.load %arg12[%c10_95, %c0_96] : memref<18x64xf32, #tpu.memory_space<vmem>>, vector<2x64xf32>
    tpu.vector_store %arg12[%c10_95, %c0_96], %184 {strides = array<i32>} : memref<18x64xf32, #tpu.memory_space<vmem>>, vector<2x64xf32>,
    %c57_i32_97 = arith.constant 57 : i32
    %186 = tpu.dynamic_rotate %150 by %c57_i32_97 dim 1 : vector<2x64xf32>, i32 -> vector<2x64xf32>
    %c6_98 = arith.constant 6 : index
    %c0_99 = arith.constant 0 : index
    %c0_100 = arith.constant 0 : index
    %187 = vector.load %arg10[%c6_98, %c0_99, %c0_100] : memref<9x1x64xf32, #tpu.memory_space<vmem>>, vector<1x1x64xf32>
    %188 = vector.shape_cast %187 : vector<1x1x64xf32> to vector<1x64xf32>
    %189 = vector.broadcast %188 : vector<1x64xf32> to vector<2x64xf32>
    %190 = arith.mulf %186, %189 : vector<2x64xf32>
    %c12_101 = arith.constant 12 : index
    %c0_102 = arith.constant 0 : index
    %191 = vector.load %arg12[%c12_101, %c0_102] : memref<18x64xf32, #tpu.memory_space<vmem>>, vector<2x64xf32>
    tpu.vector_store %arg12[%c12_101, %c0_102], %190 {strides = array<i32>} : memref<18x64xf32, #tpu.memory_space<vmem>>, vector<2x64xf32>,
    %c56_i32_103 = arith.constant 56 : i32
    %192 = tpu.dynamic_rotate %150 by %c56_i32_103 dim 1 : vector<2x64xf32>, i32 -> vector<2x64xf32>
    %c7_104 = arith.constant 7 : index
    %c0_105 = arith.constant 0 : index
    %c0_106 = arith.constant 0 : index
    %193 = vector.load %arg10[%c7_104, %c0_105, %c0_106] : memref<9x1x64xf32, #tpu.memory_space<vmem>>, vector<1x1x64xf32>
    %194 = vector.shape_cast %193 : vector<1x1x64xf32> to vector<1x64xf32>
    %195 = vector.broadcast %194 : vector<1x64xf32> to vector<2x64xf32>
    %196 = arith.mulf %192, %195 : vector<2x64xf32>
    %c14_107 = arith.constant 14 : index
    %c0_108 = arith.constant 0 : index
    %197 = vector.load %arg12[%c14_107, %c0_108] : memref<18x64xf32, #tpu.memory_space<vmem>>, vector<2x64xf32>
    tpu.vector_store %arg12[%c14_107, %c0_108], %196 {strides = array<i32>} : memref<18x64xf32, #tpu.memory_space<vmem>>, vector<2x64xf32>,
    %c55_i32_109 = arith.constant 55 : i32
    %198 = tpu.dynamic_rotate %150 by %c55_i32_109 dim 1 : vector<2x64xf32>, i32 -> vector<2x64xf32>
    %c8_110 = arith.constant 8 : index
    %c0_111 = arith.constant 0 : index
    %c0_112 = arith.constant 0 : index
    %199 = vector.load %arg10[%c8_110, %c0_111, %c0_112] : memref<9x1x64xf32, #tpu.memory_space<vmem>>, vector<1x1x64xf32>
    %200 = vector.shape_cast %199 : vector<1x1x64xf32> to vector<1x64xf32>
    %201 = vector.broadcast %200 : vector<1x64xf32> to vector<2x64xf32>
    %202 = arith.mulf %198, %201 : vector<2x64xf32>
    %c16_113 = arith.constant 16 : index
    %c0_114 = arith.constant 0 : index
    %203 = vector.load %arg12[%c16_113, %c0_114] : memref<18x64xf32, #tpu.memory_space<vmem>>, vector<2x64xf32>
    tpu.vector_store %arg12[%c16_113, %c0_114], %202 {strides = array<i32>} : memref<18x64xf32, #tpu.memory_space<vmem>>, vector<2x64xf32>,
    %c0_115 = arith.constant 0 : index
    %c0_116 = arith.constant 0 : index
    %204 = vector.load %arg6[%c0_115, %c0_116] : memref<2x18xf32, #tpu.memory_space<vmem>>, vector<2x18xf32>
    %c0_117 = arith.constant 0 : index
    %c0_118 = arith.constant 0 : index
    %205 = vector.load %arg12[%c0_117, %c0_118] : memref<18x64xf32, #tpu.memory_space<vmem>>, vector<18x64xf32>
    %cst_119 = arith.constant dense<0.000000e+00> : vector<2x64xf32>
    %206 = tpu.matmul %204, %205, %cst_119 {dimension_numbers = #tpu.dot_dimension_numbers<[1], [0], [0], [1], [0, 0, 1, 1], [], []>} : vector<2x18xf32>, vector<18x64xf32>, vector<2x64xf32> -> vector<2x64xf32>
    %c0_120 = arith.constant 0 : index
    %c0_121 = arith.constant 0 : index
    %207 = vector.load %arg7[%c0_120, %c0_121] : memref<2x1xf32, #tpu.memory_space<vmem>>, vector<2x1xf32>
    %208 = vector.broadcast %207 : vector<2x1xf32> to vector<2x64xf32>
    %209 = arith.addf %206, %208 : vector<2x64xf32>
    %cst_122 = arith.constant 0.000000e+00 : f32
    %210 = vector.broadcast %cst_122 : f32 to vector<2x64xf32>
    %211 = arith.maximumf %209, %210 : vector<2x64xf32>
    %212 = vector.extract_strided_slice %4 {offsets = [0, 0], sizes = [4, 1], strides = [1, 1]} : vector<4x2xf32> to vector<4x1xf32>
    %213 = vector.extract_strided_slice %211 {offsets = [0, 0], sizes = [1, 64], strides = [1, 1]} : vector<2x64xf32> to vector<1x64xf32>
    %214 = vector.broadcast %212 : vector<4x1xf32> to vector<4x64xf32>
    %215 = vector.broadcast %213 : vector<1x64xf32> to vector<4x64xf32>
    %216 = arith.mulf %214, %215 : vector<4x64xf32>
    %217 = vector.extract_strided_slice %4 {offsets = [0, 1], sizes = [4, 1], strides = [1, 1]} : vector<4x2xf32> to vector<4x1xf32>
    %218 = vector.extract_strided_slice %211 {offsets = [1, 0], sizes = [1, 64], strides = [1, 1]} : vector<2x64xf32> to vector<1x64xf32>
    %219 = vector.broadcast %217 : vector<4x1xf32> to vector<4x64xf32>
    %220 = vector.broadcast %218 : vector<1x64xf32> to vector<4x64xf32>
    %221 = arith.mulf %219, %220 : vector<4x64xf32>
    %222 = arith.addf %216, %221 : vector<4x64xf32>
    %223 = vector.broadcast %5 : vector<4x1xf32> to vector<4x64xf32>
    %224 = arith.addf %222, %223 : vector<4x64xf32>
    %225 = arith.addf %224, %115 : vector<4x64xf32>
    %c0_123 = arith.constant 0 : index
    %c0_124 = arith.constant 0 : index
    %c0_125 = arith.constant 0 : index
    %226 = vector.load %arg11[%c0_123, %c0_124, %c0_125] : memref<1x4x64xf32, #tpu.memory_space<vmem>>, vector<1x4x64xf32>
    %227 = vector.shape_cast %226 : vector<1x4x64xf32> to vector<4x64xf32>
    %228 = vector.shape_cast %225 : vector<4x64xf32> to vector<1x4x64xf32>
    tpu.vector_store %arg11[%c0_123, %c0_124, %c0_125], %228 {strides = array<i32>} : memref<1x4x64xf32, #tpu.memory_space<vmem>>, vector<1x4x64xf32>,
    return
  }
  func.func @transform_0(%arg0: i32) -> (i32, i32, i32) {
    %c0_i32 = arith.constant 0 : i32
    %c0_i32_0 = arith.constant 0 : i32
    %c0_i32_1 = arith.constant 0 : i32
    return %arg0, %c0_i32, %c0_i32_0 : i32, i32, i32
  }
  func.func @transform_1(%arg0: i32) -> (i32, i32) {
    %c0_i32 = arith.constant 0 : i32
    %c0_i32_0 = arith.constant 0 : i32
    %c0_i32_1 = arith.constant 0 : i32
    return %c0_i32, %c0_i32_0 : i32, i32
  }
  func.func @transform_2(%arg0: i32) -> (i32, i32) {
    %c0_i32 = arith.constant 0 : i32
    %c0_i32_0 = arith.constant 0 : i32
    %c0_i32_1 = arith.constant 0 : i32
    return %c0_i32, %c0_i32_0 : i32, i32
  }
  func.func @transform_3(%arg0: i32) -> (i32, i32) {
    %c0_i32 = arith.constant 0 : i32
    %c0_i32_0 = arith.constant 0 : i32
    %c0_i32_1 = arith.constant 0 : i32
    return %c0_i32, %c0_i32_0 : i32, i32
  }
  func.func @transform_4(%arg0: i32) -> (i32, i32) {
    %c0_i32 = arith.constant 0 : i32
    %c0_i32_0 = arith.constant 0 : i32
    %c0_i32_1 = arith.constant 0 : i32
    return %c0_i32, %c0_i32_0 : i32, i32
  }
  func.func @transform_5(%arg0: i32) -> (i32, i32) {
    %c0_i32 = arith.constant 0 : i32
    %c0_i32_0 = arith.constant 0 : i32
    %c0_i32_1 = arith.constant 0 : i32
    return %c0_i32, %c0_i32_0 : i32, i32
  }
  func.func @transform_6(%arg0: i32) -> (i32, i32) {
    %c0_i32 = arith.constant 0 : i32
    %c0_i32_0 = arith.constant 0 : i32
    %c0_i32_1 = arith.constant 0 : i32
    return %c0_i32, %c0_i32_0 : i32, i32
  }
  func.func @transform_7(%arg0: i32) -> (i32, i32) {
    %c0_i32 = arith.constant 0 : i32
    %c0_i32_0 = arith.constant 0 : i32
    %c0_i32_1 = arith.constant 0 : i32
    return %c0_i32, %c0_i32_0 : i32, i32
  }
  func.func @transform_8(%arg0: i32) -> (i32, i32) {
    %c0_i32 = arith.constant 0 : i32
    %c0_i32_0 = arith.constant 0 : i32
    %c0_i32_1 = arith.constant 0 : i32
    return %c0_i32, %c0_i32_0 : i32, i32
  }
  func.func @transform_9(%arg0: i32) -> (i32, i32, i32) {
    %c0_i32 = arith.constant 0 : i32
    %c0_i32_0 = arith.constant 0 : i32
    %c0_i32_1 = arith.constant 0 : i32
    %c0_i32_2 = arith.constant 0 : i32
    return %c0_i32, %c0_i32_0, %c0_i32_1 : i32, i32, i32
  }
  func.func @transform_10(%arg0: i32) -> (i32, i32, i32) {
    %c0_i32 = arith.constant 0 : i32
    %c0_i32_0 = arith.constant 0 : i32
    %c0_i32_1 = arith.constant 0 : i32
    return %arg0, %c0_i32, %c0_i32_0 : i32, i32, i32
  }
}

module attributes {stable_mosaic.version = 11 : i64} {
  func.func @_maxpool2x2_kernel(%arg0: i32, %arg1: memref<1x4x64xf32, #tpu.memory_space<vmem>>, %arg2: memref<64x16xf32, #tpu.memory_space<vmem>>, %arg3: memref<1x4x16xf32, #tpu.memory_space<vmem>>) attributes {dimension_semantics = [#tpu.dimension_semantics<parallel>], iteration_bounds = array<i64: 2>, scalar_prefetch = 0 : i64, scratch_operands = 0 : i64, tpu.core_type = #tpu.core_type<tc>, window_params = [{transform_indices = @transform_0, window_bounds = array<i64: 1, 4, 64>}, {pipeline_mode = #tpu.pipeline_mode<synchronous>, transform_indices = @transform_1, window_bounds = array<i64: 64, 16>}, {transform_indices = @transform_2, window_bounds = array<i64: 1, 4, 16>}]} {
    %c0 = arith.constant 0 : index
    %c0_0 = arith.constant 0 : index
    %c0_1 = arith.constant 0 : index
    %0 = vector.load %arg1[%c0, %c0_0, %c0_1] : memref<1x4x64xf32, #tpu.memory_space<vmem>>, vector<1x4x64xf32>
    %1 = vector.shape_cast %0 : vector<1x4x64xf32> to vector<4x64xf32>
    %c63_i32 = arith.constant 63 : i32
    %2 = tpu.dynamic_rotate %1 by %c63_i32 dim 1 : vector<4x64xf32>, i32 -> vector<4x64xf32>
    %3 = arith.maximumf %1, %2 : vector<4x64xf32>
    %c56_i32 = arith.constant 56 : i32
    %4 = tpu.dynamic_rotate %1 by %c56_i32 dim 1 : vector<4x64xf32>, i32 -> vector<4x64xf32>
    %c55_i32 = arith.constant 55 : i32
    %5 = tpu.dynamic_rotate %1 by %c55_i32 dim 1 : vector<4x64xf32>, i32 -> vector<4x64xf32>
    %6 = arith.maximumf %4, %5 : vector<4x64xf32>
    %7 = arith.maximumf %3, %6 : vector<4x64xf32>
    %c0_2 = arith.constant 0 : index
    %c0_3 = arith.constant 0 : index
    %8 = vector.load %arg2[%c0_2, %c0_3] : memref<64x16xf32, #tpu.memory_space<vmem>>, vector<64x16xf32>
    %cst = arith.constant dense<0.000000e+00> : vector<4x16xf32>
    %9 = tpu.matmul %7, %8, %cst {dimension_numbers = #tpu.dot_dimension_numbers<[1], [0], [0], [1], [0, 0, 1, 1], [], []>} : vector<4x64xf32>, vector<64x16xf32>, vector<4x16xf32> -> vector<4x16xf32>
    %c0_4 = arith.constant 0 : index
    %c0_5 = arith.constant 0 : index
    %c0_6 = arith.constant 0 : index
    %10 = vector.load %arg3[%c0_4, %c0_5, %c0_6] : memref<1x4x16xf32, #tpu.memory_space<vmem>>, vector<1x4x16xf32>
    %11 = vector.shape_cast %10 : vector<1x4x16xf32> to vector<4x16xf32>
    %12 = vector.shape_cast %9 : vector<4x16xf32> to vector<1x4x16xf32>
    tpu.vector_store %arg3[%c0_4, %c0_5, %c0_6], %12 {strides = array<i32>} : memref<1x4x16xf32, #tpu.memory_space<vmem>>, vector<1x4x16xf32>,
    return
  }
  func.func @transform_0(%arg0: i32) -> (i32, i32, i32) {
    %c0_i32 = arith.constant 0 : i32
    %c0_i32_0 = arith.constant 0 : i32
    %c0_i32_1 = arith.constant 0 : i32
    return %arg0, %c0_i32, %c0_i32_0 : i32, i32, i32
  }
  func.func @transform_1(%arg0: i32) -> (i32, i32) {
    %c0_i32 = arith.constant 0 : i32
    %c0_i32_0 = arith.constant 0 : i32
    %c0_i32_1 = arith.constant 0 : i32
    return %c0_i32, %c0_i32_0 : i32, i32
  }
  func.func @transform_2(%arg0: i32) -> (i32, i32, i32) {
    %c0_i32 = arith.constant 0 : i32
    %c0_i32_0 = arith.constant 0 : i32
    %c0_i32_1 = arith.constant 0 : i32
    return %arg0, %c0_i32, %c0_i32_0 : i32, i32, i32
  }
}

module attributes {stable_mosaic.version = 11 : i64} {
  func.func @_fused_res_blocks_kernel(%arg0: i32, %arg1: memref<1x4x16xf32, #tpu.memory_space<vmem>>, %arg2: memref<4x1xf32, #tpu.memory_space<vmem>>, %arg3: memref<4x1xf32, #tpu.memory_space<vmem>>, %arg4: memref<2x4xf32, #tpu.memory_space<vmem>>, %arg5: memref<2x1xf32, #tpu.memory_space<vmem>>, %arg6: memref<2x18xf32, #tpu.memory_space<vmem>>, %arg7: memref<2x1xf32, #tpu.memory_space<vmem>>, %arg8: memref<4x2xf32, #tpu.memory_space<vmem>>, %arg9: memref<4x1xf32, #tpu.memory_space<vmem>>, %arg10: memref<9x1x16xf32, #tpu.memory_space<vmem>>, %arg11: memref<1x4x16xf32, #tpu.memory_space<vmem>>, %arg12: memref<18x16xf32, #tpu.memory_space<vmem>>) attributes {dimension_semantics = [#tpu.dimension_semantics<parallel>], iteration_bounds = array<i64: 2>, scalar_prefetch = 0 : i64, scratch_operands = 1 : i64, tpu.core_type = #tpu.core_type<tc>, window_params = [{transform_indices = @transform_0, window_bounds = array<i64: 1, 4, 16>}, {pipeline_mode = #tpu.pipeline_mode<synchronous>, transform_indices = @transform_1, window_bounds = array<i64: 4, 1>}, {pipeline_mode = #tpu.pipeline_mode<synchronous>, transform_indices = @transform_2, window_bounds = array<i64: 4, 1>}, {pipeline_mode = #tpu.pipeline_mode<synchronous>, transform_indices = @transform_3, window_bounds = array<i64: 2, 4>}, {pipeline_mode = #tpu.pipeline_mode<synchronous>, transform_indices = @transform_4, window_bounds = array<i64: 2, 1>}, {pipeline_mode = #tpu.pipeline_mode<synchronous>, transform_indices = @transform_5, window_bounds = array<i64: 2, 18>}, {pipeline_mode = #tpu.pipeline_mode<synchronous>, transform_indices = @transform_6, window_bounds = array<i64: 2, 1>}, {pipeline_mode = #tpu.pipeline_mode<synchronous>, transform_indices = @transform_7, window_bounds = array<i64: 4, 2>}, {pipeline_mode = #tpu.pipeline_mode<synchronous>, transform_indices = @transform_8, window_bounds = array<i64: 4, 1>}, {pipeline_mode = #tpu.pipeline_mode<synchronous>, transform_indices = @transform_9, window_bounds = array<i64: 9, 1, 16>}, {transform_indices = @transform_10, window_bounds = array<i64: 1, 4, 16>}]} {
    %c0 = arith.constant 0 : index
    %c0_0 = arith.constant 0 : index
    %c0_1 = arith.constant 0 : index
    %0 = vector.load %arg1[%c0, %c0_0, %c0_1] : memref<1x4x16xf32, #tpu.memory_space<vmem>>, vector<1x4x16xf32>
    %1 = vector.shape_cast %0 : vector<1x4x16xf32> to vector<4x16xf32>
    %c0_2 = arith.constant 0 : index
    %c0_3 = arith.constant 0 : index
    %2 = vector.load %arg4[%c0_2, %c0_3] : memref<2x4xf32, #tpu.memory_space<vmem>>, vector<2x4xf32>
    %c0_4 = arith.constant 0 : index
    %c0_5 = arith.constant 0 : index
    %3 = vector.load %arg5[%c0_4, %c0_5] : memref<2x1xf32, #tpu.memory_space<vmem>>, vector<2x1xf32>
    %c0_6 = arith.constant 0 : index
    %c0_7 = arith.constant 0 : index
    %4 = vector.load %arg8[%c0_6, %c0_7] : memref<4x2xf32, #tpu.memory_space<vmem>>, vector<4x2xf32>
    %c0_8 = arith.constant 0 : index
    %c0_9 = arith.constant 0 : index
    %5 = vector.load %arg9[%c0_8, %c0_9] : memref<4x1xf32, #tpu.memory_space<vmem>>, vector<4x1xf32>
    %c0_10 = arith.constant 0 : index
    %c0_11 = arith.constant 0 : index
    %6 = vector.load %arg2[%c0_10, %c0_11] : memref<4x1xf32, #tpu.memory_space<vmem>>, vector<4x1xf32>
    %7 = vector.broadcast %6 : vector<4x1xf32> to vector<4x16xf32>
    %8 = arith.mulf %1, %7 : vector<4x16xf32>
    %c0_12 = arith.constant 0 : index
    %c0_13 = arith.constant 0 : index
    %9 = vector.load %arg3[%c0_12, %c0_13] : memref<4x1xf32, #tpu.memory_space<vmem>>, vector<4x1xf32>
    %10 = vector.broadcast %9 : vector<4x1xf32> to vector<4x16xf32>
    %11 = arith.addf %8, %10 : vector<4x16xf32>
    %cst = arith.constant 0.000000e+00 : f32
    %12 = vector.broadcast %cst : f32 to vector<4x16xf32>
    %13 = arith.maximumf %11, %12 : vector<4x16xf32>
    %14 = vector.extract_strided_slice %2 {offsets = [0, 0], sizes = [2, 1], strides = [1, 1]} : vector<2x4xf32> to vector<2x1xf32>
    %15 = vector.extract_strided_slice %13 {offsets = [0, 0], sizes = [1, 16], strides = [1, 1]} : vector<4x16xf32> to vector<1x16xf32>
    %16 = vector.broadcast %14 : vector<2x1xf32> to vector<2x16xf32>
    %17 = vector.broadcast %15 : vector<1x16xf32> to vector<2x16xf32>
    %18 = arith.mulf %16, %17 : vector<2x16xf32>
    %19 = vector.extract_strided_slice %2 {offsets = [0, 1], sizes = [2, 1], strides = [1, 1]} : vector<2x4xf32> to vector<2x1xf32>
    %20 = vector.extract_strided_slice %13 {offsets = [1, 0], sizes = [1, 16], strides = [1, 1]} : vector<4x16xf32> to vector<1x16xf32>
    %21 = vector.broadcast %19 : vector<2x1xf32> to vector<2x16xf32>
    %22 = vector.broadcast %20 : vector<1x16xf32> to vector<2x16xf32>
    %23 = arith.mulf %21, %22 : vector<2x16xf32>
    %24 = arith.addf %18, %23 : vector<2x16xf32>
    %25 = vector.extract_strided_slice %2 {offsets = [0, 2], sizes = [2, 1], strides = [1, 1]} : vector<2x4xf32> to vector<2x1xf32>
    %26 = vector.extract_strided_slice %13 {offsets = [2, 0], sizes = [1, 16], strides = [1, 1]} : vector<4x16xf32> to vector<1x16xf32>
    %27 = vector.broadcast %25 : vector<2x1xf32> to vector<2x16xf32>
    %28 = vector.broadcast %26 : vector<1x16xf32> to vector<2x16xf32>
    %29 = arith.mulf %27, %28 : vector<2x16xf32>
    %30 = arith.addf %24, %29 : vector<2x16xf32>
    %31 = vector.extract_strided_slice %2 {offsets = [0, 3], sizes = [2, 1], strides = [1, 1]} : vector<2x4xf32> to vector<2x1xf32>
    %32 = vector.extract_strided_slice %13 {offsets = [3, 0], sizes = [1, 16], strides = [1, 1]} : vector<4x16xf32> to vector<1x16xf32>
    %33 = vector.broadcast %31 : vector<2x1xf32> to vector<2x16xf32>
    %34 = vector.broadcast %32 : vector<1x16xf32> to vector<2x16xf32>
    %35 = arith.mulf %33, %34 : vector<2x16xf32>
    %36 = arith.addf %30, %35 : vector<2x16xf32>
    %37 = vector.broadcast %3 : vector<2x1xf32> to vector<2x16xf32>
    %38 = arith.addf %36, %37 : vector<2x16xf32>
    %cst_14 = arith.constant 0.000000e+00 : f32
    %39 = vector.broadcast %cst_14 : f32 to vector<2x16xf32>
    %40 = arith.maximumf %38, %39 : vector<2x16xf32>
    %c5_i32 = arith.constant 5 : i32
    %41 = tpu.dynamic_rotate %40 by %c5_i32 dim 1 : vector<2x16xf32>, i32 -> vector<2x16xf32>
    %c0_15 = arith.constant 0 : index
    %c0_16 = arith.constant 0 : index
    %c0_17 = arith.constant 0 : index
    %42 = vector.load %arg10[%c0_15, %c0_16, %c0_17] : memref<9x1x16xf32, #tpu.memory_space<vmem>>, vector<1x1x16xf32>
    %43 = vector.shape_cast %42 : vector<1x1x16xf32> to vector<1x16xf32>
    %44 = vector.broadcast %43 : vector<1x16xf32> to vector<2x16xf32>
    %45 = arith.mulf %41, %44 : vector<2x16xf32>
    %c0_18 = arith.constant 0 : index
    %c0_19 = arith.constant 0 : index
    %46 = vector.load %arg12[%c0_18, %c0_19] : memref<18x16xf32, #tpu.memory_space<vmem>>, vector<2x16xf32>
    tpu.vector_store %arg12[%c0_18, %c0_19], %45 {strides = array<i32>} : memref<18x16xf32, #tpu.memory_space<vmem>>, vector<2x16xf32>,
    %c4_i32 = arith.constant 4 : i32
    %47 = tpu.dynamic_rotate %40 by %c4_i32 dim 1 : vector<2x16xf32>, i32 -> vector<2x16xf32>
    %c1 = arith.constant 1 : index
    %c0_20 = arith.constant 0 : index
    %c0_21 = arith.constant 0 : index
    %48 = vector.load %arg10[%c1, %c0_20, %c0_21] : memref<9x1x16xf32, #tpu.memory_space<vmem>>, vector<1x1x16xf32>
    %49 = vector.shape_cast %48 : vector<1x1x16xf32> to vector<1x16xf32>
    %50 = vector.broadcast %49 : vector<1x16xf32> to vector<2x16xf32>
    %51 = arith.mulf %47, %50 : vector<2x16xf32>
    %c2 = arith.constant 2 : index
    %c0_22 = arith.constant 0 : index
    %52 = vector.load %arg12[%c2, %c0_22] : memref<18x16xf32, #tpu.memory_space<vmem>>, vector<2x16xf32>
    tpu.vector_store %arg12[%c2, %c0_22], %51 {strides = array<i32>} : memref<18x16xf32, #tpu.memory_space<vmem>>, vector<2x16xf32>,
    %c3_i32 = arith.constant 3 : i32
    %53 = tpu.dynamic_rotate %40 by %c3_i32 dim 1 : vector<2x16xf32>, i32 -> vector<2x16xf32>
    %c2_23 = arith.constant 2 : index
    %c0_24 = arith.constant 0 : index
    %c0_25 = arith.constant 0 : index
    %54 = vector.load %arg10[%c2_23, %c0_24, %c0_25] : memref<9x1x16xf32, #tpu.memory_space<vmem>>, vector<1x1x16xf32>
    %55 = vector.shape_cast %54 : vector<1x1x16xf32> to vector<1x16xf32>
    %56 = vector.broadcast %55 : vector<1x16xf32> to vector<2x16xf32>
    %57 = arith.mulf %53, %56 : vector<2x16xf32>
    %c4 = arith.constant 4 : index
    %c0_26 = arith.constant 0 : index
    %58 = vector.load %arg12[%c4, %c0_26] : memref<18x16xf32, #tpu.memory_space<vmem>>, vector<2x16xf32>
    tpu.vector_store %arg12[%c4, %c0_26], %57 {strides = array<i32>} : memref<18x16xf32, #tpu.memory_space<vmem>>, vector<2x16xf32>,
    %c1_i32 = arith.constant 1 : i32
    %59 = tpu.dynamic_rotate %40 by %c1_i32 dim 1 : vector<2x16xf32>, i32 -> vector<2x16xf32>
    %c3 = arith.constant 3 : index
    %c0_27 = arith.constant 0 : index
    %c0_28 = arith.constant 0 : index
    %60 = vector.load %arg10[%c3, %c0_27, %c0_28] : memref<9x1x16xf32, #tpu.memory_space<vmem>>, vector<1x1x16xf32>
    %61 = vector.shape_cast %60 : vector<1x1x16xf32> to vector<1x16xf32>
    %62 = vector.broadcast %61 : vector<1x16xf32> to vector<2x16xf32>
    %63 = arith.mulf %59, %62 : vector<2x16xf32>
    %c6 = arith.constant 6 : index
    %c0_29 = arith.constant 0 : index
    %64 = vector.load %arg12[%c6, %c0_29] : memref<18x16xf32, #tpu.memory_space<vmem>>, vector<2x16xf32>
    tpu.vector_store %arg12[%c6, %c0_29], %63 {strides = array<i32>} : memref<18x16xf32, #tpu.memory_space<vmem>>, vector<2x16xf32>,
    %c4_30 = arith.constant 4 : index
    %c0_31 = arith.constant 0 : index
    %c0_32 = arith.constant 0 : index
    %65 = vector.load %arg10[%c4_30, %c0_31, %c0_32] : memref<9x1x16xf32, #tpu.memory_space<vmem>>, vector<1x1x16xf32>
    %66 = vector.shape_cast %65 : vector<1x1x16xf32> to vector<1x16xf32>
    %67 = vector.broadcast %66 : vector<1x16xf32> to vector<2x16xf32>
    %68 = arith.mulf %40, %67 : vector<2x16xf32>
    %c8 = arith.constant 8 : index
    %c0_33 = arith.constant 0 : index
    %69 = vector.load %arg12[%c8, %c0_33] : memref<18x16xf32, #tpu.memory_space<vmem>>, vector<2x16xf32>
    tpu.vector_store %arg12[%c8, %c0_33], %68 {strides = array<i32>} : memref<18x16xf32, #tpu.memory_space<vmem>>, vector<2x16xf32>,
    %c15_i32 = arith.constant 15 : i32
    %70 = tpu.dynamic_rotate %40 by %c15_i32 dim 1 : vector<2x16xf32>, i32 -> vector<2x16xf32>
    %c5 = arith.constant 5 : index
    %c0_34 = arith.constant 0 : index
    %c0_35 = arith.constant 0 : index
    %71 = vector.load %arg10[%c5, %c0_34, %c0_35] : memref<9x1x16xf32, #tpu.memory_space<vmem>>, vector<1x1x16xf32>
    %72 = vector.shape_cast %71 : vector<1x1x16xf32> to vector<1x16xf32>
    %73 = vector.broadcast %72 : vector<1x16xf32> to vector<2x16xf32>
    %74 = arith.mulf %70, %73 : vector<2x16xf32>
    %c10 = arith.constant 10 : index
    %c0_36 = arith.constant 0 : index
    %75 = vector.load %arg12[%c10, %c0_36] : memref<18x16xf32, #tpu.memory_space<vmem>>, vector<2x16xf32>
    tpu.vector_store %arg12[%c10, %c0_36], %74 {strides = array<i32>} : memref<18x16xf32, #tpu.memory_space<vmem>>, vector<2x16xf32>,
    %c13_i32 = arith.constant 13 : i32
    %76 = tpu.dynamic_rotate %40 by %c13_i32 dim 1 : vector<2x16xf32>, i32 -> vector<2x16xf32>
    %c6_37 = arith.constant 6 : index
    %c0_38 = arith.constant 0 : index
    %c0_39 = arith.constant 0 : index
    %77 = vector.load %arg10[%c6_37, %c0_38, %c0_39] : memref<9x1x16xf32, #tpu.memory_space<vmem>>, vector<1x1x16xf32>
    %78 = vector.shape_cast %77 : vector<1x1x16xf32> to vector<1x16xf32>
    %79 = vector.broadcast %78 : vector<1x16xf32> to vector<2x16xf32>
    %80 = arith.mulf %76, %79 : vector<2x16xf32>
    %c12 = arith.constant 12 : index
    %c0_40 = arith.constant 0 : index
    %81 = vector.load %arg12[%c12, %c0_40] : memref<18x16xf32, #tpu.memory_space<vmem>>, vector<2x16xf32>
    tpu.vector_store %arg12[%c12, %c0_40], %80 {strides = array<i32>} : memref<18x16xf32, #tpu.memory_space<vmem>>, vector<2x16xf32>,
    %c12_i32 = arith.constant 12 : i32
    %82 = tpu.dynamic_rotate %40 by %c12_i32 dim 1 : vector<2x16xf32>, i32 -> vector<2x16xf32>
    %c7 = arith.constant 7 : index
    %c0_41 = arith.constant 0 : index
    %c0_42 = arith.constant 0 : index
    %83 = vector.load %arg10[%c7, %c0_41, %c0_42] : memref<9x1x16xf32, #tpu.memory_space<vmem>>, vector<1x1x16xf32>
    %84 = vector.shape_cast %83 : vector<1x1x16xf32> to vector<1x16xf32>
    %85 = vector.broadcast %84 : vector<1x16xf32> to vector<2x16xf32>
    %86 = arith.mulf %82, %85 : vector<2x16xf32>
    %c14 = arith.constant 14 : index
    %c0_43 = arith.constant 0 : index
    %87 = vector.load %arg12[%c14, %c0_43] : memref<18x16xf32, #tpu.memory_space<vmem>>, vector<2x16xf32>
    tpu.vector_store %arg12[%c14, %c0_43], %86 {strides = array<i32>} : memref<18x16xf32, #tpu.memory_space<vmem>>, vector<2x16xf32>,
    %c11_i32 = arith.constant 11 : i32
    %88 = tpu.dynamic_rotate %40 by %c11_i32 dim 1 : vector<2x16xf32>, i32 -> vector<2x16xf32>
    %c8_44 = arith.constant 8 : index
    %c0_45 = arith.constant 0 : index
    %c0_46 = arith.constant 0 : index
    %89 = vector.load %arg10[%c8_44, %c0_45, %c0_46] : memref<9x1x16xf32, #tpu.memory_space<vmem>>, vector<1x1x16xf32>
    %90 = vector.shape_cast %89 : vector<1x1x16xf32> to vector<1x16xf32>
    %91 = vector.broadcast %90 : vector<1x16xf32> to vector<2x16xf32>
    %92 = arith.mulf %88, %91 : vector<2x16xf32>
    %c16 = arith.constant 16 : index
    %c0_47 = arith.constant 0 : index
    %93 = vector.load %arg12[%c16, %c0_47] : memref<18x16xf32, #tpu.memory_space<vmem>>, vector<2x16xf32>
    tpu.vector_store %arg12[%c16, %c0_47], %92 {strides = array<i32>} : memref<18x16xf32, #tpu.memory_space<vmem>>, vector<2x16xf32>,
    %c0_48 = arith.constant 0 : index
    %c0_49 = arith.constant 0 : index
    %94 = vector.load %arg6[%c0_48, %c0_49] : memref<2x18xf32, #tpu.memory_space<vmem>>, vector<2x18xf32>
    %c0_50 = arith.constant 0 : index
    %c0_51 = arith.constant 0 : index
    %95 = vector.load %arg12[%c0_50, %c0_51] : memref<18x16xf32, #tpu.memory_space<vmem>>, vector<18x16xf32>
    %cst_52 = arith.constant dense<0.000000e+00> : vector<2x16xf32>
    %96 = tpu.matmul %94, %95, %cst_52 {dimension_numbers = #tpu.dot_dimension_numbers<[1], [0], [0], [1], [0, 0, 1, 1], [], []>} : vector<2x18xf32>, vector<18x16xf32>, vector<2x16xf32> -> vector<2x16xf32>
    %c0_53 = arith.constant 0 : index
    %c0_54 = arith.constant 0 : index
    %97 = vector.load %arg7[%c0_53, %c0_54] : memref<2x1xf32, #tpu.memory_space<vmem>>, vector<2x1xf32>
    %98 = vector.broadcast %97 : vector<2x1xf32> to vector<2x16xf32>
    %99 = arith.addf %96, %98 : vector<2x16xf32>
    %cst_55 = arith.constant 0.000000e+00 : f32
    %100 = vector.broadcast %cst_55 : f32 to vector<2x16xf32>
    %101 = arith.maximumf %99, %100 : vector<2x16xf32>
    %102 = vector.extract_strided_slice %4 {offsets = [0, 0], sizes = [4, 1], strides = [1, 1]} : vector<4x2xf32> to vector<4x1xf32>
    %103 = vector.extract_strided_slice %101 {offsets = [0, 0], sizes = [1, 16], strides = [1, 1]} : vector<2x16xf32> to vector<1x16xf32>
    %104 = vector.broadcast %102 : vector<4x1xf32> to vector<4x16xf32>
    %105 = vector.broadcast %103 : vector<1x16xf32> to vector<4x16xf32>
    %106 = arith.mulf %104, %105 : vector<4x16xf32>
    %107 = vector.extract_strided_slice %4 {offsets = [0, 1], sizes = [4, 1], strides = [1, 1]} : vector<4x2xf32> to vector<4x1xf32>
    %108 = vector.extract_strided_slice %101 {offsets = [1, 0], sizes = [1, 16], strides = [1, 1]} : vector<2x16xf32> to vector<1x16xf32>
    %109 = vector.broadcast %107 : vector<4x1xf32> to vector<4x16xf32>
    %110 = vector.broadcast %108 : vector<1x16xf32> to vector<4x16xf32>
    %111 = arith.mulf %109, %110 : vector<4x16xf32>
    %112 = arith.addf %106, %111 : vector<4x16xf32>
    %113 = vector.broadcast %5 : vector<4x1xf32> to vector<4x16xf32>
    %114 = arith.addf %112, %113 : vector<4x16xf32>
    %115 = arith.addf %114, %1 : vector<4x16xf32>
    %c0_56 = arith.constant 0 : index
    %c0_57 = arith.constant 0 : index
    %116 = vector.load %arg2[%c0_56, %c0_57] : memref<4x1xf32, #tpu.memory_space<vmem>>, vector<4x1xf32>
    %117 = vector.broadcast %116 : vector<4x1xf32> to vector<4x16xf32>
    %118 = arith.mulf %115, %117 : vector<4x16xf32>
    %c0_58 = arith.constant 0 : index
    %c0_59 = arith.constant 0 : index
    %119 = vector.load %arg3[%c0_58, %c0_59] : memref<4x1xf32, #tpu.memory_space<vmem>>, vector<4x1xf32>
    %120 = vector.broadcast %119 : vector<4x1xf32> to vector<4x16xf32>
    %121 = arith.addf %118, %120 : vector<4x16xf32>
    %cst_60 = arith.constant 0.000000e+00 : f32
    %122 = vector.broadcast %cst_60 : f32 to vector<4x16xf32>
    %123 = arith.maximumf %121, %122 : vector<4x16xf32>
    %124 = vector.extract_strided_slice %2 {offsets = [0, 0], sizes = [2, 1], strides = [1, 1]} : vector<2x4xf32> to vector<2x1xf32>
    %125 = vector.extract_strided_slice %123 {offsets = [0, 0], sizes = [1, 16], strides = [1, 1]} : vector<4x16xf32> to vector<1x16xf32>
    %126 = vector.broadcast %124 : vector<2x1xf32> to vector<2x16xf32>
    %127 = vector.broadcast %125 : vector<1x16xf32> to vector<2x16xf32>
    %128 = arith.mulf %126, %127 : vector<2x16xf32>
    %129 = vector.extract_strided_slice %2 {offsets = [0, 1], sizes = [2, 1], strides = [1, 1]} : vector<2x4xf32> to vector<2x1xf32>
    %130 = vector.extract_strided_slice %123 {offsets = [1, 0], sizes = [1, 16], strides = [1, 1]} : vector<4x16xf32> to vector<1x16xf32>
    %131 = vector.broadcast %129 : vector<2x1xf32> to vector<2x16xf32>
    %132 = vector.broadcast %130 : vector<1x16xf32> to vector<2x16xf32>
    %133 = arith.mulf %131, %132 : vector<2x16xf32>
    %134 = arith.addf %128, %133 : vector<2x16xf32>
    %135 = vector.extract_strided_slice %2 {offsets = [0, 2], sizes = [2, 1], strides = [1, 1]} : vector<2x4xf32> to vector<2x1xf32>
    %136 = vector.extract_strided_slice %123 {offsets = [2, 0], sizes = [1, 16], strides = [1, 1]} : vector<4x16xf32> to vector<1x16xf32>
    %137 = vector.broadcast %135 : vector<2x1xf32> to vector<2x16xf32>
    %138 = vector.broadcast %136 : vector<1x16xf32> to vector<2x16xf32>
    %139 = arith.mulf %137, %138 : vector<2x16xf32>
    %140 = arith.addf %134, %139 : vector<2x16xf32>
    %141 = vector.extract_strided_slice %2 {offsets = [0, 3], sizes = [2, 1], strides = [1, 1]} : vector<2x4xf32> to vector<2x1xf32>
    %142 = vector.extract_strided_slice %123 {offsets = [3, 0], sizes = [1, 16], strides = [1, 1]} : vector<4x16xf32> to vector<1x16xf32>
    %143 = vector.broadcast %141 : vector<2x1xf32> to vector<2x16xf32>
    %144 = vector.broadcast %142 : vector<1x16xf32> to vector<2x16xf32>
    %145 = arith.mulf %143, %144 : vector<2x16xf32>
    %146 = arith.addf %140, %145 : vector<2x16xf32>
    %147 = vector.broadcast %3 : vector<2x1xf32> to vector<2x16xf32>
    %148 = arith.addf %146, %147 : vector<2x16xf32>
    %cst_61 = arith.constant 0.000000e+00 : f32
    %149 = vector.broadcast %cst_61 : f32 to vector<2x16xf32>
    %150 = arith.maximumf %148, %149 : vector<2x16xf32>
    %c5_i32_62 = arith.constant 5 : i32
    %151 = tpu.dynamic_rotate %150 by %c5_i32_62 dim 1 : vector<2x16xf32>, i32 -> vector<2x16xf32>
    %c0_63 = arith.constant 0 : index
    %c0_64 = arith.constant 0 : index
    %c0_65 = arith.constant 0 : index
    %152 = vector.load %arg10[%c0_63, %c0_64, %c0_65] : memref<9x1x16xf32, #tpu.memory_space<vmem>>, vector<1x1x16xf32>
    %153 = vector.shape_cast %152 : vector<1x1x16xf32> to vector<1x16xf32>
    %154 = vector.broadcast %153 : vector<1x16xf32> to vector<2x16xf32>
    %155 = arith.mulf %151, %154 : vector<2x16xf32>
    %c0_66 = arith.constant 0 : index
    %c0_67 = arith.constant 0 : index
    %156 = vector.load %arg12[%c0_66, %c0_67] : memref<18x16xf32, #tpu.memory_space<vmem>>, vector<2x16xf32>
    tpu.vector_store %arg12[%c0_66, %c0_67], %155 {strides = array<i32>} : memref<18x16xf32, #tpu.memory_space<vmem>>, vector<2x16xf32>,
    %c4_i32_68 = arith.constant 4 : i32
    %157 = tpu.dynamic_rotate %150 by %c4_i32_68 dim 1 : vector<2x16xf32>, i32 -> vector<2x16xf32>
    %c1_69 = arith.constant 1 : index
    %c0_70 = arith.constant 0 : index
    %c0_71 = arith.constant 0 : index
    %158 = vector.load %arg10[%c1_69, %c0_70, %c0_71] : memref<9x1x16xf32, #tpu.memory_space<vmem>>, vector<1x1x16xf32>
    %159 = vector.shape_cast %158 : vector<1x1x16xf32> to vector<1x16xf32>
    %160 = vector.broadcast %159 : vector<1x16xf32> to vector<2x16xf32>
    %161 = arith.mulf %157, %160 : vector<2x16xf32>
    %c2_72 = arith.constant 2 : index
    %c0_73 = arith.constant 0 : index
    %162 = vector.load %arg12[%c2_72, %c0_73] : memref<18x16xf32, #tpu.memory_space<vmem>>, vector<2x16xf32>
    tpu.vector_store %arg12[%c2_72, %c0_73], %161 {strides = array<i32>} : memref<18x16xf32, #tpu.memory_space<vmem>>, vector<2x16xf32>,
    %c3_i32_74 = arith.constant 3 : i32
    %163 = tpu.dynamic_rotate %150 by %c3_i32_74 dim 1 : vector<2x16xf32>, i32 -> vector<2x16xf32>
    %c2_75 = arith.constant 2 : index
    %c0_76 = arith.constant 0 : index
    %c0_77 = arith.constant 0 : index
    %164 = vector.load %arg10[%c2_75, %c0_76, %c0_77] : memref<9x1x16xf32, #tpu.memory_space<vmem>>, vector<1x1x16xf32>
    %165 = vector.shape_cast %164 : vector<1x1x16xf32> to vector<1x16xf32>
    %166 = vector.broadcast %165 : vector<1x16xf32> to vector<2x16xf32>
    %167 = arith.mulf %163, %166 : vector<2x16xf32>
    %c4_78 = arith.constant 4 : index
    %c0_79 = arith.constant 0 : index
    %168 = vector.load %arg12[%c4_78, %c0_79] : memref<18x16xf32, #tpu.memory_space<vmem>>, vector<2x16xf32>
    tpu.vector_store %arg12[%c4_78, %c0_79], %167 {strides = array<i32>} : memref<18x16xf32, #tpu.memory_space<vmem>>, vector<2x16xf32>,
    %c1_i32_80 = arith.constant 1 : i32
    %169 = tpu.dynamic_rotate %150 by %c1_i32_80 dim 1 : vector<2x16xf32>, i32 -> vector<2x16xf32>
    %c3_81 = arith.constant 3 : index
    %c0_82 = arith.constant 0 : index
    %c0_83 = arith.constant 0 : index
    %170 = vector.load %arg10[%c3_81, %c0_82, %c0_83] : memref<9x1x16xf32, #tpu.memory_space<vmem>>, vector<1x1x16xf32>
    %171 = vector.shape_cast %170 : vector<1x1x16xf32> to vector<1x16xf32>
    %172 = vector.broadcast %171 : vector<1x16xf32> to vector<2x16xf32>
    %173 = arith.mulf %169, %172 : vector<2x16xf32>
    %c6_84 = arith.constant 6 : index
    %c0_85 = arith.constant 0 : index
    %174 = vector.load %arg12[%c6_84, %c0_85] : memref<18x16xf32, #tpu.memory_space<vmem>>, vector<2x16xf32>
    tpu.vector_store %arg12[%c6_84, %c0_85], %173 {strides = array<i32>} : memref<18x16xf32, #tpu.memory_space<vmem>>, vector<2x16xf32>,
    %c4_86 = arith.constant 4 : index
    %c0_87 = arith.constant 0 : index
    %c0_88 = arith.constant 0 : index
    %175 = vector.load %arg10[%c4_86, %c0_87, %c0_88] : memref<9x1x16xf32, #tpu.memory_space<vmem>>, vector<1x1x16xf32>
    %176 = vector.shape_cast %175 : vector<1x1x16xf32> to vector<1x16xf32>
    %177 = vector.broadcast %176 : vector<1x16xf32> to vector<2x16xf32>
    %178 = arith.mulf %150, %177 : vector<2x16xf32>
    %c8_89 = arith.constant 8 : index
    %c0_90 = arith.constant 0 : index
    %179 = vector.load %arg12[%c8_89, %c0_90] : memref<18x16xf32, #tpu.memory_space<vmem>>, vector<2x16xf32>
    tpu.vector_store %arg12[%c8_89, %c0_90], %178 {strides = array<i32>} : memref<18x16xf32, #tpu.memory_space<vmem>>, vector<2x16xf32>,
    %c15_i32_91 = arith.constant 15 : i32
    %180 = tpu.dynamic_rotate %150 by %c15_i32_91 dim 1 : vector<2x16xf32>, i32 -> vector<2x16xf32>
    %c5_92 = arith.constant 5 : index
    %c0_93 = arith.constant 0 : index
    %c0_94 = arith.constant 0 : index
    %181 = vector.load %arg10[%c5_92, %c0_93, %c0_94] : memref<9x1x16xf32, #tpu.memory_space<vmem>>, vector<1x1x16xf32>
    %182 = vector.shape_cast %181 : vector<1x1x16xf32> to vector<1x16xf32>
    %183 = vector.broadcast %182 : vector<1x16xf32> to vector<2x16xf32>
    %184 = arith.mulf %180, %183 : vector<2x16xf32>
    %c10_95 = arith.constant 10 : index
    %c0_96 = arith.constant 0 : index
    %185 = vector.load %arg12[%c10_95, %c0_96] : memref<18x16xf32, #tpu.memory_space<vmem>>, vector<2x16xf32>
    tpu.vector_store %arg12[%c10_95, %c0_96], %184 {strides = array<i32>} : memref<18x16xf32, #tpu.memory_space<vmem>>, vector<2x16xf32>,
    %c13_i32_97 = arith.constant 13 : i32
    %186 = tpu.dynamic_rotate %150 by %c13_i32_97 dim 1 : vector<2x16xf32>, i32 -> vector<2x16xf32>
    %c6_98 = arith.constant 6 : index
    %c0_99 = arith.constant 0 : index
    %c0_100 = arith.constant 0 : index
    %187 = vector.load %arg10[%c6_98, %c0_99, %c0_100] : memref<9x1x16xf32, #tpu.memory_space<vmem>>, vector<1x1x16xf32>
    %188 = vector.shape_cast %187 : vector<1x1x16xf32> to vector<1x16xf32>
    %189 = vector.broadcast %188 : vector<1x16xf32> to vector<2x16xf32>
    %190 = arith.mulf %186, %189 : vector<2x16xf32>
    %c12_101 = arith.constant 12 : index
    %c0_102 = arith.constant 0 : index
    %191 = vector.load %arg12[%c12_101, %c0_102] : memref<18x16xf32, #tpu.memory_space<vmem>>, vector<2x16xf32>
    tpu.vector_store %arg12[%c12_101, %c0_102], %190 {strides = array<i32>} : memref<18x16xf32, #tpu.memory_space<vmem>>, vector<2x16xf32>,
    %c12_i32_103 = arith.constant 12 : i32
    %192 = tpu.dynamic_rotate %150 by %c12_i32_103 dim 1 : vector<2x16xf32>, i32 -> vector<2x16xf32>
    %c7_104 = arith.constant 7 : index
    %c0_105 = arith.constant 0 : index
    %c0_106 = arith.constant 0 : index
    %193 = vector.load %arg10[%c7_104, %c0_105, %c0_106] : memref<9x1x16xf32, #tpu.memory_space<vmem>>, vector<1x1x16xf32>
    %194 = vector.shape_cast %193 : vector<1x1x16xf32> to vector<1x16xf32>
    %195 = vector.broadcast %194 : vector<1x16xf32> to vector<2x16xf32>
    %196 = arith.mulf %192, %195 : vector<2x16xf32>
    %c14_107 = arith.constant 14 : index
    %c0_108 = arith.constant 0 : index
    %197 = vector.load %arg12[%c14_107, %c0_108] : memref<18x16xf32, #tpu.memory_space<vmem>>, vector<2x16xf32>
    tpu.vector_store %arg12[%c14_107, %c0_108], %196 {strides = array<i32>} : memref<18x16xf32, #tpu.memory_space<vmem>>, vector<2x16xf32>,
    %c11_i32_109 = arith.constant 11 : i32
    %198 = tpu.dynamic_rotate %150 by %c11_i32_109 dim 1 : vector<2x16xf32>, i32 -> vector<2x16xf32>
    %c8_110 = arith.constant 8 : index
    %c0_111 = arith.constant 0 : index
    %c0_112 = arith.constant 0 : index
    %199 = vector.load %arg10[%c8_110, %c0_111, %c0_112] : memref<9x1x16xf32, #tpu.memory_space<vmem>>, vector<1x1x16xf32>
    %200 = vector.shape_cast %199 : vector<1x1x16xf32> to vector<1x16xf32>
    %201 = vector.broadcast %200 : vector<1x16xf32> to vector<2x16xf32>
    %202 = arith.mulf %198, %201 : vector<2x16xf32>
    %c16_113 = arith.constant 16 : index
    %c0_114 = arith.constant 0 : index
    %203 = vector.load %arg12[%c16_113, %c0_114] : memref<18x16xf32, #tpu.memory_space<vmem>>, vector<2x16xf32>
    tpu.vector_store %arg12[%c16_113, %c0_114], %202 {strides = array<i32>} : memref<18x16xf32, #tpu.memory_space<vmem>>, vector<2x16xf32>,
    %c0_115 = arith.constant 0 : index
    %c0_116 = arith.constant 0 : index
    %204 = vector.load %arg6[%c0_115, %c0_116] : memref<2x18xf32, #tpu.memory_space<vmem>>, vector<2x18xf32>
    %c0_117 = arith.constant 0 : index
    %c0_118 = arith.constant 0 : index
    %205 = vector.load %arg12[%c0_117, %c0_118] : memref<18x16xf32, #tpu.memory_space<vmem>>, vector<18x16xf32>
    %cst_119 = arith.constant dense<0.000000e+00> : vector<2x16xf32>
    %206 = tpu.matmul %204, %205, %cst_119 {dimension_numbers = #tpu.dot_dimension_numbers<[1], [0], [0], [1], [0, 0, 1, 1], [], []>} : vector<2x18xf32>, vector<18x16xf32>, vector<2x16xf32> -> vector<2x16xf32>
    %c0_120 = arith.constant 0 : index
    %c0_121 = arith.constant 0 : index
    %207 = vector.load %arg7[%c0_120, %c0_121] : memref<2x1xf32, #tpu.memory_space<vmem>>, vector<2x1xf32>
    %208 = vector.broadcast %207 : vector<2x1xf32> to vector<2x16xf32>
    %209 = arith.addf %206, %208 : vector<2x16xf32>
    %cst_122 = arith.constant 0.000000e+00 : f32
    %210 = vector.broadcast %cst_122 : f32 to vector<2x16xf32>
    %211 = arith.maximumf %209, %210 : vector<2x16xf32>
    %212 = vector.extract_strided_slice %4 {offsets = [0, 0], sizes = [4, 1], strides = [1, 1]} : vector<4x2xf32> to vector<4x1xf32>
    %213 = vector.extract_strided_slice %211 {offsets = [0, 0], sizes = [1, 16], strides = [1, 1]} : vector<2x16xf32> to vector<1x16xf32>
    %214 = vector.broadcast %212 : vector<4x1xf32> to vector<4x16xf32>
    %215 = vector.broadcast %213 : vector<1x16xf32> to vector<4x16xf32>
    %216 = arith.mulf %214, %215 : vector<4x16xf32>
    %217 = vector.extract_strided_slice %4 {offsets = [0, 1], sizes = [4, 1], strides = [1, 1]} : vector<4x2xf32> to vector<4x1xf32>
    %218 = vector.extract_strided_slice %211 {offsets = [1, 0], sizes = [1, 16], strides = [1, 1]} : vector<2x16xf32> to vector<1x16xf32>
    %219 = vector.broadcast %217 : vector<4x1xf32> to vector<4x16xf32>
    %220 = vector.broadcast %218 : vector<1x16xf32> to vector<4x16xf32>
    %221 = arith.mulf %219, %220 : vector<4x16xf32>
    %222 = arith.addf %216, %221 : vector<4x16xf32>
    %223 = vector.broadcast %5 : vector<4x1xf32> to vector<4x16xf32>
    %224 = arith.addf %222, %223 : vector<4x16xf32>
    %225 = arith.addf %224, %115 : vector<4x16xf32>
    %c0_123 = arith.constant 0 : index
    %c0_124 = arith.constant 0 : index
    %c0_125 = arith.constant 0 : index
    %226 = vector.load %arg11[%c0_123, %c0_124, %c0_125] : memref<1x4x16xf32, #tpu.memory_space<vmem>>, vector<1x4x16xf32>
    %227 = vector.shape_cast %226 : vector<1x4x16xf32> to vector<4x16xf32>
    %228 = vector.shape_cast %225 : vector<4x16xf32> to vector<1x4x16xf32>
    tpu.vector_store %arg11[%c0_123, %c0_124, %c0_125], %228 {strides = array<i32>} : memref<1x4x16xf32, #tpu.memory_space<vmem>>, vector<1x4x16xf32>,
    return
  }
  func.func @transform_0(%arg0: i32) -> (i32, i32, i32) {
    %c0_i32 = arith.constant 0 : i32
    %c0_i32_0 = arith.constant 0 : i32
    %c0_i32_1 = arith.constant 0 : i32
    return %arg0, %c0_i32, %c0_i32_0 : i32, i32, i32
  }
  func.func @transform_1(%arg0: i32) -> (i32, i32) {
    %c0_i32 = arith.constant 0 : i32
    %c0_i32_0 = arith.constant 0 : i32
    %c0_i32_1 = arith.constant 0 : i32
    return %c0_i32, %c0_i32_0 : i32, i32
  }
  func.func @transform_2(%arg0: i32) -> (i32, i32) {
    %c0_i32 = arith.constant 0 : i32
    %c0_i32_0 = arith.constant 0 : i32
    %c0_i32_1 = arith.constant 0 : i32
    return %c0_i32, %c0_i32_0 : i32, i32
  }
  func.func @transform_3(%arg0: i32) -> (i32, i32) {
    %c0_i32 = arith.constant 0 : i32
    %c0_i32_0 = arith.constant 0 : i32
    %c0_i32_1 = arith.constant 0 : i32
    return %c0_i32, %c0_i32_0 : i32, i32
  }
  func.func @transform_4(%arg0: i32) -> (i32, i32) {
    %c0_i32 = arith.constant 0 : i32
    %c0_i32_0 = arith.constant 0 : i32
    %c0_i32_1 = arith.constant 0 : i32
    return %c0_i32, %c0_i32_0 : i32, i32
  }
  func.func @transform_5(%arg0: i32) -> (i32, i32) {
    %c0_i32 = arith.constant 0 : i32
    %c0_i32_0 = arith.constant 0 : i32
    %c0_i32_1 = arith.constant 0 : i32
    return %c0_i32, %c0_i32_0 : i32, i32
  }
  func.func @transform_6(%arg0: i32) -> (i32, i32) {
    %c0_i32 = arith.constant 0 : i32
    %c0_i32_0 = arith.constant 0 : i32
    %c0_i32_1 = arith.constant 0 : i32
    return %c0_i32, %c0_i32_0 : i32, i32
  }
  func.func @transform_7(%arg0: i32) -> (i32, i32) {
    %c0_i32 = arith.constant 0 : i32
    %c0_i32_0 = arith.constant 0 : i32
    %c0_i32_1 = arith.constant 0 : i32
    return %c0_i32, %c0_i32_0 : i32, i32
  }
  func.func @transform_8(%arg0: i32) -> (i32, i32) {
    %c0_i32 = arith.constant 0 : i32
    %c0_i32_0 = arith.constant 0 : i32
    %c0_i32_1 = arith.constant 0 : i32
    return %c0_i32, %c0_i32_0 : i32, i32
  }
  func.func @transform_9(%arg0: i32) -> (i32, i32, i32) {
    %c0_i32 = arith.constant 0 : i32
    %c0_i32_0 = arith.constant 0 : i32
    %c0_i32_1 = arith.constant 0 : i32
    %c0_i32_2 = arith.constant 0 : i32
    return %c0_i32, %c0_i32_0, %c0_i32_1 : i32, i32, i32
  }
  func.func @transform_10(%arg0: i32) -> (i32, i32, i32) {
    %c0_i32 = arith.constant 0 : i32
    %c0_i32_0 = arith.constant 0 : i32
    %c0_i32_1 = arith.constant 0 : i32
    return %arg0, %c0_i32, %c0_i32_0 : i32, i32, i32
  }
}

module attributes {stable_mosaic.version = 11 : i64} {
  func.func @_upsample2x_add_kernel(%arg0: i32, %arg1: memref<1x4x16xf32, #tpu.memory_space<vmem>>, %arg2: memref<1x4x64xf32, #tpu.memory_space<vmem>>, %arg3: memref<16x64xf32, #tpu.memory_space<vmem>>, %arg4: memref<1x4x64xf32, #tpu.memory_space<vmem>>) attributes {dimension_semantics = [#tpu.dimension_semantics<parallel>], iteration_bounds = array<i64: 2>, scalar_prefetch = 0 : i64, scratch_operands = 0 : i64, tpu.core_type = #tpu.core_type<tc>, window_params = [{transform_indices = @transform_0, window_bounds = array<i64: 1, 4, 16>}, {transform_indices = @transform_1, window_bounds = array<i64: 1, 4, 64>}, {pipeline_mode = #tpu.pipeline_mode<synchronous>, transform_indices = @transform_2, window_bounds = array<i64: 16, 64>}, {transform_indices = @transform_3, window_bounds = array<i64: 1, 4, 64>}]} {
    %c0 = arith.constant 0 : index
    %c0_0 = arith.constant 0 : index
    %c0_1 = arith.constant 0 : index
    %0 = vector.load %arg1[%c0, %c0_0, %c0_1] : memref<1x4x16xf32, #tpu.memory_space<vmem>>, vector<1x4x16xf32>
    %1 = vector.shape_cast %0 : vector<1x4x16xf32> to vector<4x16xf32>
    %c0_2 = arith.constant 0 : index
    %c0_3 = arith.constant 0 : index
    %2 = vector.load %arg3[%c0_2, %c0_3] : memref<16x64xf32, #tpu.memory_space<vmem>>, vector<16x64xf32>
    %cst = arith.constant dense<0.000000e+00> : vector<4x64xf32>
    %3 = tpu.matmul %1, %2, %cst {dimension_numbers = #tpu.dot_dimension_numbers<[1], [0], [0], [1], [0, 0, 1, 1], [], []>} : vector<4x16xf32>, vector<16x64xf32>, vector<4x64xf32> -> vector<4x64xf32>
    %c0_4 = arith.constant 0 : index
    %c0_5 = arith.constant 0 : index
    %c0_6 = arith.constant 0 : index
    %4 = vector.load %arg2[%c0_4, %c0_5, %c0_6] : memref<1x4x64xf32, #tpu.memory_space<vmem>>, vector<1x4x64xf32>
    %5 = vector.shape_cast %4 : vector<1x4x64xf32> to vector<4x64xf32>
    %6 = arith.addf %3, %5 : vector<4x64xf32>
    %c0_7 = arith.constant 0 : index
    %c0_8 = arith.constant 0 : index
    %c0_9 = arith.constant 0 : index
    %7 = vector.load %arg4[%c0_7, %c0_8, %c0_9] : memref<1x4x64xf32, #tpu.memory_space<vmem>>, vector<1x4x64xf32>
    %8 = vector.shape_cast %7 : vector<1x4x64xf32> to vector<4x64xf32>
    %9 = vector.shape_cast %6 : vector<4x64xf32> to vector<1x4x64xf32>
    tpu.vector_store %arg4[%c0_7, %c0_8, %c0_9], %9 {strides = array<i32>} : memref<1x4x64xf32, #tpu.memory_space<vmem>>, vector<1x4x64xf32>,
    return
  }
  func.func @transform_0(%arg0: i32) -> (i32, i32, i32) {
    %c0_i32 = arith.constant 0 : i32
    %c0_i32_0 = arith.constant 0 : i32
    %c0_i32_1 = arith.constant 0 : i32
    return %arg0, %c0_i32, %c0_i32_0 : i32, i32, i32
  }
  func.func @transform_1(%arg0: i32) -> (i32, i32, i32) {
    %c0_i32 = arith.constant 0 : i32
    %c0_i32_0 = arith.constant 0 : i32
    %c0_i32_1 = arith.constant 0 : i32
    return %arg0, %c0_i32, %c0_i32_0 : i32, i32, i32
  }
  func.func @transform_2(%arg0: i32) -> (i32, i32) {
    %c0_i32 = arith.constant 0 : i32
    %c0_i32_0 = arith.constant 0 : i32
    %c0_i32_1 = arith.constant 0 : i32
    return %c0_i32, %c0_i32_0 : i32, i32
  }
  func.func @transform_3(%arg0: i32) -> (i32, i32, i32) {
    %c0_i32 = arith.constant 0 : i32
    %c0_i32_0 = arith.constant 0 : i32
    %c0_i32_1 = arith.constant 0 : i32
    return %arg0, %c0_i32, %c0_i32_0 : i32, i32, i32
  }
}

module attributes {stable_mosaic.version = 11 : i64} {
  func.func @_upsample2x_add_kernel(%arg0: i32, %arg1: memref<1x4x64xf32, #tpu.memory_space<vmem>>, %arg2: memref<1x4x256xf32, #tpu.memory_space<vmem>>, %arg3: memref<64x256xf32, #tpu.memory_space<vmem>>, %arg4: memref<1x4x256xf32, #tpu.memory_space<vmem>>) attributes {dimension_semantics = [#tpu.dimension_semantics<parallel>], iteration_bounds = array<i64: 2>, scalar_prefetch = 0 : i64, scratch_operands = 0 : i64, tpu.core_type = #tpu.core_type<tc>, window_params = [{transform_indices = @transform_0, window_bounds = array<i64: 1, 4, 64>}, {transform_indices = @transform_1, window_bounds = array<i64: 1, 4, 256>}, {pipeline_mode = #tpu.pipeline_mode<synchronous>, transform_indices = @transform_2, window_bounds = array<i64: 64, 256>}, {transform_indices = @transform_3, window_bounds = array<i64: 1, 4, 256>}]} {
    %c0 = arith.constant 0 : index
    %c0_0 = arith.constant 0 : index
    %c0_1 = arith.constant 0 : index
    %0 = vector.load %arg1[%c0, %c0_0, %c0_1] : memref<1x4x64xf32, #tpu.memory_space<vmem>>, vector<1x4x64xf32>
    %1 = vector.shape_cast %0 : vector<1x4x64xf32> to vector<4x64xf32>
    %c0_2 = arith.constant 0 : index
    %c0_3 = arith.constant 0 : index
    %2 = vector.load %arg3[%c0_2, %c0_3] : memref<64x256xf32, #tpu.memory_space<vmem>>, vector<64x256xf32>
    %cst = arith.constant dense<0.000000e+00> : vector<4x256xf32>
    %3 = tpu.matmul %1, %2, %cst {dimension_numbers = #tpu.dot_dimension_numbers<[1], [0], [0], [1], [0, 0, 1, 1], [], []>} : vector<4x64xf32>, vector<64x256xf32>, vector<4x256xf32> -> vector<4x256xf32>
    %c0_4 = arith.constant 0 : index
    %c0_5 = arith.constant 0 : index
    %c0_6 = arith.constant 0 : index
    %4 = vector.load %arg2[%c0_4, %c0_5, %c0_6] : memref<1x4x256xf32, #tpu.memory_space<vmem>>, vector<1x4x256xf32>
    %5 = vector.shape_cast %4 : vector<1x4x256xf32> to vector<4x256xf32>
    %6 = arith.addf %3, %5 : vector<4x256xf32>
    %c0_7 = arith.constant 0 : index
    %c0_8 = arith.constant 0 : index
    %c0_9 = arith.constant 0 : index
    %7 = vector.load %arg4[%c0_7, %c0_8, %c0_9] : memref<1x4x256xf32, #tpu.memory_space<vmem>>, vector<1x4x256xf32>
    %8 = vector.shape_cast %7 : vector<1x4x256xf32> to vector<4x256xf32>
    %9 = vector.shape_cast %6 : vector<4x256xf32> to vector<1x4x256xf32>
    tpu.vector_store %arg4[%c0_7, %c0_8, %c0_9], %9 {strides = array<i32>} : memref<1x4x256xf32, #tpu.memory_space<vmem>>, vector<1x4x256xf32>,
    return
  }
  func.func @transform_0(%arg0: i32) -> (i32, i32, i32) {
    %c0_i32 = arith.constant 0 : i32
    %c0_i32_0 = arith.constant 0 : i32
    %c0_i32_1 = arith.constant 0 : i32
    return %arg0, %c0_i32, %c0_i32_0 : i32, i32, i32
  }
  func.func @transform_1(%arg0: i32) -> (i32, i32, i32) {
    %c0_i32 = arith.constant 0 : i32
    %c0_i32_0 = arith.constant 0 : i32
    %c0_i32_1 = arith.constant 0 : i32
    return %arg0, %c0_i32, %c0_i32_0 : i32, i32, i32
  }
  func.func @transform_2(%arg0: i32) -> (i32, i32) {
    %c0_i32 = arith.constant 0 : i32
    %c0_i32_0 = arith.constant 0 : i32
    %c0_i32_1 = arith.constant 0 : i32
    return %c0_i32, %c0_i32_0 : i32, i32
  }
  func.func @transform_3(%arg0: i32) -> (i32, i32, i32) {
    %c0_i32 = arith.constant 0 : i32
    %c0_i32_0 = arith.constant 0 : i32
    %c0_i32_1 = arith.constant 0 : i32
    return %arg0, %c0_i32, %c0_i32_0 : i32, i32, i32
  }
}

</mosaic_0001>

<bundles_post_ra>
// kernel: hourglass_forward.12
= control target key start
LH: loop header
LB: loop body
LE: loop exit
PB: predicated region body
PF: predicated region fallthrough
CT: control target
= control target key end

     0   :  { %s457_s9 = smov 0   ;;  %s582_s0 = inlined_call_operand.vmem [shape: f32[2,4,256], index: 0, kind: input, shape index: {}]   ;;  %s583_s1 = inlined_call_operand.vmem [shape: f32[256,64], index: 1, kind: input, shape index: {}]   ;;  %s584_s2 = inlined_call_operand.vmem [shape: f32[2,4,64], index: 2, kind: output, shape index: {}]  }
   0x1 LB: > { %s341_s10 = sadd.s32 4294967295, %s437_s9   ;;  %p345_p0 = scmp.ge.s32.totalorder %s437_s9, 1  ;;  %s437_s9 = sphi %s457_s9, %s12_s9  }
   0x2   : > { %p112_p1 = scmp.lt.s32.totalorder %s437_s9, 3 }
   0x4   : > { %p113_p2 = pnand %p345_p0, %p112_p1 }
   0x5   : > { %p133_p3 = scmp.lt.s32.totalorder (!%p113_p2), %s341_s10, 1  ;;  %v197_v0 = vld [vmem:[%s583_s1 + $0x80] sm:$0xff] (!%p113_p2)  ;;  %v198_v1 = vld [vmem:[%s583_s1 + $0x88] sm:$0xff] (!%p113_p2)  ;;  %v199_v5 = vld [vmem:[%s583_s1 + $0x90] sm:$0xff] (!%p113_p2)  ;;  %s439_s17 = smov (!%p113_p2), 112   ;;  %v150_v50 = vlaneseq (!%p113_p2)  ;;  %vm286_vm3 = vcmask (!%p113_p2), 519168  }
   0x6   : > { %116 = sbr.rel (%p113_p2) target bundleno = 366 (0x16e), region = 28  ;;  %v181_v2 = vld [vmem:[%s583_s1] sm:$0xff] (!%p113_p2)  ;;  %v387_v3 = vpack.c.bf16 (!%p113_p2), %v198_v1, %v197_v0  ;;  %v182_v4 = vld [vmem:[%s583_s1 + $0x8] sm:$0xff] (!%p113_p2)  ;;  %v200_v6 = vld [vmem:[%s583_s1 + $0x98] sm:$0xff] (!%p113_p2)  ;;  %s440_s18 = smov (!%p113_p2), 127  }
   0x7   : > { %v389_v7 = vpack.c.bf16 (!%p113_p2), %v182_v4, %v181_v2  ;;  %v391_v8 = vpack.c.bf16 (!%p113_p2), %v200_v6, %v199_v5  ;;  %v183_v9 = vld [vmem:[%s583_s1 + $0x10] sm:$0xff] (!%p113_p2)  ;;  %v184_v10 = vld [vmem:[%s583_s1 + $0x18] sm:$0xff] (!%p113_p2)  ;;  %v201_v11 = vld [vmem:[%s583_s1 + $0xa0] sm:$0xff] (!%p113_p2)  ;;  %s441_s7 = smov (!%p113_p2), 111   ;;  %v151_v51 = vand.u32 (!%p113_p2), 127, %v150_v50 }
   0x8   : > { %388 = vmatprep.subr.bf16.mxu0 (!%p113_p2), %v387_v3  ;;  %v202_v12 = vld [vmem:[%s583_s1 + $0xa8] sm:$0xff] (!%p113_p2)  ;;  %v393_v13 = vpack.c.bf16 (!%p113_p2), %v184_v10, %v183_v9  ;;  %v185_v15 = vld [vmem:[%s583_s1 + $0x20] sm:$0xff] (!%p113_p2)  ;;  %v203_v18 = vld [vmem:[%s583_s1 + $0xb0] sm:$0xff] (!%p113_p2) }
   0x9   : > { %390 = vmatpush3.bf16.msra.mxu0 (!%p113_p2), %v389_v7  ;;  %v395_v14 = vpack.c.bf16 (!%p113_p2), %v202_v12, %v201_v11  ;;  %v186_v16 = vld [vmem:[%s583_s1 + $0x28] sm:$0xff] (!%p113_p2)  ;;  %v204_v19 = vld [vmem:[%s583_s1 + $0xb8] sm:$0xff] (!%p113_p2)  ;;  %v187_v23 = vld [vmem:[%s583_s1 + $0x30] sm:$0xff] (!%p113_p2)  ;;  %vm152_vm0 = vcmp.lt.s32.totalorder (!%p113_p2), %v151_v51, 127  ;;  %vm164_vm1 = vcmp.lt.s32.totalorder (!%p113_p2), %v151_v51, 112  ;;  %vm171_vm2 = vcmp.lt.s32.totalorder (!%p113_p2), %v151_v51, 111 }
   0xa   : > { %392 = vmatprep.subr.bf16.mxu0 (!%p113_p2), %v391_v8  ;;  %v397_v21 = vpack.c.bf16 (!%p113_p2), %v186_v16, %v185_v15  ;;  %v399_v22 = vpack.c.bf16 (!%p113_p2), %v204_v19, %v203_v18  ;;  %v188_v24 = vld [vmem:[%s583_s1 + $0x38] sm:$0xff] (!%p113_p2)  ;;  %v205_v25 = vld [vmem:[%s583_s1 + $0xc0] sm:$0xff] (!%p113_p2)  ;;  %v206_v26 = vld [vmem:[%s583_s1 + $0xc8] sm:$0xff] (!%p113_p2) }
   0xb   : > { %v401_v27 = vpack.c.bf16 (!%p113_p2), %v188_v24, %v187_v23  ;;  %v403_v28 = vpack.c.bf16 (!%p113_p2), %v206_v26, %v205_v25  ;;  %v189_v29 = vld [vmem:[%s583_s1 + $0x40] sm:$0xff] (!%p113_p2)  ;;  %v190_v30 = vld [vmem:[%s583_s1 + $0x48] sm:$0xff] (!%p113_p2)  ;;  %v207_v31 = vld [vmem:[%s583_s1 + $0xd0] sm:$0xff] (!%p113_p2) }
   0xc   : > { %v208_v32 = vld [vmem:[%s583_s1 + $0xd8] sm:$0xff] (!%p113_p2)  ;;  %v405_v33 = vpack.c.bf16 (!%p113_p2), %v190_v30, %v189_v29  ;;  %v191_v35 = vld [vmem:[%s583_s1 + $0x50] sm:$0xff] (!%p113_p2)  ;;  %v209_v37 = vld [vmem:[%s583_s1 + $0xe0] sm:$0xff] (!%p113_p2) }
   0xd   : > { %s586_s10 = smov (!%p133_p3, %s341_s10), 1  ;;  %394 = vmatpush3.bf16.msra.mxu0 %v393_v13  ;;  %v407_v34 = vpack.c.bf16 %v208_v32, %v207_v31  ;;  %v192_v36 = vld [vmem:[%s583_s1 + $0x58] sm:$0xff]  ;;  %v210_v38 = vld [vmem:[%s583_s1 + $0xe8] sm:$0xff]  ;;  %v193_v41 = vld [vmem:[%s583_s1 + $0x60] sm:$0xff] }
   0xe   : > { %s351_s3 = sshll.u32 %s586_s10, 3  ;;  %396 = vmatprep.subr.bf16.mxu0 %v395_v14  ;;  %v409_v39 = vpack.c.bf16 %v192_v36, %v191_v35  ;;  %v411_v40 = vpack.c.bf16 %v210_v38, %v209_v37  ;;  %v194_v42 = vld [vmem:[%s583_s1 + $0x68] sm:$0xff]  ;;  %v211_v43 = vld [vmem:[%s583_s1 + $0xf0] sm:$0xff]  ;;  %v212_v44 = vld [vmem:[%s583_s1 + $0xf8] sm:$0xff]  ;;  %s348_s30 = sshll.u32 %s586_s10, 2 }
   0xf   : > { %s137_s6 = scalar_lea.vmem %s582_s0, %s351_s3  ;;  %v413_v45 = vpack.c.bf16 %v194_v42, %v193_v41  ;;  %v415_v46 = vpack.c.bf16 %v212_v44, %v211_v43  ;;  %v195_v47 = vld [vmem:[%s583_s1 + $0x70] sm:$0xff]  ;;  %v196_v48 = vld [vmem:[%s583_s1 + $0x78] sm:$0xff]  ;;  %s141_s5 = scalar_lea.vmem %s584_s2, %s348_s30 }
  0x10   : > { %v507_v17 = vld [vmem:[%s137_s6] sm:$0xff]  ;;  %v417_v49 = vpack.c.bf16 %v196_v48, %v195_v47 }
  0x11   : > { %160 = vrot.lane.b32.xlu1 %v507_v17, %s439_s17  ;;  %146 = vrot.lane.b32.xlu0 %v507_v17, %s440_s18  ;;  %v144_v20 = vcombine.high %v507_v17, %v507_v17 }
  0x12   : > { %398 = vmatpush3.bf16.msra.mxu0 %v397_v21 }
  0x13   : > { %400 = vmatprep.subr.bf16.mxu0 %v399_v22 }
  0x15   : > { %162 = vrot.lane.b32.xlu1 %v144_v20, %s439_s17  ;;  %148 = vrot.lane.b32.xlu0 %v144_v20, %s440_s18 }
  0x16   : > { %402 = vmatpush3.bf16.msra.mxu0 %v401_v27 }
  0x17   : > { %404 = vmatprep.subr.bf16.mxu0 %v403_v28 }
  0x19   : > { %169 = vrot.lane.b32.xlu1 %v144_v20, %s441_s7  ;;  %167 = vrot.lane.b32.xlu0 %v507_v17, %s441_s7 }
  0x1a   : > { %406 = vmatpush3.bf16.msra.mxu0 %v405_v33 }
  0x1b   : > { %408 = vmatprep.subr.bf16.mxu0 %v407_v34 }
  0x1e   : > { %410 = vmatpush3.bf16.msra.mxu0 %v409_v39 }
  0x1f   : > { %412 = vmatprep.subr.bf16.mxu0 %v411_v40 }
  0x22   : > { %414 = vmatpush3.bf16.msra.mxu0 %v413_v45 }
  0x23   : > { %416 = vmatprep.subr.bf16.mxu0 %v415_v46 }
  0x26   : > { %418 = vmatpush3.bf16.msra.mxu0 %v417_v49 }
  0x83   : > { %v161_v52 = vpop.permute.xlu1 %160  ;;  %v147_v53 = vpop.permute.xlu0 %146 }
  0x87   : > { %v163_v54 = vpop.permute.xlu1 %162  ;;  %v149_v55 = vpop.permute.xlu0 %148 }
  0x88   : > { %v153_v56 = vsel %vm152_vm0, %v147_v53, %v149_v55  ;;  %v154_v57 = vsel %vm152_vm0, %v149_v55, %v147_v53  ;;  %v165_v61 = vsel %vm164_vm1, %v161_v52, %v163_v54  ;;  %v166_v62 = vsel %vm164_vm1, %v163_v54, %v161_v52 }
  0x89   : > { %v157_v58 = vcombine.low %v153_v56, %v154_v57 }
  0x8b   : > { %v170_v59 = vpop.permute.xlu1 %169  ;;  %v168_v60 = vpop.permute.xlu0 %167  ;;  %v159_v3 = vmax.f32 %v507_v17, %v157_v58 }
  0x8c   : > { %v172_v63 = vsel %vm171_vm2, %v168_v60, %v170_v59  ;;  %v173_v0 = vsel %vm171_vm2, %v170_v59, %v168_v60 }
  0x8d   : > { %v174_v1 = vmax.f32 %v165_v61, %v172_v63  ;;  %v175_v2 = vmax.f32 %v166_v62, %v173_v0 }
  0x8f   : > { %v178_v4 = vcombine.low %v174_v1, %v175_v2 }
  0x91   : > { %v180_v5 = vmax.f32 %v159_v3, %v178_v4 }
  0x93   : > { %v214_v6 = vcombine.high %v180_v5, %v180_v5 }
  0x95   : > { %280 = vmatprep.mubr.f32.mxu0 %v214_v6 }
  0x96   : > { %281 = vmatmul.mubr.f32.vlgmr.msra.gmra.mrb[0].mxu0 %v180_v5 }
 0x169   : > { %v384_v7 = vpop.f32.mrb[0].mxu0 }
 0x16a   : > { %v385_v8 = vpop.f32.mrb[1].mxu0 }
 0x16b   : > { %v386_v9 = vadd.f32 %v385_v8, %v384_v7 }
 0x16d   : > { %287 = vst.msk [vmem:[%s141_s5] sm:$0xf] %vm286_vm3, %v386_v9 }
 0x16e PF: > { %s12_s9 = sadd.s32 1, %s437_s9  }
 0x16f   : > { %p9_p4 = scmp.ge.s32.totalorder %s12_s9, 4  }
 0x171   :  { %11 = sbr.rel (!%p9_p4) target bundleno = 1 (0x1), region = 58 }

// kernel: hourglass_forward.15
= control target key start
LH: loop header
LB: loop body
LE: loop exit
PB: predicated region body
PF: predicated region fallthrough
CT: control target
= control target key end

     0   :  { %s388_s9 = smov 0   ;;  %s438_s0 = inlined_call_operand.vmem [shape: f32[2,4,64], index: 0, kind: input, shape index: {}]   ;;  %s439_s1 = inlined_call_operand.vmem [shape: f32[64,16], index: 1, kind: input, shape index: {}]   ;;  %s440_s2 = inlined_call_operand.vmem [shape: f32[2,4,16], index: 2, kind: output, shape index: {}]  }
   0x1 LB: > { %s295_s10 = sadd.s32 4294967295, %s365_s9   ;;  %p299_p0 = scmp.ge.s32.totalorder %s365_s9, 1  ;;  %s365_s9 = sphi %s388_s9, %s12_s9  }
   0x2   : > { %p111_p1 = scmp.lt.s32.totalorder %s365_s9, 3 }
   0x4   : > { %p112_p2 = pnand %p299_p0, %p111_p1 }
   0x5   : > { %p131_p3 = scmp.lt.s32.totalorder (!%p112_p2), %s295_s10, 1  ;;  %s367_s15 = smov (!%p112_p2), 64   ;;  %vm140_vm0 = vcmask (!%p112_p2), 1048064   ;;  %v158_v3 = vld [vmem:[%s439_s1] sm:$0xff] (!%p112_p2)  ;;  %v159_v4 = vld [vmem:[%s439_s1 + $0x8] sm:$0xff] (!%p112_p2)  ;;  %v160_v5 = vld [vmem:[%s439_s1 + $0x10] sm:$0xff] (!%p112_p2) }
   0x6   : > { %115 = sbr.rel (%p112_p2) target bundleno = 696 (0x2b8), region = 28  ;;  %v368_v6 = vmov (!%p112_p2), 0.0|0.0   ;;  %v334_v7 = vpack.c.bf16 (!%p112_p2), %v159_v4, %v158_v3  ;;  %v161_v8 = vld [vmem:[%s439_s1 + $0x18] sm:$0xff] (!%p112_p2)  ;;  %v162_v10 = vld [vmem:[%s439_s1 + $0x20] sm:$0xff] (!%p112_p2)  ;;  %v163_v11 = vld [vmem:[%s439_s1 + $0x28] sm:$0xff] (!%p112_p2)  ;;  %s369_s4 = smov (!%p112_p2), 127  }
   0x7   : > { %333 = vmatprep.subr.bf16.mxu0 (!%p112_p2), %v368_v6  ;;  %v337_v9 = vpack.c.bf16 (!%p112_p2), %v161_v8, %v160_v5  ;;  %v340_v12 = vpack.c.bf16 (!%p112_p2), %v163_v11, %v162_v10  ;;  %v164_v13 = vld [vmem:[%s439_s1 + $0x30] sm:$0xff] (!%p112_p2)  ;;  %v165_v14 = vld [vmem:[%s439_s1 + $0x38] sm:$0xff] (!%p112_p2)  ;;  %vm370_vm1 = vmmov (!%p112_p2), 0   ;;  %v371_v18 = vmov (!%p112_p2), 0.0   ;;  %s372_s5 = smov (!%p112_p2), 120  }
   0x8   : > { %335 = vmatpush3.bf16.msra.mxu0 (!%p112_p2), %v334_v7  ;;  %v343_v17 = vpack.c.bf16 (!%p112_p2), %v165_v14, %v164_v13  ;;  %330 = vmatprep.mubr.msk.f32.mxu0 (!%p112_p2), %vm370_vm1, %v371_v18  ;;  %vm166_vm2 = vcmask (!%p112_p2), 523264   ;;  %vm240_vm3 = vcmask (!%p112_p2), 125952  }
   0x9   : > { %336 = vmatprep.subr.bf16.mxu0 (!%p112_p2), %v368_v6 }
   0xc   : > { %338 = vmatpush3.bf16.msra.mxu0 (!%p112_p2), %v337_v9 }
   0xd   : > { %s442_s10 = smov (!%p131_p3, %s295_s10), 1  ;;  %339 = vmatprep.subr.bf16.mxu0 %v368_v6 }
   0xe   : > { %s300_s11 = sshll.u32 %s442_s10, 2 }
   0xf   : > { %s134_s14 = scalar_lea.vmem %s438_s0, %s300_s11  ;;  %s138_s8 = scalar_lea.vmem %s440_s2, %s300_s11 }
  0x10   : > { %v139_v0 = vld [vmem:[%s134_s14] sm:$0xf]  ;;  %341 = vmatpush3.bf16.msra.mxu0 %v340_v12 }
  0x11   : > { %141 = vrot.lane.b32.xlu0 %v139_v0, %s367_s15  ;;  %342 = vmatprep.subr.bf16.mxu0 %v368_v6 }
  0x14   : > { %344 = vmatpush3.bf16.msra.mxu0 %v343_v17 }
  0x83   : > { %v142_v1 = vpop.permute.xlu0 %141 }
  0x84   : > { %v143_v2 = vsel %vm140_vm0, %v142_v1, %v139_v0 }
  0x85   : > { %144 = vrot.lane.b32.xlu0 %v143_v2, %s367_s15 }
  0xf7   : > { %v145_v15 = vpop.permute.xlu0 %144 }
  0xf8   : > { %v146_v16 = vsel %vm140_vm0, %v145_v15, %v139_v0 }
  0xf9   : > { %148 = vrot.lane.b32.xlu1 %v146_v16, %s369_s4 }
 0x16b   : > { %v149_v19 = vpop.permute.xlu1 %148 }
 0x16c   : > { %v152_v20 = vmax.f32 %v146_v16, %v149_v19  ;;  %v151_v21 = vmax.f32 %v139_v0, %v149_v19 }
 0x16e   : > { %154 = vrot.lane.b32.xlu1 %v152_v20, %s372_s5 }
 0x1e0   : > { %v155_v22 = vpop.permute.xlu1 %154 }
 0x1e1   : > { %v157_v23 = vmax.f32 %v151_v21, %v155_v22 }
 0x1e3   : > { %331 = vmatmul.mubr.msk.f32.vlgmr.msra.gmra.mrb[0].mxu0 %vm166_vm2, %v157_v23 }
 0x2b6   : > { %v236_v24 = vpop.f32.mrb[0].mxu0 }
 0x2b7   : > { %241 = vst.msk [vmem:[%s138_s8] sm:$0xf] %vm240_vm3, %v236_v24  ;;  %v332_v25 = vpop.f32.mrb[1].mxu0 }
 0x2b8 PF: > { %s12_s9 = sadd.s32 1, %s365_s9  }
 0x2b9   : > { %p9_p4 = scmp.ge.s32.totalorder %s12_s9, 4  }
 0x2bb   :  { %11 = sbr.rel (!%p9_p4) target bundleno = 1 (0x1), region = 58 }

// kernel: hourglass_forward.13
= control target key start
LH: loop header
LB: loop body
LE: loop exit
PB: predicated region body
PF: predicated region fallthrough
CT: control target
= control target key end

     0   :  { %s1220_s13 = smov 0   ;;  %s1486_s0 = inlined_call_operand.vmem [shape: f32[2,4,64], index: 0, kind: input, shape index: {}]   ;;  %s1487_s1 = inlined_call_operand.vmem [shape: f32[4,1], index: 1, kind: input, shape index: {}]   ;;  %s1488_s2 = inlined_call_operand.vmem [shape: f32[4,1], index: 2, kind: input, shape index: {}]   ;;  %s1489_s3 = inlined_call_operand.vmem [shape: f32[2,4], index: 3, kind: input, shape index: {}]   ;;  %s1490_s4 = inlined_call_operand.vmem [shape: f32[2,1], index: 4, kind: input, shape index: {}]   ;;  %s1491_s5 = inlined_call_operand.vmem [shape: f32[2,18], index: 5, kind: input, shape index: {}]   ;;  %s1492_s6 = inlined_call_operand.vmem [shape: f32[2,1], index: 6, kind: input, shape index: {}]   ;;  %s1493_s7 = inlined_call_operand.vmem [shape: f32[4,2], index: 7, kind: input, shape index: {}]   ;;  %s1494_s8 = inlined_call_operand.vmem [shape: f32[4,1], index: 8, kind: input, shape index: {}]   ;;  %s1495_s9 = inlined_call_operand.vmem [shape: f32[9,1,64], index: 9, kind: input, shape index: {}]   ;;  %s1496_s10 = inlined_call_operand.vmem [shape: f32[2,4,64], index: 10, kind: output, shape index: {}]  }
   0x1 LB: > { %s1013_s14 = sadd.s32 4294967295, %s1139_s13   ;;  %p1017_p0 = scmp.ge.s32.totalorder %s1139_s13, 1  ;;  %s1139_s13 = sphi %s1220_s13, %s20_s13  }
   0x2   : > { %p311_p1 = scmp.lt.s32.totalorder %s1139_s13, 3 }
   0x4   : > { %p312_p2 = pnand %p1017_p0, %p311_p1 }
   0x5   : > { %v360_v0 = vld [vmem:[%s1487_s1] sm:$0xf] (!%p312_p2)  ;;  %v1141_v2 = vmov (!%p312_p2), 0   ;;  %v1142_v4 = vmov (!%p312_p2), 1   ;;  %v1143_v5 = vmov (!%p312_p2), 2   ;;  %v1144_v6 = vmov (!%p312_p2), 3  }
   0x6   : > { %315 = sbr.rel (%p312_p2) target bundleno = 1382 (0x566), region = 60  ;;  %v356_v1 = vld [vmem:[%s1489_s3] sm:$0x3] (!%p312_p2)  ;;  %1125 = vset.pattern.permute.xlu1 (!%p312_p2), %v1141_v2  ;;  %1124 = vset.pattern.permute.xlu0 (!%p312_p2), %v1141_v2  ;;  %s1145_s25 = smov (!%p312_p2), 56   ;;  %v1255_v9 = vld [vmem:[%s1495_s9 + $0x3] ss:$0 sm:$0xff] (!%p312_p2)  ;;  %v380_v10 = vlaneseq (!%p312_p2) }
   0x7   : > { %363 = vperm.xlu0 (!%p312_p2), %1124, %v360_v0   ;;  %377 = vperm.xlu1 (!%p312_p2), %1125, %v356_v1   ;;  %v367_v3 = vld [vmem:[%s1488_s2] sm:$0xf] (!%p312_p2)  ;;  %s1146_s28 = smov (!%p312_p2), 63   ;;  %p347_p3 = scmp.lt.s32.totalorder (!%p312_p2), %s1013_s14, 1  ;;  %v1308_v39 = vld [vmem:[%s1495_s9 + $0x4] ss:$0 sm:$0xff] (!%p312_p2) }
   0x8   : > { %v357_v7 = vld [vmem:[%s1490_s4] sm:$0x3] (!%p312_p2)  ;;  %v1275_v14 = vshrl.u32 (!%p312_p2), %v380_v10, 7  ;;  %vm443_vm0 = vcmask (!%p312_p2), 517120   ;;  %s1147_s17 = smov (!%p312_p2), 64   ;;  %s1148_s20 = smov (!%p312_p2), 55  }
   0x9   : > { %v1248_v8 = vld [vmem:[%s1495_s9 + $0x1] ss:$0 sm:$0xff] (!%p312_p2)  ;;  %v1315_v42 = vld [vmem:[%s1495_s9] ss:$0 sm:$0xff] (!%p312_p2)  ;;  %v1323_v43 = vld [vmem:[%s1495_s9 + $0x2] ss:$0 sm:$0xff] (!%p312_p2) }
   0xa   : > { %v1279_v18 = vsub.s32 (!%p312_p2), 0, %v1275_v14  ;;  %v1282_v19 = vsub.s32 (!%p312_p2), 1, %v1275_v14  ;;  %v401_v20 = vsub.s32 (!%p312_p2), 2, %v1275_v14  ;;  %v411_v23 = vsub.s32 (!%p312_p2), 3, %v1275_v14  ;;  %s1149_s23 = smov (!%p312_p2), 57   ;;  %s1150_s27 = smov (!%p312_p2), 1  }
   0xb   : > { %370 = vperm.xlu0 (!%p312_p2), %1124, %v367_v3   ;;  %1126 = vset.pattern.permute.xlu1 (!%p312_p2), %v1142_v4  ;;  %v1330_v44 = vld [vmem:[%s1495_s9 + $0x5] ss:$0 sm:$0xff] (!%p312_p2)  ;;  %v1337_v45 = vld [vmem:[%s1495_s9 + $0x7] ss:$0 sm:$0xff] (!%p312_p2)  ;;  %vm422_vm1 = vcmask (!%p312_p2), 1048064   ;;  %s1152_s18 = smov (!%p312_p2), 7  }
   0xc   : > { %386 = vperm.xlu1 (!%p312_p2), %1126, %v356_v1   ;;  %v1346_v48 = vld [vmem:[%s1495_s9 + $0x6] ss:$0 sm:$0xff] (!%p312_p2)  ;;  %v1353_v49 = vld [vmem:[%s1495_s9 + $0x8] ss:$0 sm:$0xff] (!%p312_p2)  ;;  %s1153_s22 = smov (!%p312_p2), 9   ;;  %s1154_s24 = smov (!%p312_p2), 72  }
   0xd   : > { %s1514_s14 = smov (!%p347_p3, %s1013_s14), 1  ;;  %s1504_s26 = smov 73   ;;  %v1156_v60 = vmov 0.0|0.0   ;;  %vm1163_vm2 = vmmov 0   ;;  %v1164_v10 = vmov 0.0   ;;  %vm581_vm3 = vcmask 1041408  }
   0xe   : > { %s1497_s29 = sshll.u32 %s1514_s14, 2  ;;  %1086 = vmatprep.subr.bf16.mxu0 %v1156_v60  ;;  %1089 = vmatprep.subr.bf16.mxu1 %v1156_v60  ;;  %s1502_s30 = smov 65   ;;  %vm577_vm4 = vcmask 146432   ;;  %vm958_vm5 = vcmask 519168  }
   0xf   : > { %1127 = vset.pattern.permute.xlu0 %v1143_v5  ;;  %s350_s12 = scalar_lea.vmem %s1486_s0, %s1497_s29  ;;  %s1498_s11 = smov 71   ;;  %1074 = vmatprep.mubr.msk.f32.mxu0 %vm1163_vm2, %v1164_v10 }
  0x10   : > { %1128 = vset.pattern.permute.xlu1 %v1144_v6  ;;  %396 = vperm.xlu0 %1127, %v356_v1   ;;  %v1271_v12 = vld [vmem:[%s350_s12] sm:$0xf]  ;;  %s1151_s12 = smov 8   ;;  %s1499_s15 = smov 121  }
  0x11   : > { %406 = vperm.xlu1 %1128, %v356_v1   ;;  %s1500_s16 = smov 127   ;;  %s1501_s19 = smov 119   ;;  %1083 = vmatprep.mubr.msk.f32.mxu1 %vm1163_vm2, %v1164_v10 }
  0x12   : > { %s1503_s21 = smov 120  }
  0x14   : > { %1130 = vset.pattern.permute.xlu0 %v1141_v2 }
  0x15   : > { %1129 = vset.pattern.permute.xlu1 %v1141_v2 }
  0x16   : > { %417 = vperm.xlu1 %1129, %v357_v7   ;;  %v358_v7 = vld [vmem:[%s1493_s7] sm:$0xf] }
  0x1a   : > { %452 = vrot.lane.b32.xlu1 %v1248_v8, %s1145_s25 }
  0x1e   : > { %484 = vrot.lane.b32.xlu1 %v1255_v9, %s1146_s28 }
  0x86   : > { %v364_v11 = vpop.permute.xlu0 %363  ;;  %v1273_v13 = vpop.permute.xlu1 %377 }
  0x87   : > { %v366_v15 = vmul.f32 %v364_v11, %v1271_v12  ;;  %v571_v11 = vld [vmem:[%s1492_s6] sm:$0x3] }
  0x8a   : > { %v371_v16 = vpop.permute.xlu0 %370 }
  0x8b   : > { %v373_v17 = vadd.f32 %v371_v16, %v366_v15  ;;  %v1285_v21 = vpop.permute.xlu1 %386  ;;  %v359_v15 = vld [vmem:[%s1494_s8] sm:$0xf] }
  0x8c   : > { %v690_v16 = vld [vmem:[%s1488_s2] sm:$0xf] }
  0x8d   : > { %v374_v22 = vmax.f32 %v373_v17, 0.0  ;;  %v683_v17 = vld [vmem:[%s1487_s1] sm:$0xf] }
  0x8f   : > { %v383_v24 = vrot.slane %v374_v22, %v1279_v18  ;;  %v392_v25 = vrot.slane %v374_v22, %v1282_v19  ;;  %v402_v26 = vrot.slane %v374_v22, %v401_v20  ;;  %v1292_v27 = vpop.permute.xlu0 %396  ;;  %v412_v30 = vrot.slane %v374_v22, %v411_v23 }
  0x90   : > { %v1298_v31 = vpop.permute.xlu1 %406 }
  0x91   : > { %v384_v28 = vmul.f32 %v383_v24, %v1273_v13  ;;  %v393_v29 = vmul.f32 %v392_v25, %v1285_v21  ;;  %v403_v33 = vmul.f32 %v402_v26, %v1292_v27  ;;  %v413_v35 = vmul.f32 %v412_v30, %v1298_v31 }
  0x93   : > { %v394_v32 = vadd.f32 %v393_v29, %v384_v28 }
  0x95   : > { %v404_v34 = vadd.f32 %v403_v33, %v394_v32  ;;  %v1302_v36 = vpop.permute.xlu1 %417  ;;  %v567_v32 = vld [vmem:[%s1491_s5] sm:$0x3] }
  0x97   : > { %v414_v37 = vadd.f32 %v413_v35, %v404_v34 }
  0x99   : > { %v420_v38 = vadd.f32 %v1302_v36, %v414_v37  ;;  %v453_v50 = vpop.permute.xlu1 %452 }
  0x9b   : > { %v421_v40 = vmax.f32 %v420_v38, 0.0 }
  0x9d   : > { %v501_v41 = vmul.f32 %v1308_v39, %v421_v40  ;;  %423 = vrot.lane.b32.xlu0 %v421_v40, %s1147_s17  ;;  %v485_v52 = vpop.permute.xlu1 %484 }
  0x9f   : > { %502 = vst.msk [vmem:[#allocation2 + $0x8] sm:$0x3] %vm443_vm0, %v501_v41 }
  0xa1   : > { %435 = vrot.lane.b32.xlu0 %v1315_v42, %s1148_s20 }
  0xa5   : > { %468 = vrot.lane.b32.xlu0 %v1323_v43, %s1149_s23 }
  0xa9   : > { %510 = vrot.lane.b32.xlu0 %v1330_v44, %s1150_s27 }
  0xad   : > { %542 = vrot.lane.b32.xlu0 %v1337_v45, %s1151_s12 }
 0x10f   : > { %v424_v46 = vpop.permute.xlu0 %423 }
 0x110   : > { %v425_v47 = vsel %vm422_vm1, %v424_v46, %v421_v40 }
 0x111   : > { %426 = vrot.lane.b32.xlu1 %v425_v47, %s1147_s17 }
 0x113   : > { %v436_v51 = vpop.permute.xlu0 %435 }
 0x115   : > { %526 = vrot.lane.b32.xlu1 %v1346_v48, %s1152_s18 }
 0x117   : > { %v469_v53 = vpop.permute.xlu0 %468 }
 0x119   : > { %558 = vrot.lane.b32.xlu1 %v1353_v49, %s1153_s22 }
 0x11b   : > { %v511_v58 = vpop.permute.xlu0 %510 }
 0x11f   : > { %v543_v1 = vpop.permute.xlu0 %542 }
 0x183   : > { %v427_v54 = vpop.permute.xlu1 %426 }
 0x184   : > { %v428_v55 = vsel %vm422_vm1, %v427_v54, %v421_v40 }
 0x185   : > { %v455_v56 = vmul.f32 %v453_v50, %v428_v55  ;;  %v438_v57 = vmul.f32 %v436_v51, %v428_v55  ;;  %v487_v61 = vmul.f32 %v485_v52, %v428_v55  ;;  %v471_v62 = vmul.f32 %v469_v53, %v428_v55 }
 0x186   : > { %v513_v0 = vmul.f32 %v511_v58, %v428_v55  ;;  %v545_v5 = vmul.f32 %v543_v1, %v428_v55 }
 0x187   : > { %457 = vrot.lane.b32.xlu1 %v455_v56, %s1154_s24  ;;  %440 = vrot.lane.b32.xlu0 %v438_v57, %s1504_s26  ;;  %v527_v59 = vpop.permute.xlu1 %526 }
 0x188   : > { %v529_v63 = vmul.f32 %v527_v59, %v428_v55 }
 0x18b   : > { %489 = vrot.lane.b32.xlu1 %v487_v61, %s1502_s30  ;;  %473 = vrot.lane.b32.xlu0 %v471_v62, %s1498_s11  ;;  %v559_v3 = vpop.permute.xlu1 %558 }
 0x18c   : > { %v561_v6 = vmul.f32 %v559_v3, %v428_v55 }
 0x18f   : > { %531 = vrot.lane.b32.xlu1 %v529_v63, %s1499_s15  ;;  %515 = vrot.lane.b32.xlu0 %v513_v0, %s1500_s16  ;;  %s1512_s16 = sshll.u32 %s1514_s14, 2 }
 0x190   : > { %s354_s29 = scalar_lea.vmem %s1496_s10, %s1512_s16 }
 0x193   : > { %563 = vrot.lane.b32.xlu1 %v561_v6, %s1501_s19  ;;  %547 = vrot.lane.b32.xlu0 %v545_v5, %s1503_s21 }
 0x197   : > { %658 = vperm.xlu1 %1129, %v358_v7   ;;  %574 = vperm.xlu0 %1130, %v571_v11  }
 0x19b   : > { %678 = vperm.xlu0 %1130, %v359_v15   ;;  %1131 = vset.pattern.permute.xlu1 %v1142_v4 }
 0x19c   : > { %667 = vperm.xlu1 %1131, %v358_v7  }
 0x19f   : > { %693 = vperm.xlu0 %1130, %v690_v16  }
 0x1a0   : > { %1132 = vset.pattern.permute.xlu1 %v1141_v2 }
 0x1a1   : > { %686 = vperm.xlu1 %1132, %v683_v17  }
 0x1a3   : > { %750 = vrot.lane.b32.xlu0 %v1248_v8, %s1145_s25 }
 0x1a7   : > { %780 = vrot.lane.b32.xlu0 %v1255_v9, %s1146_s28 }
 0x1f9   : > { %v458_v4 = vpop.permute.xlu1 %457  ;;  %v441_v22 = vpop.permute.xlu0 %440 }
 0x1fa   : > { %460 = vst.msk [vmem:[#allocation2 + $0x2] sm:$0x3] %vm443_vm0, %v458_v4  ;;  %444 = vst.msk [vmem:[#allocation2] sm:$0x3] %vm443_vm0, %v441_v22 }
 0x1fd   : > { %v490_v24 = vpop.permute.xlu1 %489  ;;  %v474_v25 = vpop.permute.xlu0 %473 }
 0x1fe   : > { %492 = vst.msk [vmem:[#allocation2 + $0x6] sm:$0x3] %vm443_vm0, %v490_v24  ;;  %476 = vst.msk [vmem:[#allocation2 + $0x4] sm:$0x3] %vm443_vm0, %v474_v25 }
 0x201   : > { %v532_v2 = vpop.permute.xlu1 %531  ;;  %v516_v26 = vpop.permute.xlu0 %515 }
 0x202   : > { %534 = vst.msk [vmem:[#allocation2 + $0xc] sm:$0x3] %vm443_vm0, %v532_v2  ;;  %518 = vst.msk [vmem:[#allocation2 + $0xa] sm:$0x3] %vm443_vm0, %v516_v26 }
 0x205   : > { %v564_v8 = vpop.permute.xlu1 %563  ;;  %v548_v9 = vpop.permute.xlu0 %547  ;;  %v568_v28 = vld [vmem:[#allocation2] sm:$0xff] }
 0x206   : > { %566 = vst.msk [vmem:[#allocation2 + $0x10] sm:$0x3] %vm443_vm0, %v564_v8  ;;  %550 = vst.msk [vmem:[#allocation2 + $0xe] sm:$0x3] %vm443_vm0, %v548_v9  ;;  %v862_v8 = vld [vmem:[%s1492_s6] sm:$0x3] }
 0x20d   : > { %v569_v29 = vld [vmem:[#allocation2 + $0x8] sm:$0xff]  ;;  %v570_v33 = vld [vmem:[#allocation2 + $0x10] sm:$0x3] }
 0x20e   : > { %v1087_v30 = vpack.c.bf16 %v569_v29, %v568_v28 }
 0x210   : > { %1088 = vmatpush3.bf16.msra.mxu0 %v1087_v30 }
 0x211   : > { %1072 = vmatprep.subr.mxu0 %v1164_v10 }
 0x214   : > { %1073 = vmatpush3.msk.msra.mxu0 %vm581_vm3, %v570_v33 }
 0x215   : > { %1075 = vmatmul.mubr.msk.f32.vlgmr.msra.gmra.mrb[0].mxu0 %vm577_vm4, %v567_v32 }
 0x216   : > { %v1403_v34 = vpop.permute.xlu1 %658  ;;  %v575_v35 = vpop.permute.xlu0 %574 }
 0x21a   : > { %v1411_v54 = vpop.permute.xlu0 %678 }
 0x21b   : > { %v1405_v46 = vpop.permute.xlu1 %667 }
 0x21e   : > { %v694_v59 = vpop.permute.xlu0 %693 }
 0x220   : > { %v687_v56 = vpop.permute.xlu1 %686 }
 0x2e8   : > { %v651_v37 = vpop.f32.mrb[0].mxu0 }
 0x2e9   : > { %v652_v38 = vadd.f32 %v651_v37, %v575_v35  ;;  %v1076_v40 = vpop.f32.mrb[1].mxu0 }
 0x2eb   : > { %v655_v41 = vmax.f32 %v652_v38, 0.0 }
 0x2ed   : > { %v664_v47 = vrot.slane %v655_v41, %v1279_v18  ;;  %v673_v50 = vrot.slane %v655_v41, %v1282_v19 }
 0x2ef   : > { %v665_v51 = vmul.f32 %v664_v47, %v1403_v34  ;;  %v674_v52 = vmul.f32 %v673_v50, %v1405_v46  ;;  %v858_v47 = vld [vmem:[%s1491_s5] sm:$0x3] }
 0x2f1   : > { %v675_v53 = vadd.f32 %v674_v52, %v665_v51 }
 0x2f3   : > { %v681_v55 = vadd.f32 %v1411_v54, %v675_v53 }
 0x2f5   : > { %v1415_v57 = vadd.f32 %v681_v55, %v1271_v12 }
 0x2f7   : > { %v689_v58 = vmul.f32 %v687_v56, %v1415_v57 }
 0x2f9   : > { %v696_v60 = vadd.f32 %v694_v59, %v689_v58 }
 0x2fb   : > { %v697_v61 = vmax.f32 %v696_v60, 0.0 }
 0x2fd   : > { %v701_v62 = vrot.slane %v697_v61, %v1279_v18  ;;  %v706_v63 = vrot.slane %v697_v61, %v1282_v19  ;;  %v712_v0 = vrot.slane %v697_v61, %v401_v20  ;;  %v718_v12 = vrot.slane %v697_v61, %v411_v23 }
 0x2ff   : > { %v702_v1 = vmul.f32 %v701_v62, %v1273_v13  ;;  %v707_v3 = vmul.f32 %v706_v63, %v1285_v21  ;;  %v713_v5 = vmul.f32 %v712_v0, %v1292_v27  ;;  %v719_v11 = vmul.f32 %v718_v12, %v1298_v31  ;;  %v751_v21 = vpop.permute.xlu0 %750 }
 0x301   : > { %v708_v6 = vadd.f32 %v707_v3, %v702_v1 }
 0x303   : > { %v714_v7 = vadd.f32 %v713_v5, %v708_v6  ;;  %v781_v27 = vpop.permute.xlu0 %780 }
 0x305   : > { %v720_v15 = vadd.f32 %v719_v11, %v714_v7 }
 0x307   : > { %v721_v16 = vadd.f32 %v720_v15, %v1302_v36 }
 0x309   : > { %v722_v17 = vmax.f32 %v721_v16, 0.0 }
 0x30b   : > { %723 = vrot.lane.b32.xlu1 %v722_v17, %s1147_s17  ;;  %v796_v20 = vmul.f32 %v1308_v39, %v722_v17 }
 0x30d   : > { %797 = vst.msk [vmem:[#allocation2 + $0x8] sm:$0x3] %vm443_vm0, %v796_v20 }
 0x30f   : > { %735 = vrot.lane.b32.xlu1 %v1315_v42, %s1148_s20  ;;  %s1505_s20 = smov 73  }
 0x313   : > { %765 = vrot.lane.b32.xlu1 %v1323_v43, %s1149_s23  ;;  %s1507_s23 = smov 71  }
 0x317   : > { %804 = vrot.lane.b32.xlu1 %v1330_v44, %s1150_s27  ;;  %s1508_s27 = smov 121  }
 0x31b   : > { %834 = vrot.lane.b32.xlu1 %v1337_v45, %s1151_s12  ;;  %s1509_s12 = smov 127  }
 0x37d   : > { %v724_v13 = vpop.permute.xlu1 %723 }
 0x37e   : > { %v725_v14 = vsel %vm422_vm1, %v724_v13, %v722_v17 }
 0x37f   : > { %726 = vrot.lane.b32.xlu0 %v725_v14, %s1147_s17  ;;  %s1506_s17 = smov 65  }
 0x381   : > { %v736_v23 = vpop.permute.xlu1 %735 }
 0x383   : > { %819 = vrot.lane.b32.xlu0 %v1346_v48, %s1152_s18  ;;  %s1510_s18 = smov 119  }
 0x385   : > { %v766_v31 = vpop.permute.xlu1 %765 }
 0x387   : > { %849 = vrot.lane.b32.xlu0 %v1353_v49, %s1153_s22  ;;  %s1511_s22 = smov 120  }
 0x389   : > { %v805_v44 = vpop.permute.xlu1 %804 }
 0x38d   : > { %v835_v24 = vpop.permute.xlu1 %834 }
 0x3f1   : > { %v727_v36 = vpop.permute.xlu0 %726 }
 0x3f2   : > { %v728_v39 = vsel %vm422_vm1, %v727_v36, %v722_v17 }
 0x3f3   : > { %v753_v42 = vmul.f32 %v751_v21, %v728_v39  ;;  %v738_v43 = vmul.f32 %v736_v23, %v728_v39  ;;  %v783_v4 = vmul.f32 %v781_v27, %v728_v39  ;;  %v768_v48 = vmul.f32 %v766_v31, %v728_v39 }
 0x3f4   : > { %v807_v22 = vmul.f32 %v805_v44, %v728_v39  ;;  %v837_v2 = vmul.f32 %v835_v24, %v728_v39 }
 0x3f5   : > { %755 = vrot.lane.b32.xlu0 %v753_v42, %s1154_s24  ;;  %740 = vrot.lane.b32.xlu1 %v738_v43, %s1505_s20  ;;  %v820_v45 = vpop.permute.xlu0 %819 }
 0x3f6   : > { %v822_v49 = vmul.f32 %v820_v45, %v728_v39 }
 0x3f9   : > { %785 = vrot.lane.b32.xlu0 %v783_v4, %s1506_s17  ;;  %770 = vrot.lane.b32.xlu1 %v768_v48, %s1507_s23  ;;  %v850_v25 = vpop.permute.xlu0 %849 }
 0x3fa   : > { %v852_v26 = vmul.f32 %v850_v25, %v728_v39 }
 0x3fd   : > { %824 = vrot.lane.b32.xlu0 %v822_v49, %s1508_s27  ;;  %809 = vrot.lane.b32.xlu1 %v807_v22, %s1509_s12 }
 0x401   : > { %854 = vrot.lane.b32.xlu0 %v852_v26, %s1510_s18  ;;  %839 = vrot.lane.b32.xlu1 %v837_v2, %s1511_s22 }
 0x405   : > { %865 = vperm.xlu1 %1132, %v862_v8  }
 0x467   : > { %v756_v9 = vpop.permute.xlu0 %755  ;;  %v741_v28 = vpop.permute.xlu1 %740 }
 0x468   : > { %758 = vst.msk [vmem:[#allocation2 + $0x2] sm:$0x3] %vm443_vm0, %v756_v9  ;;  %743 = vst.msk [vmem:[#allocation2] sm:$0x3] %vm443_vm0, %v741_v28 }
 0x46b   : > { %v786_v29 = vpop.permute.xlu0 %785  ;;  %v771_v30 = vpop.permute.xlu1 %770 }
 0x46c   : > { %788 = vst.msk [vmem:[#allocation2 + $0x6] sm:$0x3] %vm443_vm0, %v786_v29  ;;  %773 = vst.msk [vmem:[#allocation2 + $0x4] sm:$0x3] %vm443_vm0, %v771_v30 }
 0x46f   : > { %v825_v32 = vpop.permute.xlu0 %824  ;;  %v810_v33 = vpop.permute.xlu1 %809 }
 0x470   : > { %827 = vst.msk [vmem:[#allocation2 + $0xc] sm:$0x3] %vm443_vm0, %v825_v32  ;;  %812 = vst.msk [vmem:[#allocation2 + $0xa] sm:$0x3] %vm443_vm0, %v810_v33 }
 0x473   : > { %v855_v35 = vpop.permute.xlu0 %854  ;;  %v840_v37 = vpop.permute.xlu1 %839  ;;  %v859_v38 = vld [vmem:[#allocation2] sm:$0xff] }
 0x474   : > { %857 = vst.msk [vmem:[#allocation2 + $0x10] sm:$0x3] %vm443_vm0, %v855_v35  ;;  %842 = vst.msk [vmem:[#allocation2 + $0xe] sm:$0x3] %vm443_vm0, %v840_v37 }
 0x47b   : > { %v860_v40 = vld [vmem:[#allocation2 + $0x8] sm:$0xff]  ;;  %v861_v50 = vld [vmem:[#allocation2 + $0x10] sm:$0x3] }
 0x47c   : > { %v1090_v41 = vpack.c.bf16 %v860_v40, %v859_v38 }
 0x47e   : > { %1091 = vmatpush3.bf16.msra.mxu1 %v1090_v41 }
 0x47f   : > { %1081 = vmatprep.subr.mxu1 %v1164_v10 }
 0x482   : > { %1082 = vmatpush3.msk.msra.mxu1 %vm581_vm3, %v861_v50 }
 0x483   : > { %1084 = vmatmul.mubr.msk.f32.vlgmr.msra.gmra.mrb[0].mxu1 %vm577_vm4, %v858_v47 }
 0x484   : > { %v866_v51 = vpop.permute.xlu1 %865 }
 0x556   : > { %v940_v52 = vpop.f32.mrb[0].mxu1 }
 0x557   : > { %v941_v53 = vadd.f32 %v940_v52, %v866_v51  ;;  %v1085_v55 = vpop.f32.mrb[1].mxu1 }
 0x559   : > { %v944_v56 = vmax.f32 %v941_v53, 0.0 }
 0x55b   : > { %v948_v58 = vrot.slane %v944_v56, %v1279_v18  ;;  %v953_v59 = vrot.slane %v944_v56, %v1282_v19 }
 0x55d   : > { %v949_v10 = vmul.f32 %v948_v58, %v1403_v34  ;;  %v954_v60 = vmul.f32 %v953_v59, %v1405_v46 }
 0x55f   : > { %v955_v61 = vadd.f32 %v954_v60, %v949_v10 }
 0x561   : > { %v956_v62 = vadd.f32 %v955_v61, %v1411_v54 }
 0x563   : > { %v957_v63 = vadd.f32 %v956_v62, %v1415_v57 }
 0x565   : > { %959 = vst.msk [vmem:[%s354_s29] sm:$0xf] %vm958_vm5, %v957_v63 }
 0x566 PF: > { %s20_s13 = sadd.s32 1, %s1139_s13  }
 0x567   : > { %p17_p4 = scmp.ge.s32.totalorder %s20_s13, 4  }
 0x569   :  { %19 = sbr.rel (!%p17_p4) target bundleno = 1 (0x1), region = 98 }

// kernel: hourglass_forward.11
= control target key start
LH: loop header
LB: loop body
LE: loop exit
PB: predicated region body
PF: predicated region fallthrough
CT: control target
= control target key end

     0   :  { %s1522_s13 = smov 0   ;;  %s1895_s0 = inlined_call_operand.vmem [shape: f32[2,4,256], index: 0, kind: input, shape index: {}]   ;;  %s1896_s1 = inlined_call_operand.vmem [shape: f32[4,1], index: 1, kind: input, shape index: {}]   ;;  %s1897_s2 = inlined_call_operand.vmem [shape: f32[4,1], index: 2, kind: input, shape index: {}]   ;;  %s1898_s3 = inlined_call_operand.vmem [shape: f32[2,4], index: 3, kind: input, shape index: {}]   ;;  %s1899_s4 = inlined_call_operand.vmem [shape: f32[2,1], index: 4, kind: input, shape index: {}]   ;;  %s1900_s5 = inlined_call_operand.vmem [shape: f32[2,18], index: 5, kind: input, shape index: {}]   ;;  %s1901_s6 = inlined_call_operand.vmem [shape: f32[2,1], index: 6, kind: input, shape index: {}]   ;;  %s1902_s7 = inlined_call_operand.vmem [shape: f32[4,2], index: 7, kind: input, shape index: {}]   ;;  %s1903_s8 = inlined_call_operand.vmem [shape: f32[4,1], index: 8, kind: input, shape index: {}]   ;;  %s1904_s9 = inlined_call_operand.vmem [shape: f32[9,1,256], index: 9, kind: input, shape index: {}]   ;;  %s1905_s10 = inlined_call_operand.vmem [shape: f32[2,4,256], index: 10, kind: output, shape index: {}]  }
   0x1 LB: > { %s1370_s14 = sadd.s32 4294967295, %s1451_s13   ;;  %p1374_p0 = scmp.ge.s32.totalorder %s1451_s13, 1  ;;  %s1451_s13 = sphi %s1522_s13, %s20_s13  }
   0x2   : > { %p312_p1 = scmp.lt.s32.totalorder %s1451_s13, 3 }
   0x4   : > { %p313_p2 = pnand %p1374_p0, %p312_p1 }
   0x5   : > { %v365_v0 = vld [vmem:[%s1896_s1] sm:$0xf] (!%p313_p2)  ;;  %v1453_v1 = vmov (!%p313_p2), 0   ;;  %v1454_v4 = vmov (!%p313_p2), 1   ;;  %v1455_v5 = vmov (!%p313_p2), 2   ;;  %v1456_v6 = vmov (!%p313_p2), 3  }
   0x6   : > { %316 = sbr.rel (%p313_p2) target bundleno = 954 (0x3ba), region = 60  ;;  %1435 = vset.pattern.permute.xlu0 (!%p313_p2), %v1453_v1  ;;  %1436 = vset.pattern.permute.xlu1 (!%p313_p2), %v1453_v1  ;;  %v361_v2 = vld [vmem:[%s1898_s3] sm:$0x3] (!%p313_p2)  ;;  %p350_p3 = scmp.lt.s32.totalorder (!%p313_p2), %s1370_s14, 1  ;;  %v1457_v8 = vmov (!%p313_p2), 839922192   ;;  %v373_v10 = vlaneseq (!%p313_p2) }
   0x7   : > { %368 = vperm.xlu0 (!%p313_p2), %1435, %v365_v0   ;;  %396 = vperm.xlu1 (!%p313_p2), %1436, %v361_v2   ;;  %v379_v3 = vld [vmem:[%s1897_s2] sm:$0xf] (!%p313_p2)  ;;  %v371_v9 = vunpack.c.l.s4 (!%p313_p2), %v1457_v8  ;;  %v1382_v63 = vld [vmem:[%s1904_s9 + $0x8] sm:$0x3] (!%p313_p2)  ;;  %s1458_s29 = smov (!%p313_p2), 16   ;;  %s1459_s30 = smov (!%p313_p2), 15  }
   0x8   : > { %v362_v7 = vld [vmem:[%s1899_s4] sm:$0x3] (!%p313_p2)  ;;  %v374_v12 = vshrl.u32 (!%p313_p2), %v373_v10, 7  ;;  %s1460_s11 = smov (!%p313_p2), 1   ;;  %s1461_s12 = smov (!%p313_p2), 127   ;;  %vm770_vm8 = vcmask (!%p313_p2), 1041408  }
   0x9   : > { %v372_v11 = vunpack.c.0.s8 (!%p313_p2), %v371_v9  ;;  %s1462_s15 = smov (!%p313_p2), 113   ;;  %s1463_s16 = smov (!%p313_p2), 112   ;;  %vm766_vm9 = vcmask (!%p313_p2), 146432  }
   0xa   : > { %v1565_v21 = vsub.s32 (!%p313_p2), 0, %v374_v12  ;;  %v1567_v22 = vsub.s32 (!%p313_p2), 1, %v374_v12  ;;  %v406_v24 = vsub.s32 (!%p313_p2), 4, %v374_v12  ;;  %v430_v25 = vsub.s32 (!%p313_p2), 5, %v374_v12  ;;  %s1464_s17 = smov (!%p313_p2), 17   ;;  %s1465_s18 = smov (!%p313_p2), 111  }
   0xb   : > { %382 = vperm.xlu0 (!%p313_p2), %1435, %v379_v3   ;;  %1437 = vset.pattern.permute.xlu1 (!%p313_p2), %v1454_v4  ;;  %v375_v13 = vsub.s32 (!%p313_p2), %v372_v11, %v374_v12  ;;  %v1569_v26 = vsub.s32 (!%p313_p2), 2, %v374_v12  ;;  %v456_v27 = vsub.s32 (!%p313_p2), 6, %v374_v12  ;;  %v1571_v28 = vsub.s32 (!%p313_p2), 3, %v374_v12 }
   0xc   : > { %421 = vperm.xlu1 (!%p313_p2), %1437, %v361_v2   ;;  %v482_v29 = vsub.s32 (!%p313_p2), 7, %v374_v12 }
   0xd   : > { %s1907_s14 = smov (!%p350_p3, %s1370_s14), 1 }
   0xe   : > { %s1403_s23 = sshll.u32 %s1907_s14, 3 }
   0xf   : > { %1438 = vset.pattern.permute.xlu0 %v1455_v5  ;;  %s354_s26 = scalar_lea.vmem %s1895_s0, %s1403_s23 }
  0x10   : > { %1439 = vset.pattern.permute.xlu1 %v1456_v6  ;;  %447 = vperm.xlu0 %1438, %v361_v2   ;;  %v1560_v16 = vld [vmem:[%s354_s26] sm:$0xff]  ;;  %v632_v6 = vrot.slane %v1382_v63, %v1567_v22 }
  0x11   : > { %473 = vperm.xlu1 %1439, %v361_v2  }
  0x14   : > { %1441 = vset.pattern.permute.xlu0 %v1453_v1 }
  0x15   : > { %1440 = vset.pattern.permute.xlu1 %v1453_v1 }
  0x16   : > { %500 = vperm.xlu1 %1440, %v362_v7   ;;  %v628_v7 = vrot.slane %v1382_v63, %v1565_v21 }
  0x86   : > { %v369_v14 = vpop.permute.xlu0 %368  ;;  %v1562_v18 = vpop.permute.xlu1 %396 }
  0x87   : > { %v376_v15 = vrot.slane %v369_v14, %v375_v13  ;;  %v1466_v14 = vmov 0.0  }
  0x88   : > { %841 = vmatprep.mubr.f32.mxu0 %v1466_v14  ;;  %1275 = vmatprep.mubr.f32.mxu1 %v1466_v14 }
  0x89   : > { %v378_v19 = vmul.f32 %v376_v15, %v1560_v16  ;;  %v760_v15 = vld [vmem:[%s1901_s6] sm:$0x3] }
  0x8a   : > { %v383_v17 = vpop.permute.xlu0 %382 }
  0x8b   : > { %v390_v20 = vrot.slane %v383_v17, %v375_v13  ;;  %v1573_v31 = vpop.permute.xlu1 %421  ;;  %v363_v13 = vld [vmem:[%s1902_s7] sm:$0xf] }
  0x8c   : > { %v364_v17 = vld [vmem:[%s1903_s8] sm:$0xf] }
  0x8d   : > { %v392_v23 = vadd.f32 %v390_v20, %v378_v19  ;;  %v901_v19 = vld [vmem:[%s1897_s2] sm:$0xf] }
  0x8e   : > { %v893_v20 = vld [vmem:[%s1896_s1] sm:$0xf] }
  0x8f   : > { %v393_v30 = vmax.f32 %v392_v23, 0.0  ;;  %v1583_v44 = vpop.permute.xlu0 %447  ;;  %v1642_v23 = vand.u32 127, %v373_v10 }
  0x90   : > { %v1593_v53 = vpop.permute.xlu1 %473 }
  0x91   : > { %v403_v32 = vrot.slane %v393_v30, %v1565_v21  ;;  %v407_v33 = vrot.slane %v393_v30, %v406_v24  ;;  %v427_v34 = vrot.slane %v393_v30, %v1567_v22  ;;  %v431_v35 = vrot.slane %v393_v30, %v430_v25 }
  0x92   : > { %v453_v36 = vrot.slane %v393_v30, %v1569_v26  ;;  %v457_v37 = vrot.slane %v393_v30, %v456_v27  ;;  %v479_v38 = vrot.slane %v393_v30, %v1571_v28  ;;  %v483_v39 = vrot.slane %v393_v30, %v482_v29  ;;  %v1380_v27 = vld [vmem:[%s1904_s9 + $0x4] sm:$0x3] }
  0x93   : > { %v413_v40 = vrot.slane %v403_v32, %v1565_v21  ;;  %v417_v41 = vrot.slane %v407_v33, %v1565_v21  ;;  %v437_v42 = vrot.slane %v427_v34, %v1567_v22  ;;  %v441_v43 = vrot.slane %v431_v35, %v1567_v22 }
  0x94   : > { %v463_v45 = vrot.slane %v453_v36, %v1569_v26  ;;  %v467_v46 = vrot.slane %v457_v37, %v1569_v26  ;;  %v489_v47 = vrot.slane %v479_v38, %v1571_v28  ;;  %v493_v48 = vrot.slane %v483_v39, %v1571_v28  ;;  %v1381_v36 = vld [vmem:[%s1904_s9 + $0x6] sm:$0x3] }
  0x95   : > { %v418_v49 = vmul.f32 %v413_v40, %v1562_v18  ;;  %v419_v50 = vmul.f32 %v417_v41, %v1562_v18  ;;  %v442_v51 = vmul.f32 %v437_v42, %v1573_v31  ;;  %v443_v52 = vmul.f32 %v441_v43, %v1573_v31  ;;  %v1599_v62 = vpop.permute.xlu1 %500 }
  0x96   : > { %v468_v56 = vmul.f32 %v463_v45, %v1583_v44  ;;  %v469_v57 = vmul.f32 %v467_v46, %v1583_v44  ;;  %v494_v60 = vmul.f32 %v489_v47, %v1593_v53  ;;  %v495_v61 = vmul.f32 %v493_v48, %v1593_v53  ;;  %v1383_v48 = vld [vmem:[%s1904_s9 + $0xa] sm:$0x3] }
  0x97   : > { %v444_v54 = vadd.f32 %v442_v51, %v418_v49  ;;  %v445_v55 = vadd.f32 %v443_v52, %v419_v50  ;;  %vm536_vm0 = vcmp.lt.s32.totalorder %v1642_v23, 16  ;;  %v575_v32 = vrot.slane %v1380_v27, %v1565_v21 }
  0x98   : > { %vm566_vm1 = vcmp.lt.s32.totalorder %v1642_v23, 15  ;;  %v579_v35 = vrot.slane %v1380_v27, %v1567_v22  ;;  %vm596_vm2 = vcmp.lt.s32.totalorder %v1642_v23, 1  ;;  %v605_v46 = vrot.slane %v1381_v36, %v1565_v21  ;;  %v516_v27 = vld [vmem:[%s1904_s9] sm:$0x3] }
  0x99   : > { %v470_v58 = vadd.f32 %v468_v56, %v444_v54  ;;  %v471_v59 = vadd.f32 %v469_v57, %v445_v55  ;;  %v609_v47 = vrot.slane %v1381_v36, %v1567_v22  ;;  %vm643_vm3 = vcmp.lt.s32.totalorder %v1642_v23, 127 }
  0x9a   : > { %vm673_vm4 = vcmp.lt.s32.totalorder %v1642_v23, 113  ;;  %vm703_vm5 = vcmp.lt.s32.totalorder %v1642_v23, 112  ;;  %vm513_vm6 = vcmp.lt.s32.totalorder %v1642_v23, 17  ;;  %v521_v36 = vrot.slane %v516_v27, %v1565_v21 }
  0x9b   : > { %v496_v0 = vadd.f32 %v494_v60, %v470_v58  ;;  %v497_v2 = vadd.f32 %v495_v61, %v471_v59  ;;  %v652_v58 = vrot.slane %v1383_v48, %v1565_v21  ;;  %v656_v59 = vrot.slane %v1383_v48, %v1567_v22  ;;  %v1384_v60 = vld [vmem:[%s1904_s9 + $0xc] sm:$0x3] }
  0x9c   : > { %vm733_vm7 = vcmp.lt.s32.totalorder %v1642_v23, 111  ;;  %v1189_v23 = vld [vmem:[%s1900_s5] sm:$0x3] }
  0x9d   : > { %v503_v3 = vadd.f32 %v1599_v62, %v496_v0  ;;  %v504_v5 = vadd.f32 %v1599_v62, %v497_v2 }
  0x9f   : > { %v505_v8 = vmax.f32 %v503_v3, 0.0  ;;  %v506_v9 = vmax.f32 %v504_v5, 0.0 }
  0xa1   : > { %534 = vrot.lane.b32.xlu1 %v506_v9, %s1458_s29  ;;  %532 = vrot.lane.b32.xlu0 %v505_v8, %s1458_s29  ;;  %v636_v11 = vmul.f32 %v632_v6, %v506_v9  ;;  %v635_v12 = vmul.f32 %v628_v7, %v505_v8 }
  0xa3   : > { %638 = vst [vmem:[#allocation2 + $0x18] sm:$0x3] %v636_v11  ;;  %637 = vst [vmem:[#allocation2 + $0x10] sm:$0x3] %v635_v12  ;;  %v1385_v11 = vld [vmem:[%s1904_s9 + $0xe] sm:$0x3] }
  0xa5   : > { %564 = vrot.lane.b32.xlu1 %v506_v9, %s1459_s30  ;;  %562 = vrot.lane.b32.xlu0 %v505_v8, %s1459_s30 }
  0xa9   : > { %594 = vrot.lane.b32.xlu1 %v506_v9, %s1460_s11  ;;  %592 = vrot.lane.b32.xlu0 %v505_v8, %s1460_s11 }
  0xad   : > { %641 = vrot.lane.b32.xlu1 %v506_v9, %s1461_s12  ;;  %639 = vrot.lane.b32.xlu0 %v505_v8, %s1461_s12 }
  0xb1   : > { %671 = vrot.lane.b32.xlu1 %v506_v9, %s1462_s15  ;;  %669 = vrot.lane.b32.xlu0 %v505_v8, %s1462_s15 }
  0xb5   : > { %701 = vrot.lane.b32.xlu1 %v506_v9, %s1463_s16  ;;  %699 = vrot.lane.b32.xlu0 %v505_v8, %s1463_s16 }
  0xb9   : > { %509 = vrot.lane.b32.xlu1 %v506_v9, %s1464_s17  ;;  %507 = vrot.lane.b32.xlu0 %v505_v8, %s1464_s17 }
  0xbd   : > { %731 = vrot.lane.b32.xlu1 %v506_v9, %s1465_s18  ;;  %729 = vrot.lane.b32.xlu0 %v505_v8, %s1465_s18  ;;  %v682_v8 = vrot.slane %v1384_v60, %v1565_v21  ;;  %v686_v9 = vrot.slane %v1384_v60, %v1567_v22 }
  0xc1   : > { %852 = vperm.xlu1 %1440, %v363_v13   ;;  %763 = vperm.xlu0 %1441, %v760_v15  }
  0xc5   : > { %883 = vperm.xlu0 %1441, %v364_v17   ;;  %1442 = vset.pattern.permute.xlu1 %v1454_v4  ;;  %v1379_v4 = vld [vmem:[%s1904_s9 + $0x2] sm:$0x3] }
  0xc6   : > { %866 = vperm.xlu1 %1442, %v363_v13   ;;  %v545_v24 = vrot.slane %v1379_v4, %v1565_v21  ;;  %v549_v25 = vrot.slane %v1379_v4, %v1567_v22 }
  0xc9   : > { %904 = vperm.xlu0 %1441, %v901_v19  }
  0xca   : > { %1443 = vset.pattern.permute.xlu1 %v1453_v1 }
  0xcb   : > { %896 = vperm.xlu1 %1443, %v893_v20  }
 0x113   : > { %v535_v29 = vpop.permute.xlu1 %534  ;;  %v533_v1 = vpop.permute.xlu0 %532 }
 0x114   : > { %v537_v10 = vsel %vm536_vm0, %v533_v1, %v535_v29  ;;  %v538_v30 = vsel %vm536_vm0, %v535_v29, %v533_v1 }
 0x115   : > { %v552_v33 = vmul.f32 %v545_v24, %v538_v30  ;;  %v553_v34 = vmul.f32 %v549_v25, %v537_v10  ;;  %v712_v24 = vrot.slane %v1385_v11, %v1565_v21  ;;  %v716_v25 = vrot.slane %v1385_v11, %v1567_v22 }
 0x117   : > { %v556_v37 = vrot.slane %v552_v33, 6  ;;  %v557_v38 = vrot.slane %v553_v34, 6  ;;  %v565_v39 = vpop.permute.xlu1 %564  ;;  %v563_v40 = vpop.permute.xlu0 %562 }
 0x118   : > { %v567_v41 = vsel %vm566_vm1, %v563_v40, %v565_v39  ;;  %v568_v42 = vsel %vm566_vm1, %v565_v39, %v563_v40 }
 0x119   : > { %560 = vst [vmem:[#allocation2] sm:$0xc] %v556_v37  ;;  %561 = vst [vmem:[#allocation2 + $0x8] sm:$0xc] %v557_v38  ;;  %v582_v43 = vmul.f32 %v575_v32, %v568_v42  ;;  %v583_v45 = vmul.f32 %v579_v35, %v567_v41  ;;  %v525_v37 = vrot.slane %v516_v27, %v1567_v22  ;;  %v1386_v38 = vld [vmem:[%s1904_s9 + $0x10] sm:$0x3] }
 0x11a   : > { %v742_v48 = vrot.slane %v1386_v38, %v1565_v21 }
 0x11b   : > { %v586_v49 = vrot.slane %v582_v43, 4  ;;  %v587_v50 = vrot.slane %v583_v45, 4  ;;  %v595_v51 = vpop.permute.xlu1 %594  ;;  %v593_v52 = vpop.permute.xlu0 %592 }
 0x11c   : > { %v597_v54 = vsel %vm596_vm2, %v593_v52, %v595_v51  ;;  %v598_v55 = vsel %vm596_vm2, %v595_v51, %v593_v52 }
 0x11d   : > { %590 = vst [vmem:[#allocation2] sm:$0x30] %v586_v49  ;;  %591 = vst [vmem:[#allocation2 + $0x8] sm:$0x30] %v587_v50  ;;  %v612_v56 = vmul.f32 %v605_v46, %v598_v55  ;;  %v613_v57 = vmul.f32 %v609_v47, %v597_v54  ;;  %v746_v49 = vrot.slane %v1386_v38, %v1567_v22 }
 0x11f   : > { %v616_v61 = vrot.slane %v612_v56, 2  ;;  %v617_v63 = vrot.slane %v613_v57, 2  ;;  %v642_v0 = vpop.permute.xlu1 %641  ;;  %v640_v2 = vpop.permute.xlu0 %639 }
 0x120   : > { %v644_v3 = vsel %vm643_vm3, %v640_v2, %v642_v0  ;;  %v645_v5 = vsel %vm643_vm3, %v642_v0, %v640_v2  ;;  %v753_v2 = vld [vmem:[%s1900_s5] sm:$0x3] }
 0x121   : > { %620 = vst [vmem:[#allocation2] sm:$0xc0] %v616_v61  ;;  %621 = vst [vmem:[#allocation2 + $0x8] sm:$0xc0] %v617_v63  ;;  %v659_v6 = vmul.f32 %v652_v58, %v644_v3  ;;  %v660_v7 = vmul.f32 %v656_v59, %v645_v5 }
 0x123   : > { %v663_v12 = vrot.slane %v659_v6, 6  ;;  %v664_v13 = vrot.slane %v660_v7, 6  ;;  %v672_v14 = vpop.permute.xlu1 %671  ;;  %v670_v15 = vpop.permute.xlu0 %669 }
 0x124   : > { %v674_v17 = vsel %vm673_vm4, %v670_v15, %v672_v14  ;;  %v675_v19 = vsel %vm673_vm4, %v672_v14, %v670_v15 }
 0x125   : > { %667 = vst [vmem:[#allocation2 + $0x10] sm:$0xc] %v663_v12  ;;  %668 = vst [vmem:[#allocation2 + $0x18] sm:$0xc] %v664_v13  ;;  %v689_v20 = vmul.f32 %v682_v8, %v674_v17  ;;  %v690_v4 = vmul.f32 %v686_v9, %v675_v19 }
 0x127   : > { %v693_v29 = vrot.slane %v689_v20, 4  ;;  %v694_v1 = vrot.slane %v690_v4, 4  ;;  %v702_v10 = vpop.permute.xlu1 %701  ;;  %v700_v30 = vpop.permute.xlu0 %699 }
 0x128   : > { %v704_v32 = vsel %vm703_vm5, %v700_v30, %v702_v10  ;;  %v705_v33 = vsel %vm703_vm5, %v702_v10, %v700_v30  ;;  %v889_v10 = vcombine.high %v1560_v16, %v1560_v16 }
 0x129   : > { %697 = vst [vmem:[#allocation2 + $0x10] sm:$0x30] %v693_v29  ;;  %698 = vst [vmem:[#allocation2 + $0x18] sm:$0x30] %v694_v1  ;;  %v719_v34 = vmul.f32 %v712_v24, %v704_v32  ;;  %v720_v35 = vmul.f32 %v716_v25, %v705_v33 }
 0x12b   : > { %v723_v39 = vrot.slane %v719_v34, 2  ;;  %v724_v40 = vrot.slane %v720_v35, 2  ;;  %v510_v41 = vpop.permute.xlu1 %509  ;;  %v508_v42 = vpop.permute.xlu0 %507 }
 0x12c   : > { %v514_v43 = vsel %vm513_vm6, %v508_v42, %v510_v41  ;;  %v515_v45 = vsel %vm513_vm6, %v510_v41, %v508_v42 }
 0x12d   : > { %727 = vst [vmem:[#allocation2 + $0x10] sm:$0xc0] %v723_v39  ;;  %728 = vst [vmem:[#allocation2 + $0x18] sm:$0xc0] %v724_v40  ;;  %v528_v46 = vmul.f32 %v521_v36, %v515_v45  ;;  %v529_v47 = vmul.f32 %v525_v37, %v514_v43 }
 0x12f   : > { %530 = vst [vmem:[#allocation2] sm:$0x3] %v528_v46  ;;  %531 = vst [vmem:[#allocation2 + $0x8] sm:$0x3] %v529_v47  ;;  %v732_v50 = vpop.permute.xlu1 %731  ;;  %v730_v51 = vpop.permute.xlu0 %729 }
 0x130   : > { %v734_v52 = vsel %vm733_vm7, %v730_v51, %v732_v50  ;;  %v735_v54 = vsel %vm733_vm7, %v732_v50, %v730_v51 }
 0x131   : > { %v749_v55 = vmul.f32 %v742_v48, %v734_v52  ;;  %v750_v56 = vmul.f32 %v746_v49, %v735_v54 }
 0x133   : > { %751 = vst [vmem:[#allocation2 + $0x20] sm:$0x3] %v749_v55  ;;  %752 = vst [vmem:[#allocation2 + $0x28] sm:$0x3] %v750_v56 }
 0x134   : > { %v757_v57 = vld [vmem:[#allocation2 + $0x18] sm:$0xff]  ;;  %v756_v60 = vld [vmem:[#allocation2 + $0x10] sm:$0xff] }
 0x136   : > { %v755_v58 = vld [vmem:[#allocation2 + $0x8] sm:$0xff]  ;;  %v754_v59 = vld [vmem:[#allocation2] sm:$0xff] }
 0x137   : > { %v1405_v61 = vpack.c.bf16 %v757_v57, %v755_v58  ;;  %v1407_v63 = vpack.c.bf16 %v756_v60, %v754_v59 }
 0x139   : > { %1406 = vmatprep.subr.bf16.mxu0 %v1405_v61 }
 0x13a   : > { %1408 = vmatpush1.bf16.msra.mxu0 %v1407_v63  ;;  %v759_v0 = vld [vmem:[#allocation2 + $0x28] sm:$0x3]  ;;  %v758_v3 = vld [vmem:[#allocation2 + $0x20] sm:$0x3] }
 0x13b   : > { %1387 = vmatprep.subr.msk.mxu0 %vm770_vm8, %v759_v0 }
 0x13e   : > { %1388 = vmatpush1.msk.msra.mxu0 %vm770_vm8, %v758_v3 }
 0x13f   : > { %1389 = vmatmul.mubr.msk.f32.vlgmr.msra.gmra.mrb[0].mxu0 %vm766_vm9, %v753_v2 }
 0x140   : > { %v1730_v5 = vpop.permute.xlu1 %852  ;;  %v764_v6 = vpop.permute.xlu0 %763 }
 0x144   : > { %v1742_v1 = vpop.permute.xlu0 %883 }
 0x145   : > { %v1732_v14 = vpop.permute.xlu1 %866 }
 0x148   : > { %v905_v38 = vpop.permute.xlu0 %904 }
 0x14a   : > { %v897_v33 = vpop.permute.xlu1 %896 }
 0x212   : > { %v843_v7 = vpop.f32.mrb[0].mxu0 }
 0x213   : > { %v844_v8 = vadd.f32 %v843_v7, %v764_v6  ;;  %v845_v9 = vpop.f32.mrb[1].mxu0 }
 0x214   : > { %v846_v11 = vadd.f32 %v845_v9, %v764_v6 }
 0x215   : > { %v848_v12 = vmax.f32 %v844_v8, 0.0 }
 0x216   : > { %v849_v13 = vmax.f32 %v846_v11, 0.0  ;;  %v1390_v11 = vld [vmem:[%s1904_s9 + $0x2] sm:$0x3] }
 0x217   : > { %v858_v15 = vrot.slane %v848_v12, %v1565_v21  ;;  %v872_v17 = vrot.slane %v848_v12, %v1567_v22  ;;  %v994_v12 = vrot.slane %v1390_v11, %v1565_v21 }
 0x218   : > { %v862_v19 = vrot.slane %v849_v13, %v1565_v21  ;;  %v876_v20 = vrot.slane %v849_v13, %v1567_v22  ;;  %v998_v13 = vrot.slane %v1390_v11, %v1567_v22 }
 0x219   : > { %v863_v4 = vmul.f32 %v858_v15, %v1730_v5  ;;  %v877_v24 = vmul.f32 %v872_v17, %v1732_v14  ;;  %v1391_v17 = vld [vmem:[%s1904_s9 + $0x4] sm:$0x3] }
 0x21a   : > { %v864_v25 = vmul.f32 %v862_v19, %v1730_v5  ;;  %v878_v27 = vmul.f32 %v876_v20, %v1732_v14 }
 0x21b   : > { %v879_v29 = vadd.f32 %v877_v24, %v863_v4 }
 0x21c   : > { %v880_v30 = vadd.f32 %v878_v27, %v864_v25  ;;  %v1022_v27 = vrot.slane %v1391_v17, %v1565_v21 }
 0x21d   : > { %v886_v32 = vadd.f32 %v1742_v1, %v879_v29  ;;  %v1026_v29 = vrot.slane %v1391_v17, %v1567_v22 }
 0x21e   : > { %v887_v34 = vadd.f32 %v1742_v1, %v880_v30  ;;  %v1392_v30 = vld [vmem:[%s1904_s9 + $0x6] sm:$0x3] }
 0x21f   : > { %v1749_v35 = vadd.f32 %v886_v32, %v1560_v16 }
 0x220   : > { %v1751_v36 = vadd.f32 %v889_v10, %v887_v34 }
 0x221   : > { %v899_v37 = vmul.f32 %v897_v33, %v1749_v35 }
 0x222   : > { %v900_v39 = vmul.f32 %v897_v33, %v1751_v36 }
 0x223   : > { %v907_v40 = vadd.f32 %v905_v38, %v899_v37 }
 0x224   : > { %v908_v41 = vadd.f32 %v905_v38, %v900_v39 }
 0x225   : > { %v909_v42 = vmax.f32 %v907_v40, 0.0 }
 0x226   : > { %v910_v43 = vmax.f32 %v908_v41, 0.0  ;;  %v1050_v41 = vrot.slane %v1392_v30, %v1565_v21 }
 0x227   : > { %v914_v45 = vrot.slane %v909_v42, %v1565_v21  ;;  %v924_v46 = vrot.slane %v909_v42, %v1567_v22  ;;  %v936_v47 = vrot.slane %v909_v42, %v1569_v26  ;;  %v948_v52 = vrot.slane %v909_v42, %v1571_v28 }
 0x228   : > { %v918_v16 = vrot.slane %v910_v43, %v1565_v21  ;;  %v928_v48 = vrot.slane %v910_v43, %v1567_v22  ;;  %v940_v49 = vrot.slane %v910_v43, %v1569_v26  ;;  %v952_v56 = vrot.slane %v910_v43, %v1571_v28 }
 0x229   : > { %v919_v50 = vmul.f32 %v914_v45, %v1562_v18  ;;  %v929_v51 = vmul.f32 %v924_v46, %v1573_v31  ;;  %v941_v58 = vmul.f32 %v936_v47, %v1583_v44  ;;  %v953_v26 = vmul.f32 %v948_v52, %v1593_v53  ;;  %v1394_v45 = vld [vmem:[%s1904_s9 + $0xa] sm:$0x3] }
 0x22a   : > { %v920_v54 = vmul.f32 %v918_v16, %v1562_v18  ;;  %v930_v55 = vmul.f32 %v928_v48, %v1573_v31  ;;  %v942_v60 = vmul.f32 %v940_v49, %v1583_v44  ;;  %v954_v0 = vmul.f32 %v952_v56, %v1593_v53  ;;  %v1393_v18 = vld [vmem:[%s1904_s9 + $0x8] sm:$0x3]  ;;  %v1395_v56 = vld [vmem:[%s1904_s9 + $0xc] sm:$0x3] }
 0x22b   : > { %v931_v57 = vadd.f32 %v929_v51, %v919_v50  ;;  %v1072_v3 = vrot.slane %v1393_v18, %v1565_v21  ;;  %v1076_v44 = vrot.slane %v1393_v18, %v1567_v22  ;;  %v1054_v42 = vrot.slane %v1392_v30, %v1567_v22 }
 0x22c   : > { %v932_v59 = vadd.f32 %v930_v55, %v920_v54  ;;  %v1094_v52 = vrot.slane %v1394_v45, %v1565_v21  ;;  %v1098_v54 = vrot.slane %v1394_v45, %v1567_v22  ;;  %v1126_v18 = vrot.slane %v1395_v56, %v1567_v22 }
 0x22d   : > { %v943_v61 = vadd.f32 %v941_v58, %v931_v57 }
 0x22e   : > { %v944_v63 = vadd.f32 %v942_v60, %v932_v59 }
 0x22f   : > { %v955_v2 = vadd.f32 %v953_v26, %v943_v61 }
 0x230   : > { %v956_v31 = vadd.f32 %v954_v0, %v944_v63  ;;  %v1122_v0 = vrot.slane %v1395_v56, %v1565_v21 }
 0x231   : > { %v957_v28 = vadd.f32 %v955_v2, %v1599_v62 }
 0x232   : > { %v958_v6 = vadd.f32 %v956_v31, %v1599_v62  ;;  %v1196_v62 = vld [vmem:[%s1901_s6] sm:$0x3]  ;;  %v1396_v31 = vld [vmem:[%s1904_s9 + $0xe] sm:$0x3] }
 0x233   : > { %v959_v7 = vmax.f32 %v957_v28, 0.0 }
 0x234   : > { %v960_v8 = vmax.f32 %v958_v6, 0.0 }
 0x235   : > { %983 = vrot.lane.b32.xlu1 %v959_v7, %s1458_s29  ;;  %v1079_v9 = vmul.f32 %v1072_v3, %v959_v7 }
 0x236   : > { %985 = vrot.lane.b32.xlu0 %v960_v8, %s1458_s29  ;;  %v1080_v53 = vmul.f32 %v1076_v44, %v960_v8 }
 0x237   : > { %1081 = vst [vmem:[#allocation2 + $0x10] sm:$0x3] %v1079_v9 }
 0x238   : > { %1082 = vst [vmem:[#allocation2 + $0x18] sm:$0x3] %v1080_v53  ;;  %v1150_v53 = vrot.slane %v1396_v31, %v1565_v21 }
 0x239   : > { %1011 = vrot.lane.b32.xlu1 %v959_v7, %s1459_s30 }
 0x23a   : > { %1013 = vrot.lane.b32.xlu0 %v960_v8, %s1459_s30 }
 0x23d   : > { %1039 = vrot.lane.b32.xlu1 %v959_v7, %s1460_s11 }
 0x23e   : > { %1041 = vrot.lane.b32.xlu0 %v960_v8, %s1460_s11 }
 0x241   : > { %1083 = vrot.lane.b32.xlu1 %v959_v7, %s1461_s12 }
 0x242   : > { %1085 = vrot.lane.b32.xlu0 %v960_v8, %s1461_s12 }
 0x245   : > { %1111 = vrot.lane.b32.xlu1 %v959_v7, %s1462_s15 }
 0x246   : > { %1113 = vrot.lane.b32.xlu0 %v960_v8, %s1462_s15 }
 0x249   : > { %1139 = vrot.lane.b32.xlu1 %v959_v7, %s1463_s16 }
 0x24a   : > { %1141 = vrot.lane.b32.xlu0 %v960_v8, %s1463_s16  ;;  %s359_s16 = scalar_lea.vmem %s1905_s10, %s1403_s23 }
 0x24d   : > { %961 = vrot.lane.b32.xlu1 %v959_v7, %s1464_s17 }
 0x24e   : > { %963 = vrot.lane.b32.xlu0 %v960_v8, %s1464_s17 }
 0x251   : > { %1167 = vrot.lane.b32.xlu1 %v959_v7, %s1465_s18 }
 0x252   : > { %1169 = vrot.lane.b32.xlu0 %v960_v8, %s1465_s18 }
 0x255   : > { %1199 = vperm.xlu1 %1443, %v1196_v62   ;;  %v1154_v62 = vrot.slane %v1396_v31, %v1567_v22 }
 0x2a7   : > { %v984_v15 = vpop.permute.xlu1 %983 }
 0x2a8   : > { %v986_v19 = vpop.permute.xlu0 %985 }
 0x2a9   : > { %v987_v20 = vsel %vm536_vm0, %v984_v15, %v986_v19  ;;  %v988_v4 = vsel %vm536_vm0, %v986_v19, %v984_v15 }
 0x2aa   : > { %v1001_v24 = vmul.f32 %v994_v12, %v988_v4  ;;  %v1002_v25 = vmul.f32 %v998_v13, %v987_v20  ;;  %v967_v12 = vld [vmem:[%s1904_s9] sm:$0x3] }
 0x2ab   : > { %v1012_v10 = vpop.permute.xlu1 %1011 }
 0x2ac   : > { %v1005_v32 = vrot.slane %v1001_v24, 6  ;;  %v1006_v33 = vrot.slane %v1002_v25, 6  ;;  %v1014_v34 = vpop.permute.xlu0 %1013  ;;  %v972_v25 = vrot.slane %v967_v12, %v1565_v21 }
 0x2ad   : > { %v1015_v37 = vsel %vm566_vm1, %v1012_v10, %v1014_v34  ;;  %v1016_v38 = vsel %vm566_vm1, %v1014_v34, %v1012_v10  ;;  %v1397_v10 = vld [vmem:[%s1904_s9 + $0x10] sm:$0x3] }
 0x2ae   : > { %1009 = vst [vmem:[#allocation2] sm:$0xc] %v1005_v32  ;;  %1010 = vst [vmem:[#allocation2 + $0x8] sm:$0xc] %v1006_v33  ;;  %v1029_v39 = vmul.f32 %v1022_v27, %v1016_v38  ;;  %v1030_v40 = vmul.f32 %v1026_v29, %v1015_v37  ;;  %v976_v27 = vrot.slane %v967_v12, %v1567_v22 }
 0x2af   : > { %v1040_v43 = vpop.permute.xlu1 %1039 }
 0x2b0   : > { %v1033_v46 = vrot.slane %v1029_v39, 4  ;;  %v1034_v47 = vrot.slane %v1030_v40, 4  ;;  %v1042_v16 = vpop.permute.xlu0 %1041  ;;  %v1178_v40 = vrot.slane %v1397_v10, %v1565_v21 }
 0x2b1   : > { %v1043_v48 = vsel %vm596_vm2, %v1040_v43, %v1042_v16  ;;  %v1044_v49 = vsel %vm596_vm2, %v1042_v16, %v1040_v43 }
 0x2b2   : > { %1037 = vst [vmem:[#allocation2] sm:$0x30] %v1033_v46  ;;  %1038 = vst [vmem:[#allocation2 + $0x8] sm:$0x30] %v1034_v47  ;;  %v1057_v50 = vmul.f32 %v1050_v41, %v1044_v49  ;;  %v1058_v51 = vmul.f32 %v1054_v42, %v1043_v48  ;;  %v1182_v41 = vrot.slane %v1397_v10, %v1567_v22 }
 0x2b3   : > { %v1084_v55 = vpop.permute.xlu1 %1083 }
 0x2b4   : > { %v1061_v57 = vrot.slane %v1057_v50, 2  ;;  %v1062_v58 = vrot.slane %v1058_v51, 2  ;;  %v1086_v59 = vpop.permute.xlu0 %1085 }
 0x2b5   : > { %v1087_v60 = vsel %vm643_vm3, %v1084_v55, %v1086_v59  ;;  %v1088_v61 = vsel %vm643_vm3, %v1086_v59, %v1084_v55 }
 0x2b6   : > { %1065 = vst [vmem:[#allocation2] sm:$0xc0] %v1061_v57  ;;  %1066 = vst [vmem:[#allocation2 + $0x8] sm:$0xc0] %v1062_v58  ;;  %v1101_v26 = vmul.f32 %v1094_v52, %v1087_v60  ;;  %v1102_v63 = vmul.f32 %v1098_v54, %v1088_v61 }
 0x2b7   : > { %v1112_v2 = vpop.permute.xlu1 %1111 }
 0x2b8   : > { %v1105_v28 = vrot.slane %v1101_v26, 6  ;;  %v1106_v3 = vrot.slane %v1102_v63, 6  ;;  %v1114_v6 = vpop.permute.xlu0 %1113 }
 0x2b9   : > { %v1115_v44 = vsel %vm673_vm4, %v1112_v2, %v1114_v6  ;;  %v1116_v7 = vsel %vm673_vm4, %v1114_v6, %v1112_v2 }
 0x2ba   : > { %1109 = vst [vmem:[#allocation2 + $0x10] sm:$0xc] %v1105_v28  ;;  %1110 = vst [vmem:[#allocation2 + $0x18] sm:$0xc] %v1106_v3  ;;  %v1129_v8 = vmul.f32 %v1122_v0, %v1115_v44  ;;  %v1130_v9 = vmul.f32 %v1126_v18, %v1116_v7 }
 0x2bb   : > { %v1140_v11 = vpop.permute.xlu1 %1139 }
 0x2bc   : > { %v1133_v13 = vrot.slane %v1129_v8, 4  ;;  %v1134_v15 = vrot.slane %v1130_v9, 4  ;;  %v1142_v17 = vpop.permute.xlu0 %1141 }
 0x2bd   : > { %v1143_v19 = vsel %vm703_vm5, %v1140_v11, %v1142_v17  ;;  %v1144_v20 = vsel %vm703_vm5, %v1142_v17, %v1140_v11 }
 0x2be   : > { %1137 = vst [vmem:[#allocation2 + $0x10] sm:$0x30] %v1133_v13  ;;  %1138 = vst [vmem:[#allocation2 + $0x18] sm:$0x30] %v1134_v15  ;;  %v1157_v4 = vmul.f32 %v1150_v53, %v1143_v19  ;;  %v1158_v24 = vmul.f32 %v1154_v62, %v1144_v20 }
 0x2bf   : > { %v962_v29 = vpop.permute.xlu1 %961 }
 0x2c0   : > { %v1161_v30 = vrot.slane %v1157_v4, 2  ;;  %v1162_v32 = vrot.slane %v1158_v24, 2  ;;  %v964_v33 = vpop.permute.xlu0 %963 }
 0x2c1   : > { %v965_v34 = vsel %vm513_vm6, %v962_v29, %v964_v33  ;;  %v966_v37 = vsel %vm513_vm6, %v964_v33, %v962_v29 }
 0x2c2   : > { %1165 = vst [vmem:[#allocation2 + $0x10] sm:$0xc0] %v1161_v30  ;;  %1166 = vst [vmem:[#allocation2 + $0x18] sm:$0xc0] %v1162_v32  ;;  %v979_v38 = vmul.f32 %v972_v25, %v966_v37  ;;  %v980_v39 = vmul.f32 %v976_v27, %v965_v34 }
 0x2c3   : > { %v1168_v42 = vpop.permute.xlu1 %1167 }
 0x2c4   : > { %981 = vst [vmem:[#allocation2] sm:$0x3] %v979_v38  ;;  %982 = vst [vmem:[#allocation2 + $0x8] sm:$0x3] %v980_v39  ;;  %v1170_v43 = vpop.permute.xlu0 %1169 }
 0x2c5   : > { %v1171_v45 = vsel %vm733_vm7, %v1168_v42, %v1170_v43  ;;  %v1172_v46 = vsel %vm733_vm7, %v1170_v43, %v1168_v42 }
 0x2c6   : > { %v1185_v47 = vmul.f32 %v1178_v40, %v1171_v45  ;;  %v1186_v16 = vmul.f32 %v1182_v41, %v1172_v46 }
 0x2c8   : > { %1187 = vst [vmem:[#allocation2 + $0x20] sm:$0x3] %v1185_v47  ;;  %1188 = vst [vmem:[#allocation2 + $0x28] sm:$0x3] %v1186_v16 }
 0x2c9   : > { %v1193_v48 = vld [vmem:[#allocation2 + $0x18] sm:$0xff]  ;;  %v1192_v51 = vld [vmem:[#allocation2 + $0x10] sm:$0xff] }
 0x2cb   : > { %v1191_v49 = vld [vmem:[#allocation2 + $0x8] sm:$0xff]  ;;  %v1190_v50 = vld [vmem:[#allocation2] sm:$0xff] }
 0x2cc   : > { %v1409_v52 = vpack.c.bf16 %v1193_v48, %v1191_v49  ;;  %v1411_v54 = vpack.c.bf16 %v1192_v51, %v1190_v50 }
 0x2ce   : > { %1410 = vmatprep.subr.bf16.mxu1 %v1409_v52 }
 0x2cf   : > { %1412 = vmatpush1.bf16.msra.mxu1 %v1411_v54  ;;  %v1195_v55 = vld [vmem:[#allocation2 + $0x28] sm:$0x3]  ;;  %v1194_v56 = vld [vmem:[#allocation2 + $0x20] sm:$0x3] }
 0x2d0   : > { %1398 = vmatprep.subr.msk.mxu1 %vm770_vm8, %v1195_v55 }
 0x2d3   : > { %1399 = vmatpush1.msk.msra.mxu1 %vm770_vm8, %v1194_v56 }
 0x2d4   : > { %1400 = vmatmul.mubr.msk.f32.vlgmr.msra.gmra.mrb[0].mxu1 %vm766_vm9, %v1189_v23  ;;  %v1200_v57 = vpop.permute.xlu1 %1199 }
 0x3a7   : > { %v1277_v58 = vpop.f32.mrb[0].mxu1 }
 0x3a8   : > { %v1278_v59 = vadd.f32 %v1277_v58, %v1200_v57  ;;  %v1279_v60 = vpop.f32.mrb[1].mxu1 }
 0x3a9   : > { %v1280_v61 = vadd.f32 %v1279_v60, %v1200_v57 }
 0x3aa   : > { %v1282_v26 = vmax.f32 %v1278_v59, 0.0 }
 0x3ab   : > { %v1283_v63 = vmax.f32 %v1280_v61, 0.0 }
 0x3ac   : > { %v1287_v0 = vrot.slane %v1282_v26, %v1565_v21  ;;  %v1297_v18 = vrot.slane %v1282_v26, %v1567_v22 }
 0x3ad   : > { %v1291_v2 = vrot.slane %v1283_v63, %v1565_v21  ;;  %v1301_v31 = vrot.slane %v1283_v63, %v1567_v22 }
 0x3ae   : > { %v1292_v28 = vmul.f32 %v1287_v0, %v1730_v5  ;;  %v1302_v3 = vmul.f32 %v1297_v18, %v1732_v14 }
 0x3af   : > { %v1293_v6 = vmul.f32 %v1291_v2, %v1730_v5  ;;  %v1303_v44 = vmul.f32 %v1301_v31, %v1732_v14 }
 0x3b0   : > { %v1304_v7 = vadd.f32 %v1302_v3, %v1292_v28 }
 0x3b1   : > { %v1305_v8 = vadd.f32 %v1303_v44, %v1293_v6 }
 0x3b2   : > { %v1306_v9 = vadd.f32 %v1304_v7, %v1742_v1 }
 0x3b3   : > { %v1307_v53 = vadd.f32 %v1305_v8, %v1742_v1 }
 0x3b4   : > { %v1308_v62 = vadd.f32 %v1306_v9, %v1749_v35 }
 0x3b5   : > { %v1309_v21 = vadd.f32 %v1307_v53, %v1751_v36 }
 0x3b7   : > { %v1312_v22 = vcombine.low %v1308_v62, %v1309_v21 }
 0x3b9   : > { %1314 = vst [vmem:[%s359_s16] sm:$0xff] %v1312_v22 }
 0x3ba PF: > { %s20_s13 = sadd.s32 1, %s1451_s13  }
 0x3bb   : > { %p17_p4 = scmp.ge.s32.totalorder %s20_s13, 4  }
 0x3bd   :  { %19 = sbr.rel (!%p17_p4) target bundleno = 1 (0x1), region = 98 }

// kernel: hourglass_forward.19
= control target key start
LH: loop header
LB: loop body
LE: loop exit
PB: predicated region body
PF: predicated region fallthrough
CT: control target
= control target key end

     0   :  { %s394_s12 = smov 0   ;;  %s420_s0 = inlined_call_operand.vmem [shape: f32[2,4,16], index: 0, kind: input, shape index: {}]   ;;  %s421_s1 = inlined_call_operand.vmem [shape: f32[2,4,64], index: 1, kind: input, shape index: {}]   ;;  %s422_s2 = inlined_call_operand.vmem [shape: f32[16,64], index: 2, kind: input, shape index: {}]   ;;  %s423_s3 = inlined_call_operand.vmem [shape: f32[2,4,64], index: 3, kind: output, shape index: {}]  }
   0x1 LB: > { %s328_s13 = sadd.s32 4294967295, %s369_s12   ;;  %p332_p0 = scmp.ge.s32.totalorder %s369_s12, 1  ;;  %s369_s12 = sphi %s394_s12, %s13_s12  }
   0x2   : > { %p145_p1 = scmp.lt.s32.totalorder %s369_s12, 3 }
   0x4   : > { %p146_p2 = pnand %p332_p0, %p145_p1 }
   0x5   : > { %v184_v0 = vld [vmem:[%s422_s2] sm:$0xff] (!%p146_p2)  ;;  %v185_v1 = vld [vmem:[%s422_s2 + $0x8] sm:$0xff] (!%p146_p2)  ;;  %p171_p3 = scmp.lt.s32.totalorder (!%p146_p2), %s328_s13, 1  ;;  %v371_v2 = vmov (!%p146_p2), 0.0|0.0   ;;  %vm372_vm0 = vmmov (!%p146_p2), 0   ;;  %v373_v4 = vmov (!%p146_p2), 0.0  }
   0x6   : > { %149 = sbr.rel (%p146_p2) target bundleno = 232 (0xe8), region = 32  ;;  %349 = vmatprep.subr.bf16.mxu0 (!%p146_p2), %v371_v2  ;;  %v350_v3 = vpack.c.bf16 (!%p146_p2), %v185_v1, %v184_v0  ;;  %346 = vmatprep.mubr.msk.f32.mxu0 (!%p146_p2), %vm372_vm0, %v373_v4  ;;  %vm187_vm1 = vcmask (!%p146_p2), 130048   ;;  %vm261_vm2 = vcmask (!%p146_p2), 519168  }
   0x8   : > { %351 = vmatpush3.bf16.msra.mxu0 (!%p146_p2), %v350_v3 }
   0xd   : > { %s425_s13 = smov (!%p171_p3, %s328_s13), 1 }
   0xe   : > { %s333_s18 = sshll.u32 %s425_s13, 2 }
   0xf   : > { %s174_s21 = scalar_lea.vmem %s420_s0, %s333_s18  ;;  %s178_s24 = scalar_lea.vmem %s421_s1, %s333_s18 }
  0x10   : > { %v183_v5 = vld [vmem:[%s174_s21] sm:$0xf]  ;;  %s182_s27 = scalar_lea.vmem %s423_s3, %s333_s18 }
  0x11   : > { %347 = vmatmul.mubr.msk.f32.vlgmr.msra.gmra.mrb[0].mxu0 %vm187_vm1, %v183_v5  ;;  %v186_v6 = vld [vmem:[%s178_s24] sm:$0xf] }
  0xe4   : > { %v257_v7 = vpop.f32.mrb[0].mxu0 }
  0xe5   : > { %v258_v8 = vadd.f32 %v257_v7, %v186_v6  ;;  %v348_v9 = vpop.f32.mrb[1].mxu0 }
  0xe7   : > { %262 = vst.msk [vmem:[%s182_s27] sm:$0xf] %vm261_vm2, %v258_v8 }
  0xe8 PF: > { %s13_s12 = sadd.s32 1, %s369_s12  }
  0xe9   : > { %p10_p4 = scmp.ge.s32.totalorder %s13_s12, 4  }
  0xeb   :  { %12 = sbr.rel (!%p10_p4) target bundleno = 1 (0x1), region = 65 }

// kernel: hourglass_forward.21
= control target key start
LH: loop header
LB: loop body
LE: loop exit
PB: predicated region body
PF: predicated region fallthrough
CT: control target
= control target key end

     0   :  { %s426_s12 = smov 0   ;;  %s498_s0 = inlined_call_operand.vmem [shape: f32[2,4,64], index: 0, kind: input, shape index: {}]   ;;  %s499_s1 = inlined_call_operand.vmem [shape: f32[2,4,256], index: 1, kind: input, shape index: {}]   ;;  %s500_s2 = inlined_call_operand.vmem [shape: f32[64,256], index: 2, kind: input, shape index: {}]   ;;  %s501_s3 = inlined_call_operand.vmem [shape: f32[2,4,256], index: 3, kind: output, shape index: {}]  }
   0x1 LB: > { %s356_s13 = sadd.s32 4294967295, %s403_s12   ;;  %p360_p0 = scmp.ge.s32.totalorder %s403_s12, 1  ;;  %s403_s12 = sphi %s426_s12, %s13_s12  }
   0x2   : > { %p146_p1 = scmp.lt.s32.totalorder %s403_s12, 3 }
   0x4   : > { %p147_p2 = pnand %p360_p0, %p146_p1 }
   0x5   : > { %v190_v0 = vld [vmem:[%s500_s2 + $0x8] sm:$0xff] (!%p147_p2)  ;;  %v192_v1 = vld [vmem:[%s500_s2 + $0x18] sm:$0xff] (!%p147_p2)  ;;  %v189_v2 = vld [vmem:[%s500_s2] sm:$0xff] (!%p147_p2)  ;;  %v405_v7 = vmov (!%p147_p2), 0.0   ;;  %p174_p3 = scmp.lt.s32.totalorder (!%p147_p2), %s356_s13, 1  ;;  %vm209_vm0 = vcmask (!%p147_p2), 523264  }
   0x6   : > { %150 = sbr.rel (%p147_p2) target bundleno = 242 (0xf2), region = 32  ;;  %v371_v3 = vpack.c.bf16 (!%p147_p2), %v192_v1, %v190_v0  ;;  %v191_v4 = vld [vmem:[%s500_s2 + $0x10] sm:$0xff] (!%p147_p2)  ;;  %v194_v5 = vld [vmem:[%s500_s2 + $0x28] sm:$0xff] (!%p147_p2)  ;;  %v196_v6 = vld [vmem:[%s500_s2 + $0x38] sm:$0xff] (!%p147_p2)  ;;  %277 = vmatprep.mubr.f32.mxu0 (!%p147_p2), %v405_v7 }
   0x7   : > { %v373_v8 = vpack.c.bf16 (!%p147_p2), %v191_v4, %v189_v2  ;;  %v375_v9 = vpack.c.bf16 (!%p147_p2), %v196_v6, %v194_v5  ;;  %v193_v10 = vld [vmem:[%s500_s2 + $0x20] sm:$0xff] (!%p147_p2)  ;;  %v195_v11 = vld [vmem:[%s500_s2 + $0x30] sm:$0xff] (!%p147_p2)  ;;  %v198_v12 = vld [vmem:[%s500_s2 + $0x48] sm:$0xff] (!%p147_p2) }
   0x8   : > { %372 = vmatprep.subr.bf16.mxu0 (!%p147_p2), %v371_v3  ;;  %v200_v13 = vld [vmem:[%s500_s2 + $0x58] sm:$0xff] (!%p147_p2)  ;;  %v377_v14 = vpack.c.bf16 (!%p147_p2), %v195_v11, %v193_v10  ;;  %v197_v16 = vld [vmem:[%s500_s2 + $0x40] sm:$0xff] (!%p147_p2)  ;;  %v199_v17 = vld [vmem:[%s500_s2 + $0x50] sm:$0xff] (!%p147_p2) }
   0x9   : > { %374 = vmatpush1.bf16.msra.mxu0 (!%p147_p2), %v373_v8  ;;  %v379_v15 = vpack.c.bf16 (!%p147_p2), %v200_v13, %v198_v12  ;;  %v202_v18 = vld [vmem:[%s500_s2 + $0x68] sm:$0xff] (!%p147_p2)  ;;  %v204_v19 = vld [vmem:[%s500_s2 + $0x78] sm:$0xff] (!%p147_p2)  ;;  %v381_v20 = vpack.c.bf16 (!%p147_p2), %v199_v17, %v197_v16  ;;  %v201_v22 = vld [vmem:[%s500_s2 + $0x60] sm:$0xff] (!%p147_p2) }
   0xa   : > { %376 = vmatprep.subr.bf16.mxu0 (!%p147_p2), %v375_v9  ;;  %v383_v21 = vpack.c.bf16 (!%p147_p2), %v204_v19, %v202_v18  ;;  %v203_v23 = vld [vmem:[%s500_s2 + $0x70] sm:$0xff] (!%p147_p2) }
   0xb   : > { %v385_v24 = vpack.c.bf16 (!%p147_p2), %v203_v23, %v201_v22 }
   0xd   : > { %s503_s13 = smov (!%p174_p3, %s356_s13), 1  ;;  %378 = vmatpush1.bf16.msra.mxu0 %v377_v14 }
   0xe   : > { %380 = vmatprep.subr.bf16.mxu0 %v379_v15  ;;  %s361_s21 = sshll.u32 %s503_s13, 2  ;;  %s369_s25 = sshll.u32 %s503_s13, 3 }
   0xf   : > { %s177_s24 = scalar_lea.vmem %s498_s0, %s361_s21  ;;  %s182_s28 = scalar_lea.vmem %s499_s1, %s369_s25 }
  0x10   : > { %v188_v25 = vld [vmem:[%s177_s24] sm:$0xf]  ;;  %s187_s4 = scalar_lea.vmem %s501_s3, %s369_s25 }
  0x11   : > { %382 = vmatpush1.bf16.msra.mxu0 %v381_v20  ;;  %v205_v26 = vld [vmem:[%s182_s28] sm:$0xff] }
  0x12   : > { %384 = vmatprep.subr.bf16.mxu0 %v383_v21  ;;  %v207_v27 = vcombine.high %v205_v26, %v205_v26 }
  0x15   : > { %386 = vmatpush1.bf16.msra.mxu0 %v385_v24 }
  0x18   : > { %366 = vmatmul.mubr.msk.f32.vlgmr.msra.gmra.mrb[0].mxu0 %vm209_vm0, %v188_v25 }
  0xeb   : > { %v279_v28 = vpop.f32.mrb[0].mxu0 }
  0xec   : > { %v280_v29 = vadd.f32 %v279_v28, %v205_v26  ;;  %v281_v30 = vpop.f32.mrb[1].mxu0 }
  0xed   : > { %v282_v31 = vadd.f32 %v281_v30, %v207_v27 }
  0xef   : > { %v286_v32 = vcombine.low %v280_v29, %v282_v31 }
  0xf1   : > { %288 = vst [vmem:[%s187_s4] sm:$0xff] %v286_v32 }
  0xf2 PF: > { %s13_s12 = sadd.s32 1, %s403_s12  }
  0xf3   : > { %p10_p4 = scmp.ge.s32.totalorder %s13_s12, 4  }
  0xf5   :  { %12 = sbr.rel (!%p10_p4) target bundleno = 1 (0x1), region = 65 }

// kernel: hourglass_forward.16
= control target key start
LH: loop header
LB: loop body
LE: loop exit
PB: predicated region body
PF: predicated region fallthrough
CT: control target
= control target key end

     0   :  { %s1220_s13 = smov 0   ;;  %s1486_s0 = inlined_call_operand.vmem [shape: f32[2,4,16], index: 0, kind: input, shape index: {}]   ;;  %s1487_s1 = inlined_call_operand.vmem [shape: f32[4,1], index: 1, kind: input, shape index: {}]   ;;  %s1488_s2 = inlined_call_operand.vmem [shape: f32[4,1], index: 2, kind: input, shape index: {}]   ;;  %s1489_s3 = inlined_call_operand.vmem [shape: f32[2,4], index: 3, kind: input, shape index: {}]   ;;  %s1490_s4 = inlined_call_operand.vmem [shape: f32[2,1], index: 4, kind: input, shape index: {}]   ;;  %s1491_s5 = inlined_call_operand.vmem [shape: f32[2,18], index: 5, kind: input, shape index: {}]   ;;  %s1492_s6 = inlined_call_operand.vmem [shape: f32[2,1], index: 6, kind: input, shape index: {}]   ;;  %s1493_s7 = inlined_call_operand.vmem [shape: f32[4,2], index: 7, kind: input, shape index: {}]   ;;  %s1494_s8 = inlined_call_operand.vmem [shape: f32[4,1], index: 8, kind: input, shape index: {}]   ;;  %s1495_s9 = inlined_call_operand.vmem [shape: f32[9,1,16], index: 9, kind: input, shape index: {}]   ;;  %s1496_s10 = inlined_call_operand.vmem [shape: f32[2,4,16], index: 10, kind: output, shape index: {}]  }
   0x1 LB: > { %s1013_s14 = sadd.s32 4294967295, %s1139_s13   ;;  %p1017_p0 = scmp.ge.s32.totalorder %s1139_s13, 1  ;;  %s1139_s13 = sphi %s1220_s13, %s20_s13  }
   0x2   : > { %p311_p1 = scmp.lt.s32.totalorder %s1139_s13, 3 }
   0x4   : > { %p312_p2 = pnand %p1017_p0, %p311_p1 }
   0x5   : > { %v360_v0 = vld [vmem:[%s1487_s1] sm:$0xf] (!%p312_p2)  ;;  %v1141_v2 = vmov (!%p312_p2), 0   ;;  %v1142_v4 = vmov (!%p312_p2), 1   ;;  %v1143_v5 = vmov (!%p312_p2), 2   ;;  %v1144_v6 = vmov (!%p312_p2), 3  }
   0x6   : > { %315 = sbr.rel (%p312_p2) target bundleno = 1382 (0x566), region = 60  ;;  %v356_v1 = vld [vmem:[%s1489_s3] sm:$0x3] (!%p312_p2)  ;;  %1125 = vset.pattern.permute.xlu1 (!%p312_p2), %v1141_v2  ;;  %1124 = vset.pattern.permute.xlu0 (!%p312_p2), %v1141_v2  ;;  %s1145_s25 = smov (!%p312_p2), 12   ;;  %v1255_v9 = vld [vmem:[%s1495_s9 + $0x3] ss:$0 sm:$0xff] (!%p312_p2)  ;;  %v380_v10 = vlaneseq (!%p312_p2) }
   0x7   : > { %363 = vperm.xlu0 (!%p312_p2), %1124, %v360_v0   ;;  %377 = vperm.xlu1 (!%p312_p2), %1125, %v356_v1   ;;  %v367_v3 = vld [vmem:[%s1488_s2] sm:$0xf] (!%p312_p2)  ;;  %s1146_s28 = smov (!%p312_p2), 15   ;;  %p347_p3 = scmp.lt.s32.totalorder (!%p312_p2), %s1013_s14, 1  ;;  %v1308_v39 = vld [vmem:[%s1495_s9 + $0x4] ss:$0 sm:$0xff] (!%p312_p2) }
   0x8   : > { %v357_v7 = vld [vmem:[%s1490_s4] sm:$0x3] (!%p312_p2)  ;;  %v1275_v14 = vshrl.u32 (!%p312_p2), %v380_v10, 7  ;;  %vm443_vm0 = vcmask (!%p312_p2), 123904   ;;  %s1147_s17 = smov (!%p312_p2), 16   ;;  %s1148_s20 = smov (!%p312_p2), 11  }
   0x9   : > { %v1248_v8 = vld [vmem:[%s1495_s9 + $0x1] ss:$0 sm:$0xff] (!%p312_p2)  ;;  %v1315_v42 = vld [vmem:[%s1495_s9] ss:$0 sm:$0xff] (!%p312_p2)  ;;  %v1323_v43 = vld [vmem:[%s1495_s9 + $0x2] ss:$0 sm:$0xff] (!%p312_p2) }
   0xa   : > { %v1279_v18 = vsub.s32 (!%p312_p2), 0, %v1275_v14  ;;  %v1282_v19 = vsub.s32 (!%p312_p2), 1, %v1275_v14  ;;  %v401_v20 = vsub.s32 (!%p312_p2), 2, %v1275_v14  ;;  %v411_v23 = vsub.s32 (!%p312_p2), 3, %v1275_v14  ;;  %s1149_s23 = smov (!%p312_p2), 13   ;;  %s1150_s27 = smov (!%p312_p2), 1  }
   0xb   : > { %370 = vperm.xlu0 (!%p312_p2), %1124, %v367_v3   ;;  %1126 = vset.pattern.permute.xlu1 (!%p312_p2), %v1142_v4  ;;  %v1330_v44 = vld [vmem:[%s1495_s9 + $0x5] ss:$0 sm:$0xff] (!%p312_p2)  ;;  %v1337_v45 = vld [vmem:[%s1495_s9 + $0x7] ss:$0 sm:$0xff] (!%p312_p2)  ;;  %vm422_vm1 = vcmask (!%p312_p2), 1047680   ;;  %s1152_s18 = smov (!%p312_p2), 3  }
   0xc   : > { %386 = vperm.xlu1 (!%p312_p2), %1126, %v356_v1   ;;  %v1346_v48 = vld [vmem:[%s1495_s9 + $0x6] ss:$0 sm:$0xff] (!%p312_p2)  ;;  %v1353_v49 = vld [vmem:[%s1495_s9 + $0x8] ss:$0 sm:$0xff] (!%p312_p2)  ;;  %s1153_s22 = smov (!%p312_p2), 5   ;;  %s1154_s24 = smov (!%p312_p2), 116  }
   0xd   : > { %s1514_s14 = smov (!%p347_p3, %s1013_s14), 1  ;;  %s1504_s26 = smov 117   ;;  %v1156_v60 = vmov 0.0|0.0   ;;  %vm1163_vm2 = vmmov 0   ;;  %v1164_v10 = vmov 0.0   ;;  %vm581_vm3 = vcmask 1041408  }
   0xe   : > { %s1497_s29 = sshll.u32 %s1514_s14, 2  ;;  %1086 = vmatprep.subr.bf16.mxu0 %v1156_v60  ;;  %1089 = vmatprep.subr.bf16.mxu1 %v1156_v60  ;;  %s1502_s30 = smov 113   ;;  %vm577_vm4 = vcmask 146432   ;;  %vm958_vm5 = vcmask 125952  }
   0xf   : > { %1127 = vset.pattern.permute.xlu0 %v1143_v5  ;;  %s350_s12 = scalar_lea.vmem %s1486_s0, %s1497_s29  ;;  %s1498_s11 = smov 115   ;;  %1074 = vmatprep.mubr.msk.f32.mxu0 %vm1163_vm2, %v1164_v10 }
  0x10   : > { %1128 = vset.pattern.permute.xlu1 %v1144_v6  ;;  %396 = vperm.xlu0 %1127, %v356_v1   ;;  %v1271_v12 = vld [vmem:[%s350_s12] sm:$0xf]  ;;  %s1151_s12 = smov 4   ;;  %s1499_s15 = smov 125  }
  0x11   : > { %406 = vperm.xlu1 %1128, %v356_v1   ;;  %s1500_s16 = smov 127   ;;  %s1501_s19 = smov 123   ;;  %1083 = vmatprep.mubr.msk.f32.mxu1 %vm1163_vm2, %v1164_v10 }
  0x12   : > { %s1503_s21 = smov 124  }
  0x14   : > { %1130 = vset.pattern.permute.xlu0 %v1141_v2 }
  0x15   : > { %1129 = vset.pattern.permute.xlu1 %v1141_v2 }
  0x16   : > { %417 = vperm.xlu1 %1129, %v357_v7   ;;  %v358_v7 = vld [vmem:[%s1493_s7] sm:$0xf] }
  0x1a   : > { %452 = vrot.lane.b32.xlu1 %v1248_v8, %s1145_s25 }
  0x1e   : > { %484 = vrot.lane.b32.xlu1 %v1255_v9, %s1146_s28 }
  0x86   : > { %v364_v11 = vpop.permute.xlu0 %363  ;;  %v1273_v13 = vpop.permute.xlu1 %377 }
  0x87   : > { %v366_v15 = vmul.f32 %v364_v11, %v1271_v12  ;;  %v571_v11 = vld [vmem:[%s1492_s6] sm:$0x3] }
  0x8a   : > { %v371_v16 = vpop.permute.xlu0 %370 }
  0x8b   : > { %v373_v17 = vadd.f32 %v371_v16, %v366_v15  ;;  %v1285_v21 = vpop.permute.xlu1 %386  ;;  %v359_v15 = vld [vmem:[%s1494_s8] sm:$0xf] }
  0x8c   : > { %v690_v16 = vld [vmem:[%s1488_s2] sm:$0xf] }
  0x8d   : > { %v374_v22 = vmax.f32 %v373_v17, 0.0  ;;  %v683_v17 = vld [vmem:[%s1487_s1] sm:$0xf] }
  0x8f   : > { %v383_v24 = vrot.slane %v374_v22, %v1279_v18  ;;  %v392_v25 = vrot.slane %v374_v22, %v1282_v19  ;;  %v402_v26 = vrot.slane %v374_v22, %v401_v20  ;;  %v1292_v27 = vpop.permute.xlu0 %396  ;;  %v412_v30 = vrot.slane %v374_v22, %v411_v23 }
  0x90   : > { %v1298_v31 = vpop.permute.xlu1 %406 }
  0x91   : > { %v384_v28 = vmul.f32 %v383_v24, %v1273_v13  ;;  %v393_v29 = vmul.f32 %v392_v25, %v1285_v21  ;;  %v403_v33 = vmul.f32 %v402_v26, %v1292_v27  ;;  %v413_v35 = vmul.f32 %v412_v30, %v1298_v31 }
  0x93   : > { %v394_v32 = vadd.f32 %v393_v29, %v384_v28 }
  0x95   : > { %v404_v34 = vadd.f32 %v403_v33, %v394_v32  ;;  %v1302_v36 = vpop.permute.xlu1 %417  ;;  %v567_v32 = vld [vmem:[%s1491_s5] sm:$0x3] }
  0x97   : > { %v414_v37 = vadd.f32 %v413_v35, %v404_v34 }
  0x99   : > { %v420_v38 = vadd.f32 %v1302_v36, %v414_v37  ;;  %v453_v50 = vpop.permute.xlu1 %452 }
  0x9b   : > { %v421_v40 = vmax.f32 %v420_v38, 0.0 }
  0x9d   : > { %v501_v41 = vmul.f32 %v1308_v39, %v421_v40  ;;  %423 = vrot.lane.b32.xlu0 %v421_v40, %s1147_s17  ;;  %v485_v52 = vpop.permute.xlu1 %484 }
  0x9f   : > { %502 = vst.msk [vmem:[#allocation2 + $0x8] sm:$0x3] %vm443_vm0, %v501_v41 }
  0xa1   : > { %435 = vrot.lane.b32.xlu0 %v1315_v42, %s1148_s20 }
  0xa5   : > { %468 = vrot.lane.b32.xlu0 %v1323_v43, %s1149_s23 }
  0xa9   : > { %510 = vrot.lane.b32.xlu0 %v1330_v44, %s1150_s27 }
  0xad   : > { %542 = vrot.lane.b32.xlu0 %v1337_v45, %s1151_s12 }
 0x10f   : > { %v424_v46 = vpop.permute.xlu0 %423 }
 0x110   : > { %v425_v47 = vsel %vm422_vm1, %v424_v46, %v421_v40 }
 0x111   : > { %426 = vrot.lane.b32.xlu1 %v425_v47, %s1147_s17 }
 0x113   : > { %v436_v51 = vpop.permute.xlu0 %435 }
 0x115   : > { %526 = vrot.lane.b32.xlu1 %v1346_v48, %s1152_s18 }
 0x117   : > { %v469_v53 = vpop.permute.xlu0 %468 }
 0x119   : > { %558 = vrot.lane.b32.xlu1 %v1353_v49, %s1153_s22 }
 0x11b   : > { %v511_v58 = vpop.permute.xlu0 %510 }
 0x11f   : > { %v543_v1 = vpop.permute.xlu0 %542 }
 0x183   : > { %v427_v54 = vpop.permute.xlu1 %426 }
 0x184   : > { %v428_v55 = vsel %vm422_vm1, %v427_v54, %v421_v40 }
 0x185   : > { %v455_v56 = vmul.f32 %v453_v50, %v428_v55  ;;  %v438_v57 = vmul.f32 %v436_v51, %v428_v55  ;;  %v487_v61 = vmul.f32 %v485_v52, %v428_v55  ;;  %v471_v62 = vmul.f32 %v469_v53, %v428_v55 }
 0x186   : > { %v513_v0 = vmul.f32 %v511_v58, %v428_v55  ;;  %v545_v5 = vmul.f32 %v543_v1, %v428_v55 }
 0x187   : > { %457 = vrot.lane.b32.xlu1 %v455_v56, %s1154_s24  ;;  %440 = vrot.lane.b32.xlu0 %v438_v57, %s1504_s26  ;;  %v527_v59 = vpop.permute.xlu1 %526 }
 0x188   : > { %v529_v63 = vmul.f32 %v527_v59, %v428_v55 }
 0x18b   : > { %489 = vrot.lane.b32.xlu1 %v487_v61, %s1502_s30  ;;  %473 = vrot.lane.b32.xlu0 %v471_v62, %s1498_s11  ;;  %v559_v3 = vpop.permute.xlu1 %558 }
 0x18c   : > { %v561_v6 = vmul.f32 %v559_v3, %v428_v55 }
 0x18f   : > { %531 = vrot.lane.b32.xlu1 %v529_v63, %s1499_s15  ;;  %515 = vrot.lane.b32.xlu0 %v513_v0, %s1500_s16  ;;  %s1512_s16 = sshll.u32 %s1514_s14, 2 }
 0x190   : > { %s354_s29 = scalar_lea.vmem %s1496_s10, %s1512_s16 }
 0x193   : > { %563 = vrot.lane.b32.xlu1 %v561_v6, %s1501_s19  ;;  %547 = vrot.lane.b32.xlu0 %v545_v5, %s1503_s21 }
 0x197   : > { %658 = vperm.xlu1 %1129, %v358_v7   ;;  %574 = vperm.xlu0 %1130, %v571_v11  }
 0x19b   : > { %678 = vperm.xlu0 %1130, %v359_v15   ;;  %1131 = vset.pattern.permute.xlu1 %v1142_v4 }
 0x19c   : > { %667 = vperm.xlu1 %1131, %v358_v7  }
 0x19f   : > { %693 = vperm.xlu0 %1130, %v690_v16  }
 0x1a0   : > { %1132 = vset.pattern.permute.xlu1 %v1141_v2 }
 0x1a1   : > { %686 = vperm.xlu1 %1132, %v683_v17  }
 0x1a3   : > { %750 = vrot.lane.b32.xlu0 %v1248_v8, %s1145_s25 }
 0x1a7   : > { %780 = vrot.lane.b32.xlu0 %v1255_v9, %s1146_s28 }
 0x1f9   : > { %v458_v4 = vpop.permute.xlu1 %457  ;;  %v441_v22 = vpop.permute.xlu0 %440 }
 0x1fa   : > { %460 = vst.msk [vmem:[#allocation2 + $0x2] sm:$0x3] %vm443_vm0, %v458_v4  ;;  %444 = vst.msk [vmem:[#allocation2] sm:$0x3] %vm443_vm0, %v441_v22 }
 0x1fd   : > { %v490_v24 = vpop.permute.xlu1 %489  ;;  %v474_v25 = vpop.permute.xlu0 %473 }
 0x1fe   : > { %492 = vst.msk [vmem:[#allocation2 + $0x6] sm:$0x3] %vm443_vm0, %v490_v24  ;;  %476 = vst.msk [vmem:[#allocation2 + $0x4] sm:$0x3] %vm443_vm0, %v474_v25 }
 0x201   : > { %v532_v2 = vpop.permute.xlu1 %531  ;;  %v516_v26 = vpop.permute.xlu0 %515 }
 0x202   : > { %534 = vst.msk [vmem:[#allocation2 + $0xc] sm:$0x3] %vm443_vm0, %v532_v2  ;;  %518 = vst.msk [vmem:[#allocation2 + $0xa] sm:$0x3] %vm443_vm0, %v516_v26 }
 0x205   : > { %v564_v8 = vpop.permute.xlu1 %563  ;;  %v548_v9 = vpop.permute.xlu0 %547  ;;  %v568_v28 = vld [vmem:[#allocation2] sm:$0xff] }
 0x206   : > { %566 = vst.msk [vmem:[#allocation2 + $0x10] sm:$0x3] %vm443_vm0, %v564_v8  ;;  %550 = vst.msk [vmem:[#allocation2 + $0xe] sm:$0x3] %vm443_vm0, %v548_v9  ;;  %v862_v8 = vld [vmem:[%s1492_s6] sm:$0x3] }
 0x20d   : > { %v569_v29 = vld [vmem:[#allocation2 + $0x8] sm:$0xff]  ;;  %v570_v33 = vld [vmem:[#allocation2 + $0x10] sm:$0x3] }
 0x20e   : > { %v1087_v30 = vpack.c.bf16 %v569_v29, %v568_v28 }
 0x210   : > { %1088 = vmatpush3.bf16.msra.mxu0 %v1087_v30 }
 0x211   : > { %1072 = vmatprep.subr.mxu0 %v1164_v10 }
 0x214   : > { %1073 = vmatpush3.msk.msra.mxu0 %vm581_vm3, %v570_v33 }
 0x215   : > { %1075 = vmatmul.mubr.msk.f32.vlgmr.msra.gmra.mrb[0].mxu0 %vm577_vm4, %v567_v32 }
 0x216   : > { %v1403_v34 = vpop.permute.xlu1 %658  ;;  %v575_v35 = vpop.permute.xlu0 %574 }
 0x21a   : > { %v1411_v54 = vpop.permute.xlu0 %678 }
 0x21b   : > { %v1405_v46 = vpop.permute.xlu1 %667 }
 0x21e   : > { %v694_v59 = vpop.permute.xlu0 %693 }
 0x220   : > { %v687_v56 = vpop.permute.xlu1 %686 }
 0x2e8   : > { %v651_v37 = vpop.f32.mrb[0].mxu0 }
 0x2e9   : > { %v652_v38 = vadd.f32 %v651_v37, %v575_v35  ;;  %v1076_v40 = vpop.f32.mrb[1].mxu0 }
 0x2eb   : > { %v655_v41 = vmax.f32 %v652_v38, 0.0 }
 0x2ed   : > { %v664_v47 = vrot.slane %v655_v41, %v1279_v18  ;;  %v673_v50 = vrot.slane %v655_v41, %v1282_v19 }
 0x2ef   : > { %v665_v51 = vmul.f32 %v664_v47, %v1403_v34  ;;  %v674_v52 = vmul.f32 %v673_v50, %v1405_v46  ;;  %v858_v47 = vld [vmem:[%s1491_s5] sm:$0x3] }
 0x2f1   : > { %v675_v53 = vadd.f32 %v674_v52, %v665_v51 }
 0x2f3   : > { %v681_v55 = vadd.f32 %v1411_v54, %v675_v53 }
 0x2f5   : > { %v1415_v57 = vadd.f32 %v681_v55, %v1271_v12 }
 0x2f7   : > { %v689_v58 = vmul.f32 %v687_v56, %v1415_v57 }
 0x2f9   : > { %v696_v60 = vadd.f32 %v694_v59, %v689_v58 }
 0x2fb   : > { %v697_v61 = vmax.f32 %v696_v60, 0.0 }
 0x2fd   : > { %v701_v62 = vrot.slane %v697_v61, %v1279_v18  ;;  %v706_v63 = vrot.slane %v697_v61, %v1282_v19  ;;  %v712_v0 = vrot.slane %v697_v61, %v401_v20  ;;  %v718_v12 = vrot.slane %v697_v61, %v411_v23 }
 0x2ff   : > { %v702_v1 = vmul.f32 %v701_v62, %v1273_v13  ;;  %v707_v3 = vmul.f32 %v706_v63, %v1285_v21  ;;  %v713_v5 = vmul.f32 %v712_v0, %v1292_v27  ;;  %v719_v11 = vmul.f32 %v718_v12, %v1298_v31  ;;  %v751_v21 = vpop.permute.xlu0 %750 }
 0x301   : > { %v708_v6 = vadd.f32 %v707_v3, %v702_v1 }
 0x303   : > { %v714_v7 = vadd.f32 %v713_v5, %v708_v6  ;;  %v781_v27 = vpop.permute.xlu0 %780 }
 0x305   : > { %v720_v15 = vadd.f32 %v719_v11, %v714_v7 }
 0x307   : > { %v721_v16 = vadd.f32 %v720_v15, %v1302_v36 }
 0x309   : > { %v722_v17 = vmax.f32 %v721_v16, 0.0 }
 0x30b   : > { %723 = vrot.lane.b32.xlu1 %v722_v17, %s1147_s17  ;;  %v796_v20 = vmul.f32 %v1308_v39, %v722_v17 }
 0x30d   : > { %797 = vst.msk [vmem:[#allocation2 + $0x8] sm:$0x3] %vm443_vm0, %v796_v20 }
 0x30f   : > { %735 = vrot.lane.b32.xlu1 %v1315_v42, %s1148_s20  ;;  %s1505_s20 = smov 117  }
 0x313   : > { %765 = vrot.lane.b32.xlu1 %v1323_v43, %s1149_s23  ;;  %s1507_s23 = smov 115  }
 0x317   : > { %804 = vrot.lane.b32.xlu1 %v1330_v44, %s1150_s27  ;;  %s1508_s27 = smov 125  }
 0x31b   : > { %834 = vrot.lane.b32.xlu1 %v1337_v45, %s1151_s12  ;;  %s1509_s12 = smov 127  }
 0x37d   : > { %v724_v13 = vpop.permute.xlu1 %723 }
 0x37e   : > { %v725_v14 = vsel %vm422_vm1, %v724_v13, %v722_v17 }
 0x37f   : > { %726 = vrot.lane.b32.xlu0 %v725_v14, %s1147_s17  ;;  %s1506_s17 = smov 113  }
 0x381   : > { %v736_v23 = vpop.permute.xlu1 %735 }
 0x383   : > { %819 = vrot.lane.b32.xlu0 %v1346_v48, %s1152_s18  ;;  %s1510_s18 = smov 123  }
 0x385   : > { %v766_v31 = vpop.permute.xlu1 %765 }
 0x387   : > { %849 = vrot.lane.b32.xlu0 %v1353_v49, %s1153_s22  ;;  %s1511_s22 = smov 124  }
 0x389   : > { %v805_v44 = vpop.permute.xlu1 %804 }
 0x38d   : > { %v835_v24 = vpop.permute.xlu1 %834 }
 0x3f1   : > { %v727_v36 = vpop.permute.xlu0 %726 }
 0x3f2   : > { %v728_v39 = vsel %vm422_vm1, %v727_v36, %v722_v17 }
 0x3f3   : > { %v753_v42 = vmul.f32 %v751_v21, %v728_v39  ;;  %v738_v43 = vmul.f32 %v736_v23, %v728_v39  ;;  %v783_v4 = vmul.f32 %v781_v27, %v728_v39  ;;  %v768_v48 = vmul.f32 %v766_v31, %v728_v39 }
 0x3f4   : > { %v807_v22 = vmul.f32 %v805_v44, %v728_v39  ;;  %v837_v2 = vmul.f32 %v835_v24, %v728_v39 }
 0x3f5   : > { %755 = vrot.lane.b32.xlu0 %v753_v42, %s1154_s24  ;;  %740 = vrot.lane.b32.xlu1 %v738_v43, %s1505_s20  ;;  %v820_v45 = vpop.permute.xlu0 %819 }
 0x3f6   : > { %v822_v49 = vmul.f32 %v820_v45, %v728_v39 }
 0x3f9   : > { %785 = vrot.lane.b32.xlu0 %v783_v4, %s1506_s17  ;;  %770 = vrot.lane.b32.xlu1 %v768_v48, %s1507_s23  ;;  %v850_v25 = vpop.permute.xlu0 %849 }
 0x3fa   : > { %v852_v26 = vmul.f32 %v850_v25, %v728_v39 }
 0x3fd   : > { %824 = vrot.lane.b32.xlu0 %v822_v49, %s1508_s27  ;;  %809 = vrot.lane.b32.xlu1 %v807_v22, %s1509_s12 }
 0x401   : > { %854 = vrot.lane.b32.xlu0 %v852_v26, %s1510_s18  ;;  %839 = vrot.lane.b32.xlu1 %v837_v2, %s1511_s22 }
 0x405   : > { %865 = vperm.xlu1 %1132, %v862_v8  }
 0x467   : > { %v756_v9 = vpop.permute.xlu0 %755  ;;  %v741_v28 = vpop.permute.xlu1 %740 }
 0x468   : > { %758 = vst.msk [vmem:[#allocation2 + $0x2] sm:$0x3] %vm443_vm0, %v756_v9  ;;  %743 = vst.msk [vmem:[#allocation2] sm:$0x3] %vm443_vm0, %v741_v28 }
 0x46b   : > { %v786_v29 = vpop.permute.xlu0 %785  ;;  %v771_v30 = vpop.permute.xlu1 %770 }
 0x46c   : > { %788 = vst.msk [vmem:[#allocation2 + $0x6] sm:$0x3] %vm443_vm0, %v786_v29  ;;  %773 = vst.msk [vmem:[#allocation2 + $0x4] sm:$0x3] %vm443_vm0, %v771_v30 }
 0x46f   : > { %v825_v32 = vpop.permute.xlu0 %824  ;;  %v810_v33 = vpop.permute.xlu1 %809 }
 0x470   : > { %827 = vst.msk [vmem:[#allocation2 + $0xc] sm:$0x3] %vm443_vm0, %v825_v32  ;;  %812 = vst.msk [vmem:[#allocation2 + $0xa] sm:$0x3] %vm443_vm0, %v810_v33 }
 0x473   : > { %v855_v35 = vpop.permute.xlu0 %854  ;;  %v840_v37 = vpop.permute.xlu1 %839  ;;  %v859_v38 = vld [vmem:[#allocation2] sm:$0xff] }
 0x474   : > { %857 = vst.msk [vmem:[#allocation2 + $0x10] sm:$0x3] %vm443_vm0, %v855_v35  ;;  %842 = vst.msk [vmem:[#allocation2 + $0xe] sm:$0x3] %vm443_vm0, %v840_v37 }
 0x47b   : > { %v860_v40 = vld [vmem:[#allocation2 + $0x8] sm:$0xff]  ;;  %v861_v50 = vld [vmem:[#allocation2 + $0x10] sm:$0x3] }
 0x47c   : > { %v1090_v41 = vpack.c.bf16 %v860_v40, %v859_v38 }
 0x47e   : > { %1091 = vmatpush3.bf16.msra.mxu1 %v1090_v41 }
 0x47f   : > { %1081 = vmatprep.subr.mxu1 %v1164_v10 }
 0x482   : > { %1082 = vmatpush3.msk.msra.mxu1 %vm581_vm3, %v861_v50 }
 0x483   : > { %1084 = vmatmul.mubr.msk.f32.vlgmr.msra.gmra.mrb[0].mxu1 %vm577_vm4, %v858_v47 }
 0x484   : > { %v866_v51 = vpop.permute.xlu1 %865 }
 0x556   : > { %v940_v52 = vpop.f32.mrb[0].mxu1 }
 0x557   : > { %v941_v53 = vadd.f32 %v940_v52, %v866_v51  ;;  %v1085_v55 = vpop.f32.mrb[1].mxu1 }
 0x559   : > { %v944_v56 = vmax.f32 %v941_v53, 0.0 }
 0x55b   : > { %v948_v58 = vrot.slane %v944_v56, %v1279_v18  ;;  %v953_v59 = vrot.slane %v944_v56, %v1282_v19 }
 0x55d   : > { %v949_v10 = vmul.f32 %v948_v58, %v1403_v34  ;;  %v954_v60 = vmul.f32 %v953_v59, %v1405_v46 }
 0x55f   : > { %v955_v61 = vadd.f32 %v954_v60, %v949_v10 }
 0x561   : > { %v956_v62 = vadd.f32 %v955_v61, %v1411_v54 }
 0x563   : > { %v957_v63 = vadd.f32 %v956_v62, %v1415_v57 }
 0x565   : > { %959 = vst.msk [vmem:[%s354_s29] sm:$0xf] %vm958_vm5, %v957_v63 }
 0x566 PF: > { %s20_s13 = sadd.s32 1, %s1139_s13  }
 0x567   : > { %p17_p4 = scmp.ge.s32.totalorder %s20_s13, 4  }
 0x569   :  { %19 = sbr.rel (!%p17_p4) target bundleno = 1 (0x1), region = 98 }

</bundles_post_ra>
